<compile_context>
chip_gen: v7x
topology: tpu7x:2x2x1
jax: 0.10.0
libtpu: 0.0.40
codegen_flags: <defaults>
</compile_context>

<pallas_src>
import functools

import jax
import jax.numpy as jnp
import numpy as np
from jax.experimental import pallas as pl
from jax.experimental.pallas import tpu as pltpu

# ---- small, module-consistent configuration -------------------------------
DIM = 3
HIDDEN = 32
C_DIM = 32          # hidden_dim == c_dim required (scatter indices reused on c)
N_BLOCKS = 5
RESO = 4
V = 2 * RESO ** 3   # grid cells per batch after the `index >= V -> 0` clamp (=128)
B = 2
T = 64              # points per cloud

# ---- packed weight-slab layout (rows x 128 lanes, f32) ---------------------
#   rows 0:3   lanes 0:64   fc_pos W (3, 2H)
#   row  3     lanes 0:64   fc_pos b
#   row  4     lanes 0:32   fc_c   b
#   rows 8:40  lanes 0:32   fc_c   W (H, C)
#   per block i (base = 40 + 64*i):
#     rows base:base+64   lanes 0:32    fc_0 W (2H, H)
#     rows base:base+64   lanes 32:64   shortcut W (2H, H)  (no bias)
#     rows base:base+32   lanes 64:96   fc_1 W (H, H)
#     row  base+32        lanes 64:96   fc_0 b
#     row  base+33        lanes 64:96   fc_1 b
HDR_ROWS = 8 + HIDDEN                 # 40
BLK_ROWS = 2 * HIDDEN                 # 64
SLAB_ROWS = HDR_ROWS + N_BLOCKS * BLK_ROWS   # 360
SLAB_LANES = 128


# --------------------------- Pallas kernel ---------------------------------
def encoder_kernel(idx_row_ref, idx_col_ref, p_ref, w_ref, out_ref):
    f32, bf16 = jnp.float32, jnp.bfloat16
    h, c = HIDDEN, C_DIM
    bt = p_ref.shape[0]                # B*T (batch folded)
    nb, _, v = out_ref.shape           # (B, c_dim, V)
    bv = nb * v                        # B*V (offset cell index range)

    # ---- packed weight slab: static slices ---------------------------------
    hdr = w_ref[0:8, :]                               # one aligned (8,128) load
    wpos = hdr[0:3, 0:2 * h]                          # (3, 2H)
    bpos = hdr[3:4, 0:2 * h]                          # (1, 2H)
    bc = hdr[4:5, 0:c]                                # (1, C)
    wc = w_ref[8:8 + h, 0:c]                          # (H, C)

    def block_params(i):
        base = HDR_ROWS + BLK_ROWS * i
        w0 = w_ref[base:base + 2 * h, 0:h]            # (2H, H)
        ws = w_ref[base:base + 2 * h, h:2 * h]        # (2H, H), no bias
        w1 = w_ref[base:base + h, 2 * h:3 * h]        # (H, H)
        b01 = w_ref[base + h:base + h + 2, 2 * h:3 * h]
        return w0, ws, w1, b01[0:1, :], b01[1:2, :]

    def resblock(x, i):
        # ResnetBlockFC(2H, H): shortcut(x) + fc_1(relu(fc_0(relu(x))))
        w0, ws, w1, b0, b1 = block_params(i)
        hh = jnp.maximum(x, 0.0)
        hh = jnp.dot(hh, w0, preferred_element_type=f32) + b0
        hh = jnp.maximum(hh, 0.0)
        dx = jnp.dot(hh, w1, preferred_element_type=f32) + b1
        return jnp.dot(x, ws, preferred_element_type=f32) + dx

    # fc_pos + blocks[0]
    p = p_ref[...]                                                    # (BT, DIM)
    x0 = jnp.dot(p, wpos, preferred_element_type=f32) + bpos          # (BT, 2H)
    net = resblock(x0, 0)                                             # (BT, H)

    # local mean pool: pooled[t] = mean over {t' : idx(t') == idx(t)} of net[t']
    idx_row = idx_row_ref[...]                                        # (1, BT)
    idx_col = idx_col_ref[...]                                        # (BT, 1)
    member = idx_col == idx_row                                       # (BT, BT) bool
    counts_pt = jnp.sum(member.astype(f32), axis=1, keepdims=True)    # (BT, 1), >= 1
    inv_pt = 1.0 / counts_pt                                          # exact f32 divide
    member_bf = member.astype(bf16)                                   # 0/1 exact in bf16

    for i in range(1, N_BLOCKS):                                      # static unroll
        psum = jnp.dot(member_bf, net.astype(bf16),
                       preferred_element_type=f32)                    # (BT, H) cell sums
        pooled = psum * inv_pt                                        # f32 mean
        net = resblock(jnp.concatenate([net, pooled], axis=-1), i)

    # fc_c
    cfeat = jnp.dot(net, wc, preferred_element_type=f32) + bc         # (BT, C)

    # generate_grid_features: scatter-mean into the grid, lane-dense (C, B*V).
    # One-shot contraction kept in f32; per-cell scaling exact; empty cells -> 0.
    cell = jax.lax.broadcasted_iota(jnp.int32, (bt, bv), 1)
    onehot = (cell == idx_col).astype(f32)                            # (BT, B*V)
    counts_cell = jnp.sum(onehot, axis=0, keepdims=True)              # (1, B*V)
    sum_cv = jax.lax.dot_general(cfeat, onehot, (((0,), (0,)), ((), ())),
                                 preferred_element_type=f32)          # (C, B*V)
    mean_cv = sum_cv * (1.0 / jnp.maximum(counts_cell, 1.0))
    for b in range(nb):                                               # aligned 128-lane slices
        out_ref[b] = mean_cv[:, b * v:(b + 1) * v]


# ------------------------------ wrapper -------------------------------------
def pack_params(params):
    """Pack all weights/biases into one lane-dense (SLAB_ROWS, 128) f32 slab."""
    h = HIDDEN
    slab = jnp.zeros((SLAB_ROWS, SLAB_LANES), jnp.float32)
    slab = slab.at[0:3, 0:2 * h].set(params["wpos"])
    slab = slab.at[3, 0:2 * h].set(params["bpos"][0])
    slab = slab.at[4, 0:C_DIM].set(params["bc"][0])
    slab = slab.at[8:8 + h, 0:C_DIM].set(params["wc"])
    for i in range(N_BLOCKS):
        base = HDR_ROWS + BLK_ROWS * i
        slab = slab.at[base:base + 2 * h, 0:h].set(params["w0"][i])
        slab = slab.at[base:base + 2 * h, h:2 * h].set(params["ws"][i])
        slab = slab.at[base:base + h, 2 * h:3 * h].set(params["w1"][i])
        slab = slab.at[base + h, 2 * h:3 * h].set(params["b0"][i, 0])
        slab = slab.at[base + h + 1, 2 * h:3 * h].set(params["b1"][i, 0])
    return slab


def patch_local_pool_pointnet_latent(points, index, params):
    """Returns (fea['grid'], unet) exactly as the PyTorch module's forward."""
    bb, tt, _ = points.shape
    bt = bb * tt
    # index['grid'][index['grid'] >= reso**3 * 2] = 0, then offset per batch so a
    # single folded membership/one-hot never aliases cells across batches.
    idx = jnp.where(index >= V, 0, index).astype(jnp.int32)
    idx_off = idx + (jnp.arange(bb, dtype=jnp.int32) * V)[:, None]     # (B, T) in [0, B*V)
    idx_row = idx_off.reshape(1, bt)
    idx_col = idx_off.reshape(bt, 1)
    p_flat = points.reshape(bt, DIM)
    slab = pack_params(params)

    out = pl.pallas_call(
        encoder_kernel,
        out_shape=jax.ShapeDtypeStruct((bb, C_DIM, V), jnp.float32),
        grid_spec=pltpu.PrefetchScalarGridSpec(
            num_scalar_prefetch=0,
            grid=(1,),
            in_specs=[
                pl.BlockSpec((1, bt), lambda i: (0, 0)),                    # idx row
                pl.BlockSpec((bt, 1), lambda i: (0, 0)),                    # idx col
                pl.BlockSpec((bt, DIM), lambda i: (0, 0)),                  # points
                pl.BlockSpec((SLAB_ROWS, SLAB_LANES), lambda i: (0, 0)),    # packed weights
            ],
            out_specs=pl.BlockSpec((bb, C_DIM, V), lambda i: (0, 0, 0)),
        ),
        compiler_params=pltpu.CompilerParams(dimension_semantics=("arbitrary",)),
    )(idx_row, idx_col, p_flat, slab)

    # (B, C, V) is already the PyTorch flat layout (f * 2*reso^3 + grid_idx):
    # just reshape to (B, 2*c_dim, reso, reso, reso) — no transpose needed.
    grid = out.reshape(bb, 2 * C_DIM, RESO, RESO, RESO)
    return grid, None   # unet3d is None (unet3d=False)


# --------------------- deterministic parameter init -------------------------
def init_params(key):
    ks = jax.random.split(key, 11)

    def lin(k, fan_in, shape):
        # mimic nn.Linear default init U(-1/sqrt(fan_in), 1/sqrt(fan_in))
        bound = 1.0 / (fan_in ** 0.5)
        return jax.random.uniform(k, shape, jnp.float32, -bound, bound)

    return {
        "wpos": lin(ks[0], DIM, (DIM, 2 * HIDDEN)),
        "bpos": lin(ks[1], DIM, (1, 2 * HIDDEN)),
        "w0":   lin(ks[2], 2 * HIDDEN, (N_BLOCKS, 2 * HIDDEN, HIDDEN)),
        "b0":   lin(ks[3], 2 * HIDDEN, (N_BLOCKS, 1, HIDDEN)),
        "w1":   lin(ks[4], HIDDEN, (N_BLOCKS, HIDDEN, HIDDEN)),
        "b1":   lin(ks[5], HIDDEN, (N_BLOCKS, 1, HIDDEN)),
        "ws":   lin(ks[6], 2 * HIDDEN, (N_BLOCKS, 2 * HIDDEN, HIDDEN)),
        "wc":   lin(ks[7], HIDDEN, (HIDDEN, C_DIM)),
        "bc":   lin(ks[8], HIDDEN, (1, C_DIM)),
    }


# --------------------------- pure-JAX reference ------------------------------
def reference(points, index, params):
    hi = jax.lax.Precision.HIGHEST
    mm = functools.partial(jnp.matmul, precision=hi)
    idx = jnp.where(index >= V, 0, index).astype(jnp.int32)
    onehot = jax.nn.one_hot(idx, V, dtype=jnp.float32)                   # (B, T, V)
    counts = jnp.sum(onehot, axis=1)                                     # (B, V)
    inv = jnp.where(counts > 0, 1.0 / counts, 0.0)

    def resblock(x, i):
        h = jax.nn.relu(x)
        h = mm(h, params["w0"][i]) + params["b0"][i][0]
        h = jax.nn.relu(h)
        dx = mm(h, params["w1"][i]) + params["b1"][i][0]
        return mm(x, params["ws"][i]) + dx

    net = mm(points, params["wpos"]) + params["bpos"][0]
    net = resblock(net, 0)
    for i in range(1, N_BLOCKS):
        sums = jnp.einsum("btv,bth->bvh", onehot, net, precision=hi)
        mean = sums * inv[..., None]
        pooled = jnp.einsum("btv,bvh->bth", onehot, mean, precision=hi)
        net = resblock(jnp.concatenate([net, pooled], axis=-1), i)
    c = mm(net, params["wc"]) + params["bc"][0]
    sums_c = jnp.einsum("btv,btc->bvc", onehot, c, precision=hi)
    grid = (sums_c * inv[..., None]).transpose(0, 2, 1).reshape(
        points.shape[0], 2 * C_DIM, RESO, RESO, RESO)
    return grid


# --------------------------------- main --------------------------------------
if __name__ == "__main__":
    key = jax.random.PRNGKey(0)
    kp, ki, kw = jax.random.split(key, 3)

    points = jax.random.uniform(kp, (B, T, DIM), jnp.float32, -0.5, 0.5)
    # some indices exceed 2*reso^3 on purpose to exercise the clamp-to-0 path
    index = jax.random.randint(ki, (B, T), 0, V + 7, dtype=jnp.int32)
    params = init_params(kw)

    grid, unet = patch_local_pool_pointnet_latent(points, index, params)
    grid = jax.block_until_ready(grid)

    assert grid.shape == (B, 2 * C_DIM, RESO, RESO, RESO)
    assert unet is None

    ref = jax.block_until_ready(reference(points, index, params))
    # atol covers the bf16 MXU casts on the repeated pooling contractions
    # (reference is full f32 HIGHEST).
    np.testing.assert_allclose(np.asarray(grid), np.asarray(ref), rtol=1e-2, atol=2e-3)

    print("KERNEL_OK")
</pallas_src>

<mosaic_0001>
module attributes {stable_mosaic.version = 11 : i64} {
  func.func @encoder_kernel(%arg0: i32, %arg1: memref<1x128xi32, #tpu.memory_space<vmem>>, %arg2: memref<128x1xi32, #tpu.memory_space<vmem>>, %arg3: memref<128x3xf32, #tpu.memory_space<vmem>>, %arg4: memref<360x128xf32, #tpu.memory_space<vmem>>, %arg5: memref<2x32x128xf32, #tpu.memory_space<vmem>>) attributes {dimension_semantics = [#tpu.dimension_semantics<arbitrary>], iteration_bounds = array<i64: 1>, scalar_prefetch = 0 : i64, scratch_operands = 0 : i64, tpu.core_type = #tpu.core_type<tc>, window_params = [{pipeline_mode = #tpu.pipeline_mode<synchronous>, transform_indices = @transform_0, window_bounds = array<i64: 1, 128>}, {pipeline_mode = #tpu.pipeline_mode<synchronous>, transform_indices = @transform_1, window_bounds = array<i64: 128, 1>}, {pipeline_mode = #tpu.pipeline_mode<synchronous>, transform_indices = @transform_2, window_bounds = array<i64: 128, 3>}, {pipeline_mode = #tpu.pipeline_mode<synchronous>, transform_indices = @transform_3, window_bounds = array<i64: 360, 128>}, {pipeline_mode = #tpu.pipeline_mode<synchronous>, transform_indices = @transform_4, window_bounds = array<i64: 2, 32, 128>}]} {
    %c0 = arith.constant 0 : index
    %c0_0 = arith.constant 0 : index
    %0 = vector.load %arg4[%c0, %c0_0] : memref<360x128xf32, #tpu.memory_space<vmem>>, vector<8x128xf32>
    %1 = vector.extract_strided_slice %0 {offsets = [0, 0], sizes = [3, 64], strides = [1, 1]} : vector<8x128xf32> to vector<3x64xf32>
    %2 = vector.extract_strided_slice %0 {offsets = [3, 0], sizes = [1, 64], strides = [1, 1]} : vector<8x128xf32> to vector<1x64xf32>
    %3 = vector.extract_strided_slice %0 {offsets = [4, 0], sizes = [1, 32], strides = [1, 1]} : vector<8x128xf32> to vector<1x32xf32>
    %c8 = arith.constant 8 : index
    %c0_1 = arith.constant 0 : index
    %4 = vector.load %arg4[%c8, %c0_1] : memref<360x128xf32, #tpu.memory_space<vmem>>, vector<32x32xf32>
    %c0_2 = arith.constant 0 : index
    %c0_3 = arith.constant 0 : index
    %5 = vector.load %arg3[%c0_2, %c0_3] : memref<128x3xf32, #tpu.memory_space<vmem>>, vector<128x3xf32>
    %cst = arith.constant dense<0.000000e+00> : vector<128x64xf32>
    %6 = tpu.matmul %5, %1, %cst {dimension_numbers = #tpu.dot_dimension_numbers<[1], [0], [0], [1], [0, 0, 1, 1], [], []>} : vector<128x3xf32>, vector<3x64xf32>, vector<128x64xf32> -> vector<128x64xf32>
    %7 = vector.broadcast %2 : vector<1x64xf32> to vector<128x64xf32>
    %8 = arith.addf %6, %7 : vector<128x64xf32>
    %c40 = arith.constant 40 : index
    %c0_4 = arith.constant 0 : index
    %9 = vector.load %arg4[%c40, %c0_4] : memref<360x128xf32, #tpu.memory_space<vmem>>, vector<64x32xf32>
    %c40_5 = arith.constant 40 : index
    %c32 = arith.constant 32 : index
    %10 = vector.load %arg4[%c40_5, %c32] : memref<360x128xf32, #tpu.memory_space<vmem>>, vector<64x32xf32>
    %c40_6 = arith.constant 40 : index
    %c64 = arith.constant 64 : index
    %11 = vector.load %arg4[%c40_6, %c64] : memref<360x128xf32, #tpu.memory_space<vmem>>, vector<32x32xf32>
    %c72 = arith.constant 72 : index
    %c64_7 = arith.constant 64 : index
    %12 = vector.load %arg4[%c72, %c64_7] : memref<360x128xf32, #tpu.memory_space<vmem>>, vector<2x32xf32>
    %13 = vector.extract_strided_slice %12 {offsets = [0, 0], sizes = [1, 32], strides = [1, 1]} : vector<2x32xf32> to vector<1x32xf32>
    %14 = vector.extract_strided_slice %12 {offsets = [1, 0], sizes = [1, 32], strides = [1, 1]} : vector<2x32xf32> to vector<1x32xf32>
    %cst_8 = arith.constant 0.000000e+00 : f32
    %15 = vector.broadcast %cst_8 : f32 to vector<128x64xf32>
    %16 = arith.maximumf %8, %15 : vector<128x64xf32>
    %cst_9 = arith.constant dense<0.000000e+00> : vector<128x32xf32>
    %17 = tpu.matmul %16, %9, %cst_9 {dimension_numbers = #tpu.dot_dimension_numbers<[1], [0], [0], [1], [0, 0, 1, 1], [], []>} : vector<128x64xf32>, vector<64x32xf32>, vector<128x32xf32> -> vector<128x32xf32>
    %18 = vector.broadcast %13 : vector<1x32xf32> to vector<128x32xf32>
    %19 = arith.addf %17, %18 : vector<128x32xf32>
    %cst_10 = arith.constant 0.000000e+00 : f32
    %20 = vector.broadcast %cst_10 : f32 to vector<128x32xf32>
    %21 = arith.maximumf %19, %20 : vector<128x32xf32>
    %cst_11 = arith.constant dense<0.000000e+00> : vector<128x32xf32>
    %22 = tpu.matmul %21, %11, %cst_11 {dimension_numbers = #tpu.dot_dimension_numbers<[1], [0], [0], [1], [0, 0, 1, 1], [], []>} : vector<128x32xf32>, vector<32x32xf32>, vector<128x32xf32> -> vector<128x32xf32>
    %23 = vector.broadcast %14 : vector<1x32xf32> to vector<128x32xf32>
    %24 = arith.addf %22, %23 : vector<128x32xf32>
    %cst_12 = arith.constant dense<0.000000e+00> : vector<128x32xf32>
    %25 = tpu.matmul %8, %10, %cst_12 {dimension_numbers = #tpu.dot_dimension_numbers<[1], [0], [0], [1], [0, 0, 1, 1], [], []>} : vector<128x64xf32>, vector<64x32xf32>, vector<128x32xf32> -> vector<128x32xf32>
    %26 = arith.addf %25, %24 : vector<128x32xf32>
    %c0_13 = arith.constant 0 : index
    %c0_14 = arith.constant 0 : index
    %27 = vector.load %arg1[%c0_13, %c0_14] : memref<1x128xi32, #tpu.memory_space<vmem>>, vector<1x128xi32>
    %c0_15 = arith.constant 0 : index
    %c0_16 = arith.constant 0 : index
    %28 = vector.load %arg2[%c0_15, %c0_16] : memref<128x1xi32, #tpu.memory_space<vmem>>, vector<128x1xi32>
    %29 = vector.broadcast %28 : vector<128x1xi32> to vector<128x128xi32>
    %30 = vector.broadcast %27 : vector<1x128xi32> to vector<128x128xi32>
    %31 = arith.cmpi eq, %29, %30 : vector<128x128xi32>
    %32 = arith.extui %31 : vector<128x128xi1> to vector<128x128xi32>
    %33 = arith.sitofp %32 : vector<128x128xi32> to vector<128x128xf32>
    %cst_17 = arith.constant dense<0.000000e+00> : vector<128xf32>
    %34 = vector.multi_reduction <add>, %33, %cst_17 [1] : vector<128x128xf32> to vector<128xf32>
    %35 = vector.shape_cast %34 : vector<128xf32> to vector<128x1xf32>
    %cst_18 = arith.constant 1.000000e+00 : f32
    %36 = vector.broadcast %cst_18 : f32 to vector<128x1xf32>
    %37 = arith.divf %36, %35 : vector<128x1xf32>
    %38 = arith.extui %31 : vector<128x128xi1> to vector<128x128xi32>
    %39 = arith.sitofp %38 : vector<128x128xi32> to vector<128x128xf32>
    %40 = arith.truncf %39 : vector<128x128xf32> to vector<128x128xbf16>
    %41 = arith.truncf %26 : vector<128x32xf32> to vector<128x32xbf16>
    %cst_19 = arith.constant dense<0.000000e+00> : vector<128x32xf32>
    %42 = tpu.matmul %40, %41, %cst_19 {dimension_numbers = #tpu.dot_dimension_numbers<[1], [0], [0], [1], [0, 0, 1, 1], [], []>} : vector<128x128xbf16>, vector<128x32xbf16>, vector<128x32xf32> -> vector<128x32xf32>
    %43 = vector.broadcast %37 : vector<128x1xf32> to vector<128x32xf32>
    %44 = arith.mulf %42, %43 : vector<128x32xf32>
    %45 = tpu.concatenate %26, %44 in 1 : vector<128x32xf32>, vector<128x32xf32> -> vector<128x64xf32>
    %c104 = arith.constant 104 : index
    %c0_20 = arith.constant 0 : index
    %46 = vector.load %arg4[%c104, %c0_20] : memref<360x128xf32, #tpu.memory_space<vmem>>, vector<64x32xf32>
    %c104_21 = arith.constant 104 : index
    %c32_22 = arith.constant 32 : index
    %47 = vector.load %arg4[%c104_21, %c32_22] : memref<360x128xf32, #tpu.memory_space<vmem>>, vector<64x32xf32>
    %c104_23 = arith.constant 104 : index
    %c64_24 = arith.constant 64 : index
    %48 = vector.load %arg4[%c104_23, %c64_24] : memref<360x128xf32, #tpu.memory_space<vmem>>, vector<32x32xf32>
    %c136 = arith.constant 136 : index
    %c64_25 = arith.constant 64 : index
    %49 = vector.load %arg4[%c136, %c64_25] : memref<360x128xf32, #tpu.memory_space<vmem>>, vector<2x32xf32>
    %50 = vector.extract_strided_slice %49 {offsets = [0, 0], sizes = [1, 32], strides = [1, 1]} : vector<2x32xf32> to vector<1x32xf32>
    %51 = vector.extract_strided_slice %49 {offsets = [1, 0], sizes = [1, 32], strides = [1, 1]} : vector<2x32xf32> to vector<1x32xf32>
    %cst_26 = arith.constant 0.000000e+00 : f32
    %52 = vector.broadcast %cst_26 : f32 to vector<128x64xf32>
    %53 = arith.maximumf %45, %52 : vector<128x64xf32>
    %cst_27 = arith.constant dense<0.000000e+00> : vector<128x32xf32>
    %54 = tpu.matmul %53, %46, %cst_27 {dimension_numbers = #tpu.dot_dimension_numbers<[1], [0], [0], [1], [0, 0, 1, 1], [], []>} : vector<128x64xf32>, vector<64x32xf32>, vector<128x32xf32> -> vector<128x32xf32>
    %55 = vector.broadcast %50 : vector<1x32xf32> to vector<128x32xf32>
    %56 = arith.addf %54, %55 : vector<128x32xf32>
    %cst_28 = arith.constant 0.000000e+00 : f32
    %57 = vector.broadcast %cst_28 : f32 to vector<128x32xf32>
    %58 = arith.maximumf %56, %57 : vector<128x32xf32>
    %cst_29 = arith.constant dense<0.000000e+00> : vector<128x32xf32>
    %59 = tpu.matmul %58, %48, %cst_29 {dimension_numbers = #tpu.dot_dimension_numbers<[1], [0], [0], [1], [0, 0, 1, 1], [], []>} : vector<128x32xf32>, vector<32x32xf32>, vector<128x32xf32> -> vector<128x32xf32>
    %60 = vector.broadcast %51 : vector<1x32xf32> to vector<128x32xf32>
    %61 = arith.addf %59, %60 : vector<128x32xf32>
    %cst_30 = arith.constant dense<0.000000e+00> : vector<128x32xf32>
    %62 = tpu.matmul %45, %47, %cst_30 {dimension_numbers = #tpu.dot_dimension_numbers<[1], [0], [0], [1], [0, 0, 1, 1], [], []>} : vector<128x64xf32>, vector<64x32xf32>, vector<128x32xf32> -> vector<128x32xf32>
    %63 = arith.addf %62, %61 : vector<128x32xf32>
    %64 = arith.truncf %63 : vector<128x32xf32> to vector<128x32xbf16>
    %cst_31 = arith.constant dense<0.000000e+00> : vector<128x32xf32>
    %65 = tpu.matmul %40, %64, %cst_31 {dimension_numbers = #tpu.dot_dimension_numbers<[1], [0], [0], [1], [0, 0, 1, 1], [], []>} : vector<128x128xbf16>, vector<128x32xbf16>, vector<128x32xf32> -> vector<128x32xf32>
    %66 = vector.broadcast %37 : vector<128x1xf32> to vector<128x32xf32>
    %67 = arith.mulf %65, %66 : vector<128x32xf32>
    %68 = tpu.concatenate %63, %67 in 1 : vector<128x32xf32>, vector<128x32xf32> -> vector<128x64xf32>
    %c168 = arith.constant 168 : index
    %c0_32 = arith.constant 0 : index
    %69 = vector.load %arg4[%c168, %c0_32] : memref<360x128xf32, #tpu.memory_space<vmem>>, vector<64x32xf32>
    %c168_33 = arith.constant 168 : index
    %c32_34 = arith.constant 32 : index
    %70 = vector.load %arg4[%c168_33, %c32_34] : memref<360x128xf32, #tpu.memory_space<vmem>>, vector<64x32xf32>
    %c168_35 = arith.constant 168 : index
    %c64_36 = arith.constant 64 : index
    %71 = vector.load %arg4[%c168_35, %c64_36] : memref<360x128xf32, #tpu.memory_space<vmem>>, vector<32x32xf32>
    %c200 = arith.constant 200 : index
    %c64_37 = arith.constant 64 : index
    %72 = vector.load %arg4[%c200, %c64_37] : memref<360x128xf32, #tpu.memory_space<vmem>>, vector<2x32xf32>
    %73 = vector.extract_strided_slice %72 {offsets = [0, 0], sizes = [1, 32], strides = [1, 1]} : vector<2x32xf32> to vector<1x32xf32>
    %74 = vector.extract_strided_slice %72 {offsets = [1, 0], sizes = [1, 32], strides = [1, 1]} : vector<2x32xf32> to vector<1x32xf32>
    %cst_38 = arith.constant 0.000000e+00 : f32
    %75 = vector.broadcast %cst_38 : f32 to vector<128x64xf32>
    %76 = arith.maximumf %68, %75 : vector<128x64xf32>
    %cst_39 = arith.constant dense<0.000000e+00> : vector<128x32xf32>
    %77 = tpu.matmul %76, %69, %cst_39 {dimension_numbers = #tpu.dot_dimension_numbers<[1], [0], [0], [1], [0, 0, 1, 1], [], []>} : vector<128x64xf32>, vector<64x32xf32>, vector<128x32xf32> -> vector<128x32xf32>
    %78 = vector.broadcast %73 : vector<1x32xf32> to vector<128x32xf32>
    %79 = arith.addf %77, %78 : vector<128x32xf32>
    %cst_40 = arith.constant 0.000000e+00 : f32
    %80 = vector.broadcast %cst_40 : f32 to vector<128x32xf32>
    %81 = arith.maximumf %79, %80 : vector<128x32xf32>
    %cst_41 = arith.constant dense<0.000000e+00> : vector<128x32xf32>
    %82 = tpu.matmul %81, %71, %cst_41 {dimension_numbers = #tpu.dot_dimension_numbers<[1], [0], [0], [1], [0, 0, 1, 1], [], []>} : vector<128x32xf32>, vector<32x32xf32>, vector<128x32xf32> -> vector<128x32xf32>
    %83 = vector.broadcast %74 : vector<1x32xf32> to vector<128x32xf32>
    %84 = arith.addf %82, %83 : vector<128x32xf32>
    %cst_42 = arith.constant dense<0.000000e+00> : vector<128x32xf32>
    %85 = tpu.matmul %68, %70, %cst_42 {dimension_numbers = #tpu.dot_dimension_numbers<[1], [0], [0], [1], [0, 0, 1, 1], [], []>} : vector<128x64xf32>, vector<64x32xf32>, vector<128x32xf32> -> vector<128x32xf32>
    %86 = arith.addf %85, %84 : vector<128x32xf32>
    %87 = arith.truncf %86 : vector<128x32xf32> to vector<128x32xbf16>
    %cst_43 = arith.constant dense<0.000000e+00> : vector<128x32xf32>
    %88 = tpu.matmul %40, %87, %cst_43 {dimension_numbers = #tpu.dot_dimension_numbers<[1], [0], [0], [1], [0, 0, 1, 1], [], []>} : vector<128x128xbf16>, vector<128x32xbf16>, vector<128x32xf32> -> vector<128x32xf32>
    %89 = vector.broadcast %37 : vector<128x1xf32> to vector<128x32xf32>
    %90 = arith.mulf %88, %89 : vector<128x32xf32>
    %91 = tpu.concatenate %86, %90 in 1 : vector<128x32xf32>, vector<128x32xf32> -> vector<128x64xf32>
    %c232 = arith.constant 232 : index
    %c0_44 = arith.constant 0 : index
    %92 = vector.load %arg4[%c232, %c0_44] : memref<360x128xf32, #tpu.memory_space<vmem>>, vector<64x32xf32>
    %c232_45 = arith.constant 232 : index
    %c32_46 = arith.constant 32 : index
    %93 = vector.load %arg4[%c232_45, %c32_46] : memref<360x128xf32, #tpu.memory_space<vmem>>, vector<64x32xf32>
    %c232_47 = arith.constant 232 : index
    %c64_48 = arith.constant 64 : index
    %94 = vector.load %arg4[%c232_47, %c64_48] : memref<360x128xf32, #tpu.memory_space<vmem>>, vector<32x32xf32>
    %c264 = arith.constant 264 : index
    %c64_49 = arith.constant 64 : index
    %95 = vector.load %arg4[%c264, %c64_49] : memref<360x128xf32, #tpu.memory_space<vmem>>, vector<2x32xf32>
    %96 = vector.extract_strided_slice %95 {offsets = [0, 0], sizes = [1, 32], strides = [1, 1]} : vector<2x32xf32> to vector<1x32xf32>
    %97 = vector.extract_strided_slice %95 {offsets = [1, 0], sizes = [1, 32], strides = [1, 1]} : vector<2x32xf32> to vector<1x32xf32>
    %cst_50 = arith.constant 0.000000e+00 : f32
    %98 = vector.broadcast %cst_50 : f32 to vector<128x64xf32>
    %99 = arith.maximumf %91, %98 : vector<128x64xf32>
    %cst_51 = arith.constant dense<0.000000e+00> : vector<128x32xf32>
    %100 = tpu.matmul %99, %92, %cst_51 {dimension_numbers = #tpu.dot_dimension_numbers<[1], [0], [0], [1], [0, 0, 1, 1], [], []>} : vector<128x64xf32>, vector<64x32xf32>, vector<128x32xf32> -> vector<128x32xf32>
    %101 = vector.broadcast %96 : vector<1x32xf32> to vector<128x32xf32>
    %102 = arith.addf %100, %101 : vector<128x32xf32>
    %cst_52 = arith.constant 0.000000e+00 : f32
    %103 = vector.broadcast %cst_52 : f32 to vector<128x32xf32>
    %104 = arith.maximumf %102, %103 : vector<128x32xf32>
    %cst_53 = arith.constant dense<0.000000e+00> : vector<128x32xf32>
    %105 = tpu.matmul %104, %94, %cst_53 {dimension_numbers = #tpu.dot_dimension_numbers<[1], [0], [0], [1], [0, 0, 1, 1], [], []>} : vector<128x32xf32>, vector<32x32xf32>, vector<128x32xf32> -> vector<128x32xf32>
    %106 = vector.broadcast %97 : vector<1x32xf32> to vector<128x32xf32>
    %107 = arith.addf %105, %106 : vector<128x32xf32>
    %cst_54 = arith.constant dense<0.000000e+00> : vector<128x32xf32>
    %108 = tpu.matmul %91, %93, %cst_54 {dimension_numbers = #tpu.dot_dimension_numbers<[1], [0], [0], [1], [0, 0, 1, 1], [], []>} : vector<128x64xf32>, vector<64x32xf32>, vector<128x32xf32> -> vector<128x32xf32>
    %109 = arith.addf %108, %107 : vector<128x32xf32>
    %110 = arith.truncf %109 : vector<128x32xf32> to vector<128x32xbf16>
    %cst_55 = arith.constant dense<0.000000e+00> : vector<128x32xf32>
    %111 = tpu.matmul %40, %110, %cst_55 {dimension_numbers = #tpu.dot_dimension_numbers<[1], [0], [0], [1], [0, 0, 1, 1], [], []>} : vector<128x128xbf16>, vector<128x32xbf16>, vector<128x32xf32> -> vector<128x32xf32>
    %112 = vector.broadcast %37 : vector<128x1xf32> to vector<128x32xf32>
    %113 = arith.mulf %111, %112 : vector<128x32xf32>
    %114 = tpu.concatenate %109, %113 in 1 : vector<128x32xf32>, vector<128x32xf32> -> vector<128x64xf32>
    %c296 = arith.constant 296 : index
    %c0_56 = arith.constant 0 : index
    %115 = vector.load %arg4[%c296, %c0_56] : memref<360x128xf32, #tpu.memory_space<vmem>>, vector<64x32xf32>
    %c296_57 = arith.constant 296 : index
    %c32_58 = arith.constant 32 : index
    %116 = vector.load %arg4[%c296_57, %c32_58] : memref<360x128xf32, #tpu.memory_space<vmem>>, vector<64x32xf32>
    %c296_59 = arith.constant 296 : index
    %c64_60 = arith.constant 64 : index
    %117 = vector.load %arg4[%c296_59, %c64_60] : memref<360x128xf32, #tpu.memory_space<vmem>>, vector<32x32xf32>
    %c328 = arith.constant 328 : index
    %c64_61 = arith.constant 64 : index
    %118 = vector.load %arg4[%c328, %c64_61] : memref<360x128xf32, #tpu.memory_space<vmem>>, vector<2x32xf32>
    %119 = vector.extract_strided_slice %118 {offsets = [0, 0], sizes = [1, 32], strides = [1, 1]} : vector<2x32xf32> to vector<1x32xf32>
    %120 = vector.extract_strided_slice %118 {offsets = [1, 0], sizes = [1, 32], strides = [1, 1]} : vector<2x32xf32> to vector<1x32xf32>
    %cst_62 = arith.constant 0.000000e+00 : f32
    %121 = vector.broadcast %cst_62 : f32 to vector<128x64xf32>
    %122 = arith.maximumf %114, %121 : vector<128x64xf32>
    %cst_63 = arith.constant dense<0.000000e+00> : vector<128x32xf32>
    %123 = tpu.matmul %122, %115, %cst_63 {dimension_numbers = #tpu.dot_dimension_numbers<[1], [0], [0], [1], [0, 0, 1, 1], [], []>} : vector<128x64xf32>, vector<64x32xf32>, vector<128x32xf32> -> vector<128x32xf32>
    %124 = vector.broadcast %119 : vector<1x32xf32> to vector<128x32xf32>
    %125 = arith.addf %123, %124 : vector<128x32xf32>
    %cst_64 = arith.constant 0.000000e+00 : f32
    %126 = vector.broadcast %cst_64 : f32 to vector<128x32xf32>
    %127 = arith.maximumf %125, %126 : vector<128x32xf32>
    %cst_65 = arith.constant dense<0.000000e+00> : vector<128x32xf32>
    %128 = tpu.matmul %127, %117, %cst_65 {dimension_numbers = #tpu.dot_dimension_numbers<[1], [0], [0], [1], [0, 0, 1, 1], [], []>} : vector<128x32xf32>, vector<32x32xf32>, vector<128x32xf32> -> vector<128x32xf32>
    %129 = vector.broadcast %120 : vector<1x32xf32> to vector<128x32xf32>
    %130 = arith.addf %128, %129 : vector<128x32xf32>
    %cst_66 = arith.constant dense<0.000000e+00> : vector<128x32xf32>
    %131 = tpu.matmul %114, %116, %cst_66 {dimension_numbers = #tpu.dot_dimension_numbers<[1], [0], [0], [1], [0, 0, 1, 1], [], []>} : vector<128x64xf32>, vector<64x32xf32>, vector<128x32xf32> -> vector<128x32xf32>
    %132 = arith.addf %131, %130 : vector<128x32xf32>
    %cst_67 = arith.constant dense<0.000000e+00> : vector<128x32xf32>
    %133 = tpu.matmul %132, %4, %cst_67 {dimension_numbers = #tpu.dot_dimension_numbers<[1], [0], [0], [1], [0, 0, 1, 1], [], []>} : vector<128x32xf32>, vector<32x32xf32>, vector<128x32xf32> -> vector<128x32xf32>
    %134 = vector.broadcast %3 : vector<1x32xf32> to vector<128x32xf32>
    %135 = arith.addf %133, %134 : vector<128x32xf32>
    %136 = tpu.iota {dimensions = array<i32: 1>} : vector<128x256xi32>
    %137 = vector.broadcast %28 : vector<128x1xi32> to vector<128x256xi32>
    %138 = arith.cmpi eq, %136, %137 : vector<128x256xi32>
    %139 = arith.extui %138 : vector<128x256xi1> to vector<128x256xi32>
    %140 = arith.sitofp %139 : vector<128x256xi32> to vector<128x256xf32>
    %cst_68 = arith.constant dense<0.000000e+00> : vector<256xf32>
    %141 = vector.multi_reduction <add>, %140, %cst_68 [0] : vector<128x256xf32> to vector<256xf32>
    %142 = vector.shape_cast %141 : vector<256xf32> to vector<1x256xf32>
    %cst_69 = arith.constant dense<0.000000e+00> : vector<32x256xf32>
    %143 = tpu.matmul %135, %140, %cst_69 {dimension_numbers = #tpu.dot_dimension_numbers<[0], [0], [1], [1], [0, 1, 1, 1], [], []>} : vector<128x32xf32>, vector<128x256xf32>, vector<32x256xf32> -> vector<32x256xf32>
    %cst_70 = arith.constant 1.000000e+00 : f32
    %144 = vector.broadcast %cst_70 : f32 to vector<1x256xf32>
    %145 = arith.maximumf %142, %144 : vector<1x256xf32>
    %cst_71 = arith.constant 1.000000e+00 : f32
    %146 = vector.broadcast %cst_71 : f32 to vector<1x256xf32>
    %147 = arith.divf %146, %145 : vector<1x256xf32>
    %148 = vector.broadcast %147 : vector<1x256xf32> to vector<32x256xf32>
    %149 = arith.mulf %143, %148 : vector<32x256xf32>
    %150 = vector.extract_strided_slice %149 {offsets = [0, 0], sizes = [32, 128], strides = [1, 1]} : vector<32x256xf32> to vector<32x128xf32>
    %c0_72 = arith.constant 0 : index
    %c0_73 = arith.constant 0 : index
    %c0_74 = arith.constant 0 : index
    %151 = vector.load %arg5[%c0_72, %c0_73, %c0_74] : memref<2x32x128xf32, #tpu.memory_space<vmem>>, vector<1x32x128xf32>
    %152 = vector.shape_cast %151 : vector<1x32x128xf32> to vector<32x128xf32>
    %153 = vector.shape_cast %150 : vector<32x128xf32> to vector<1x32x128xf32>
    tpu.vector_store %arg5[%c0_72, %c0_73, %c0_74], %153 {strides = array<i32>} : memref<2x32x128xf32, #tpu.memory_space<vmem>>, vector<1x32x128xf32>,
    %154 = vector.extract_strided_slice %149 {offsets = [0, 128], sizes = [32, 128], strides = [1, 1]} : vector<32x256xf32> to vector<32x128xf32>
    %c1 = arith.constant 1 : index
    %c0_75 = arith.constant 0 : index
    %c0_76 = arith.constant 0 : index
    %155 = vector.load %arg5[%c1, %c0_75, %c0_76] : memref<2x32x128xf32, #tpu.memory_space<vmem>>, vector<1x32x128xf32>
    %156 = vector.shape_cast %155 : vector<1x32x128xf32> to vector<32x128xf32>
    %157 = vector.shape_cast %154 : vector<32x128xf32> to vector<1x32x128xf32>
    tpu.vector_store %arg5[%c1, %c0_75, %c0_76], %157 {strides = array<i32>} : memref<2x32x128xf32, #tpu.memory_space<vmem>>, vector<1x32x128xf32>,
    return
  }
  func.func @transform_0(%arg0: i32) -> (i32, i32) {
    %c0_i32 = arith.constant 0 : i32
    %c0_i32_0 = arith.constant 0 : i32
    %c0_i32_1 = arith.constant 0 : i32
    return %c0_i32, %c0_i32_0 : i32, i32
  }
  func.func @transform_1(%arg0: i32) -> (i32, i32) {
    %c0_i32 = arith.constant 0 : i32
    %c0_i32_0 = arith.constant 0 : i32
    %c0_i32_1 = arith.constant 0 : i32
    return %c0_i32, %c0_i32_0 : i32, i32
  }
  func.func @transform_2(%arg0: i32) -> (i32, i32) {
    %c0_i32 = arith.constant 0 : i32
    %c0_i32_0 = arith.constant 0 : i32
    %c0_i32_1 = arith.constant 0 : i32
    return %c0_i32, %c0_i32_0 : i32, i32
  }
  func.func @transform_3(%arg0: i32) -> (i32, i32) {
    %c0_i32 = arith.constant 0 : i32
    %c0_i32_0 = arith.constant 0 : i32
    %c0_i32_1 = arith.constant 0 : i32
    return %c0_i32, %c0_i32_0 : i32, i32
  }
  func.func @transform_4(%arg0: i32) -> (i32, i32, i32) {
    %c0_i32 = arith.constant 0 : i32
    %c0_i32_0 = arith.constant 0 : i32
    %c0_i32_1 = arith.constant 0 : i32
    %c0_i32_2 = arith.constant 0 : i32
    return %c0_i32, %c0_i32_0, %c0_i32_1 : i32, i32, i32
  }
}

</mosaic_0001>

<bundles_post_ra>
// kernel: tpu_custom_call.1
= control target key start
LH: loop header
LB: loop body
LE: loop exit
PB: predicated region body
PF: predicated region fallthrough
CT: control target
= control target key end

     0   :  { %9 = vsyncpa [#allocation3], 0  ;;  %s9612_s0 = inlined_call_operand.vmem [shape: s32[1,128], index: 0, kind: input, shape index: {}]   ;;  %s9613_s1 = inlined_call_operand.vmem [shape: s32[128,1], index: 1, kind: input, shape index: {}]   ;;  %s9614_s2 = inlined_call_operand.vmem [shape: f32[128,3], index: 2, kind: input, shape index: {}]   ;;  %s9615_s3 = inlined_call_operand.hbm [shape: f32[360,128], index: 3, kind: input, shape index: {}]   ;;  %s9616_s4 = inlined_call_operand.hbm [shape: f32[2,32,128], index: 4, kind: output, shape index: {}]  }
   0x1   :  { %10 = vsyncpa [#allocation4], 0  ;;  %s7410_s15 = smov [#allocation2]   ;;  %s7362_s19 = scalar_lea.hbm %s9615_s3, 5760 }
   0x2   :  { %s22_s16 = sshll.u32 %s7410_s15, 4  ;;  %p7363_p0 = scmp.ne.s32.totalorder %s9615_s3, %s7362_s19  ;;  %s23_s16 = int_to_ptr.vmem [resolvable:$true] %s22_s16 }
   0x3   :  { %p7366_p1 = scmp.lt.u32.totalorder %s7362_s19, %s9615_s3 }
   0x5   :  { %p7368_p2 = pnand %p7366_p1, %p7363_p0 }
   0x7   :  { %7371 = shalt.err (!%p7368_p2)
}
   0x8   :  { %s7372_s24 = scalar_lea.vmem %s23_s16, 5760  ;;  %p7377_p4 = scmp.lt.s32.totalorder %s23_s16, %s23_s16 }
   0x9   :  { %p7373_p3 = scmp.ne.s32.totalorder %s23_s16, %s7372_s24  ;;  %p7378_p5 = scmp.lt.s32.totalorder %s7372_s24, %s7372_s24 }
   0xb   :  { %p7379_p6 = por %p7378_p5, %p7377_p4 }
   0xd   :  { %p7380_p7 = pnand %p7379_p6, %p7373_p3 }
   0xf   :  { %7383 = shalt.err (!%p7380_p7)
}
  0x10   :  { %s7411_s25 = smov 128   ;;  %s7412_s26 = smov 8  }
  0x11   :  { %28 = dma.hbm_to_vmem [thread:$0]  %s9615_s3, 5760, %s23_s16, [#allocation3], %s7411_s25, %s7411_s25, %s7412_s26  }
  0x12   :  { %7406 = dma.done.wait [#allocation3], 5760  }
  0x13   :  { %7407 = vsyncadd [#allocation3], 4294961536  ;;  %vm107_vm0 = vcmask 1042432   ;;  %vm58_vm1 = vcmask 23552   ;;  %v7460_v0 = vld [vmem:[#allocation2] sm:$0xff]  ;;  %v39_v2 = vld [vmem:[%s9614_s2 + $0x8] sm:$0xff]  ;;  %v54_v29 = vlaneseq }
  0x14   :  { %v38_v1 = vld [vmem:[%s9614_s2] sm:$0xff]  ;;  %6017 = vmatprep.subr.msk.mxu0 %vm107_vm0, %v7460_v0  ;;  %v40_v3 = vld [vmem:[%s9614_s2 + $0x10] sm:$0xff]  ;;  %v41_v4 = vld [vmem:[%s9614_s2 + $0x18] sm:$0xff]  ;;  %s7413_s9 = smov 64   ;;  %vm289_vm2 = vcmask 523264   ;;  %vm523_vm3 = vcmask 261120  }
  0x15   :  { %6019 = vmatprep.mubr.msk.f32.mxu0 %vm58_vm1, %v38_v1  ;;  %6018 = vmatpush3.msk.msra.mxu0 %vm107_vm0, %v7460_v0  ;;  %v42_v5 = vld [vmem:[%s9614_s2 + $0x20] sm:$0xff]  ;;  %v256_v6 = vld [vmem:[#allocation2 + $0x28] sm:$0xff]  ;;  %v257_v7 = vld [vmem:[#allocation2 + $0x30] sm:$0xff]  ;;  %v7529_v30 = vshrl.u32 %v54_v29, 7 }
  0x16   :  { %6020 = vmatmul.mubr.msk.f32.vlgmr.msra.gmra.mrb[0].mxu0 %vm58_vm1, %v39_v2  ;;  %v258_v8 = vld [vmem:[#allocation2 + $0x38] sm:$0xff]  ;;  %v259_v9 = vld [vmem:[#allocation2 + $0x40] sm:$0xff]  ;;  %v6763_v10 = vpack.c.bf16 %v257_v7, %v256_v6  ;;  %v43_v12 = vld [vmem:[%s9614_s2 + $0x28] sm:$0xff]  ;;  %v7173_v31 = vpack.i.bf16 %v257_v7, %v256_v6 }
  0x17   :  { %6022 = vmatprep.mubr.msk.f32.mxu0 %vm58_vm1, %v40_v3  ;;  %v6767_v11 = vpack.c.bf16 %v259_v9, %v258_v8  ;;  %v260_v13 = vld [vmem:[#allocation2 + $0x48] sm:$0xff]  ;;  %v261_v14 = vld [vmem:[#allocation2 + $0x50] sm:$0xff]  ;;  %v45_v17 = vld [vmem:[%s9614_s2 + $0x38] sm:$0xff]  ;;  %9692 = vst [vmem:[#allocation8_spill] sm:$0xff] %v7529_v30  ;;  %v7532_v33 = vsub.s32 0, %v7529_v30  ;;  %v7178_v34 = vpack.i.bf16 %v259_v9, %v258_v8  ;;  %v7539_v36 = vsub.s32 1, %v7529_v30 }
  0x18   :  { %v44_v15 = vld [vmem:[%s9614_s2 + $0x30] sm:$0xff]  ;;  %6764 = vmatprep.subr.bf16.mxu1 %v6763_v10  ;;  %v6771_v16 = vpack.c.bf16 %v261_v14, %v260_v13  ;;  %v46_v18 = vld [vmem:[%s9614_s2 + $0x40] sm:$0xff]  ;;  %v47_v19 = vld [vmem:[%s9614_s2 + $0x48] sm:$0xff]  ;;  %7174 = vrot.lane.b32.xlu0 %v7173_v31, %s7413_s9  ;;  %v7193_v37 = vpack.i.bf16 %v261_v14, %v260_v13  ;;  %v56_v40 = vsub.s32 3, %v7529_v30 }
  0x19   :  { %6766 = vmatpush3.bf16.msra.mxu1 %v6763_v10  ;;  %v48_v20 = vld [vmem:[%s9614_s2 + $0x50] sm:$0xff]  ;;  %v49_v21 = vld [vmem:[%s9614_s2 + $0x58] sm:$0xff]  ;;  %v50_v22 = vld [vmem:[%s9614_s2 + $0x60] sm:$0xff] }
  0x1a   :  { %6023 = vmatmul.mubr.msk.f32.gmra.mrb[2].mxu0 %vm58_vm1, %v41_v4  ;;  %6768 = vmatprep.subr.bf16.mxu1 %v6767_v11  ;;  %v51_v23 = vld [vmem:[%s9614_s2 + $0x68] sm:$0xff]  ;;  %v52_v24 = vld [vmem:[%s9614_s2 + $0x70] sm:$0xff]  ;;  %v53_v25 = vld [vmem:[%s9614_s2 + $0x78] sm:$0xff]  ;;  %s7414_s2 = smov 96   ;;  %v7549_v41 = vrot.slane %v7460_v0, %v56_v40 }
  0x1b   :  { %6025 = vmatprep.mubr.msk.f32.mxu0 %vm58_vm1, %v42_v5  ;;  %v262_v26 = vld [vmem:[#allocation2 + $0x58] sm:$0xff]  ;;  %v263_v27 = vld [vmem:[#allocation2 + $0x60] sm:$0xff]  ;;  %v264_v32 = vld [vmem:[#allocation2 + $0x48] sm:$0x3] }
  0x1c   :  { %v6775_v28 = vpack.c.bf16 %v263_v27, %v262_v26  ;;  %v284_v35 = vrot.slane %v264_v32, %v7532_v33  ;;  %7179 = vrot.lane.b32.xlu0 %v7178_v34, %s7413_s9  ;;  %v7198_v38 = vpack.i.bf16 %v263_v27, %v262_v26  ;;  %v502_v39 = vrot.slane %v264_v32, %v7539_v36 }
  0x1d   :  { %6770 = vmatpush3.bf16.msra.mxu1 %v6767_v11 }
  0x1e   :  { %6026 = vmatmul.mubr.msk.f32.gmra.mrb[4].mxu0 %vm58_vm1, %v43_v12  ;;  %6772 = vmatprep.subr.bf16.mxu1 %v6771_v16 }
  0x1f   :  { %6028 = vmatprep.mubr.msk.f32.mxu0 %vm58_vm1, %v44_v15  ;;  %286 = vrot.lane.b32.xlu1 %v284_v35, %s7413_s9 }
  0x20   :  { %7189 = vrot.lane.b32.xlu0 %v7178_v34, %s7414_s2 }
  0x21   :  { %6774 = vmatpush3.bf16.msra.mxu1 %v6771_v16 }
  0x22   :  { %6029 = vmatmul.mubr.msk.f32.gmra.mrb[6].mxu0 %vm58_vm1, %v45_v17  ;;  %6776 = vmatprep.subr.bf16.mxu1 %v6775_v28 }
  0x23   :  { %6031 = vmatprep.mubr.msk.f32.mxu0 %vm58_vm1, %v46_v18  ;;  %7184 = vrot.lane.b32.xlu1 %v7173_v31, %s7414_s2 }
  0x24   :  { %7199 = vrot.lane.b32.xlu0 %v7198_v38, %s7414_s2 }
  0x25   :  { %6778 = vmatpush3.bf16.msra.mxu1 %v6775_v28 }
  0x26   :  { %6032 = vmatmul.mubr.msk.f32.gmra.mrb[8].mxu0 %vm58_vm1, %v47_v19 }
  0x27   :  { %6034 = vmatprep.mubr.msk.f32.mxu0 %vm58_vm1, %v48_v20  ;;  %7194 = vrot.lane.b32.xlu1 %v7193_v37, %s7414_s2 }
  0x2a   :  { %6035 = vmatmul.mubr.msk.f32.gmra.mrb[10].mxu0 %vm58_vm1, %v49_v21 }
  0x2b   :  { %6037 = vmatprep.mubr.msk.f32.mxu0 %vm58_vm1, %v50_v22  ;;  %520 = vrot.lane.b32.xlu1 %v502_v39, %s7413_s9 }
  0x2e   :  { %6038 = vmatmul.mubr.msk.f32.gmra.mrb[12].mxu0 %vm58_vm1, %v51_v23 }
  0x2f   :  { %6040 = vmatprep.mubr.msk.f32.mxu0 %vm58_vm1, %v52_v24 }
  0x32   :  { %6041 = vmatmul.mubr.msk.f32.gmra.mrb[14].mxu0 %vm58_vm1, %v53_v25 }
  0x8a   :  { %v7175_v12 = vpop.permute.xlu0 %7174 }
  0x8b   :  { %v7177_v15 = vunpack.i.h.bf16 %v7175_v12  ;;  %v7176_v16 = vunpack.i.l.bf16 %v7175_v12 }
  0x8d   :  { %v6779_v21 = vpack.c.bf16 %v7177_v15, %v7176_v16 }
  0x8e   :  { %v7180_v22 = vpop.permute.xlu0 %7179 }
  0x8f   :  { %6780 = vmatprep.subr.bf16.mxu0 %v6779_v21  ;;  %v7182_v25 = vunpack.i.h.bf16 %v7180_v22  ;;  %v7181_v26 = vunpack.i.l.bf16 %v7180_v22 }
  0x90   :  { %6782 = vmatpush3.bf16.msra.mxu0 %v6779_v21 }
  0x91   :  { %v6783_v34 = vpack.c.bf16 %v7182_v25, %v7181_v26  ;;  %v7631_v38 = vpop.permute.xlu1 %286 }
  0x93   :  { %6784 = vmatprep.subr.bf16.mxu0 %v6783_v34 }
  0x94   :  { %6786 = vmatpush3.bf16.msra.mxu0 %v6783_v34 }
  0x95   :  { %v7185_v39 = vpop.permute.xlu1 %7184 }
  0x96   :  { %v7187_v40 = vunpack.i.h.bf16 %v7185_v39 }
  0xe9   :  { %v6021_v42 = vpop.f32.mrb[0].mxu0 }
  0xea   :  { %v7552_v43 = vadd.f32 %v6021_v42, %v7549_v41  ;;  %v177_v44 = vpop.f32.mrb[1].mxu0 }
  0xeb   :  { %v7555_v45 = vadd.f32 %v177_v44, %v7549_v41  ;;  %v940_v44 = vld [vmem:[%s9613_s1 + $0x8] sm:$0xff] }
  0xec   :  { %v266_v48 = vmax.f32 %v7552_v43, 0.0 }
  0xed   :  { %v6024_v46 = vpop.f32.mrb[2].mxu0  ;;  %v265_v47 = vmax.f32 %v7555_v45, 0.0 }
  0xee   :  { %v7560_v49 = vadd.f32 %v6024_v46, %v7549_v41  ;;  %v187_v50 = vpop.f32.mrb[3].mxu0  ;;  %v939_v46 = vld [vmem:[%s9613_s1] sm:$0xff] }
  0xef   :  { %v7563_v51 = vadd.f32 %v187_v50, %v7549_v41  ;;  %6059 = vmatprep.mubr.msk.f32.mxu1 %vm289_vm2, %v265_v47  ;;  %v7415_v47 = vmov 0   ;;  %v942_v50 = vld [vmem:[%s9613_s1 + $0x18] sm:$0xff] }
  0xf0   :  { %6060 = vmatmul.mubr.msk.f32.vlgmr.msra.gmra.mrb[0].mxu1 %vm289_vm2, %v266_v48  ;;  %v268_v54 = vmax.f32 %v7560_v49, 0.0  ;;  %7204 = vset.pattern.permute.xlu1 %v7415_v47  ;;  %v941_v48 = vld [vmem:[%s9613_s1 + $0x10] sm:$0xff] }
  0xf1   :  { %v267_v52 = vmax.f32 %v7563_v51, 0.0  ;;  %v6027_v53 = vpop.f32.mrb[4].mxu0  ;;  %7203 = vset.pattern.permute.xlu0 %v7415_v47  ;;  %959 = vperm.xlu1 %7204, %v940_v44  }
  0xf2   :  { %v7570_v55 = vadd.f32 %v6027_v53, %v7549_v41  ;;  %v197_v56 = vpop.f32.mrb[5].mxu0  ;;  %956 = vperm.xlu0 %7203, %v939_v46   ;;  %v944_v53 = vld [vmem:[%s9613_s1 + $0x28] sm:$0xff] }
  0xf3   :  { %v7573_v57 = vadd.f32 %v197_v56, %v7549_v41  ;;  %6062 = vmatprep.mubr.msk.f32.mxu1 %vm289_vm2, %v267_v52  ;;  %v943_v52 = vld [vmem:[%s9613_s1 + $0x20] sm:$0xff]  ;;  %v946_v56 = vld [vmem:[%s9613_s1 + $0x38] sm:$0xff] }
  0xf4   :  { %6063 = vmatmul.mubr.msk.f32.gmra.mrb[2].mxu1 %vm289_vm2, %v268_v54  ;;  %v270_v60 = vmax.f32 %v7570_v55, 0.0  ;;  %v945_v54 = vld [vmem:[%s9613_s1 + $0x30] sm:$0xff] }
  0xf5   :  { %v269_v58 = vmax.f32 %v7573_v57, 0.0  ;;  %v6030_v59 = vpop.f32.mrb[6].mxu0  ;;  %962 = vperm.xlu1 %7204, %v941_v48  }
  0xf6   :  { %v7580_v61 = vadd.f32 %v6030_v59, %v7549_v41  ;;  %v207_v62 = vpop.f32.mrb[7].mxu0  ;;  %965 = vperm.xlu0 %7203, %v942_v50   ;;  %v948_v59 = vld [vmem:[%s9613_s1 + $0x48] sm:$0xff] }
  0xf7   :  { %v7583_v63 = vadd.f32 %v207_v62, %v7549_v41  ;;  %6065 = vmatprep.mubr.msk.f32.mxu1 %vm289_vm2, %v269_v58  ;;  %v947_v58 = vld [vmem:[%s9613_s1 + $0x40] sm:$0xff]  ;;  %v950_v62 = vld [vmem:[%s9613_s1 + $0x58] sm:$0xff] }
  0xf8   :  { %6066 = vmatmul.mubr.msk.f32.gmra.mrb[4].mxu1 %vm289_vm2, %v270_v60  ;;  %v272_v2 = vmax.f32 %v7580_v61, 0.0  ;;  %v949_v60 = vld [vmem:[%s9613_s1 + $0x50] sm:$0xff] }
  0xf9   :  { %v271_v0 = vmax.f32 %v7583_v63, 0.0  ;;  %v6033_v1 = vpop.f32.mrb[8].mxu0  ;;  %968 = vperm.xlu1 %7204, %v943_v52  }
  0xfa   :  { %v7590_v3 = vadd.f32 %v6033_v1, %v7549_v41  ;;  %v217_v4 = vpop.f32.mrb[9].mxu0  ;;  %971 = vperm.xlu0 %7203, %v944_v53   ;;  %v952_v1 = vld [vmem:[%s9613_s1 + $0x68] sm:$0xff] }
  0xfb   :  { %v7593_v5 = vadd.f32 %v217_v4, %v7549_v41  ;;  %6068 = vmatprep.mubr.msk.f32.mxu1 %vm289_vm2, %v271_v0  ;;  %v951_v0 = vld [vmem:[%s9613_s1 + $0x60] sm:$0xff]  ;;  %v954_v4 = vld [vmem:[%s9613_s1 + $0x78] sm:$0xff] }
  0xfc   :  { %6069 = vmatmul.mubr.msk.f32.gmra.mrb[6].mxu1 %vm289_vm2, %v272_v2  ;;  %v274_v8 = vmax.f32 %v7590_v3, 0.0  ;;  %v953_v2 = vld [vmem:[%s9613_s1 + $0x70] sm:$0xff] }
  0xfd   :  { %v273_v6 = vmax.f32 %v7593_v5, 0.0  ;;  %v6036_v7 = vpop.f32.mrb[10].mxu0  ;;  %974 = vperm.xlu1 %7204, %v945_v54  }
  0xfe   :  { %v7600_v9 = vadd.f32 %v6036_v7, %v7549_v41  ;;  %v227_v10 = vpop.f32.mrb[11].mxu0  ;;  %977 = vperm.xlu0 %7203, %v946_v56  }
  0xff   :  { %v7603_v11 = vadd.f32 %v227_v10, %v7549_v41  ;;  %6071 = vmatprep.mubr.msk.f32.mxu1 %vm289_vm2, %v273_v6  ;;  %v7190_v6 = vpop.permute.xlu0 %7189 }
 0x100   :  { %6072 = vmatmul.mubr.msk.f32.gmra.mrb[8].mxu1 %vm289_vm2, %v274_v8  ;;  %v276_v17 = vmax.f32 %v7600_v9, 0.0  ;;  %v7192_v12 = vunpack.i.h.bf16 %v7190_v6 }
 0x101   :  { %v275_v13 = vmax.f32 %v7603_v11, 0.0  ;;  %v6039_v14 = vpop.f32.mrb[12].mxu0  ;;  %980 = vperm.xlu1 %7204, %v947_v58  }
 0x102   :  { %v7610_v18 = vadd.f32 %v6039_v14, %v7549_v41  ;;  %v237_v19 = vpop.f32.mrb[13].mxu0  ;;  %983 = vperm.xlu0 %7203, %v948_v59   ;;  %v7195_v14 = vpop.permute.xlu1 %7194 }
 0x103   :  { %v7613_v20 = vadd.f32 %v237_v19, %v7549_v41  ;;  %6074 = vmatprep.mubr.msk.f32.mxu1 %vm289_vm2, %v275_v13  ;;  %v7191_v13 = vunpack.i.l.bf16 %v7190_v6  ;;  %v7197_v19 = vunpack.i.h.bf16 %v7195_v14  ;;  %v7196_v21 = vunpack.i.l.bf16 %v7195_v14 }
 0x104   :  { %6075 = vmatmul.mubr.msk.f32.gmra.mrb[10].mxu1 %vm289_vm2, %v276_v17  ;;  %v278_v27 = vmax.f32 %v7610_v18, 0.0 }
 0x105   :  { %v277_v23 = vmax.f32 %v7613_v20, 0.0  ;;  %v6042_v24 = vpop.f32.mrb[14].mxu0  ;;  %986 = vperm.xlu1 %7204, %v949_v60   ;;  %v6791_v25 = vpack.c.bf16 %v7192_v12, %v7191_v13 }
 0x106   :  { %v7620_v28 = vadd.f32 %v6042_v24, %v7549_v41  ;;  %v247_v31 = vpop.f32.mrb[15].mxu0  ;;  %989 = vperm.xlu0 %7203, %v950_v62  }
 0x107   :  { %v7623_v32 = vadd.f32 %v247_v31, %v7549_v41  ;;  %6077 = vmatprep.mubr.msk.f32.mxu1 %vm289_vm2, %v277_v23  ;;  %v7186_v41 = vunpack.i.l.bf16 %v7185_v39 }
 0x108   :  { %6078 = vmatmul.mubr.msk.f32.gmra.mrb[12].mxu1 %vm289_vm2, %v278_v27  ;;  %v280_v37 = vmax.f32 %v7620_v28, 0.0  ;;  %v7200_v27 = vpop.permute.xlu0 %7199 }
 0x109   :  { %v279_v35 = vmax.f32 %v7623_v32, 0.0  ;;  %v6787_v42 = vpack.c.bf16 %v7187_v40, %v7186_v41  ;;  %992 = vperm.xlu1 %7204, %v951_v0   ;;  %v7202_v41 = vunpack.i.h.bf16 %v7200_v27  ;;  %v7201_v44 = vunpack.i.l.bf16 %v7200_v27 }
 0x10a   :  { %995 = vperm.xlu0 %7203, %v952_v1  }
 0x10b   :  { %6080 = vmatprep.mubr.msk.f32.mxu1 %vm289_vm2, %v279_v35  ;;  %6788 = vmatprep.subr.bf16.mxu0 %v6787_v42  ;;  %v6795_v35 = vpack.c.bf16 %v7197_v19, %v7196_v21  ;;  %v6799_v53 = vpack.c.bf16 %v7202_v41, %v7201_v44 }
 0x10c   :  { %6081 = vmatmul.mubr.msk.f32.gmra.mrb[14].mxu1 %vm289_vm2, %v280_v37 }
 0x10d   :  { %998 = vperm.xlu1 %7204, %v953_v2  }
 0x10e   :  { %1001 = vperm.xlu0 %7203, %v954_v4  }
 0x1c3   :  { %v6061_v7 = vpop.f32.mrb[0].mxu1 }
 0x1c4   :  { %v410_v8 = vadd.f32 %v6061_v7, %v7631_v38  ;;  %v404_v10 = vpop.f32.mrb[1].mxu1 }
 0x1c5   :  { %v405_v15 = vadd.f32 %v404_v10, %v7631_v38 }
 0x1c6   :  { %v484_v22 = vmax.f32 %v410_v8, 0.0 }
 0x1c7   :  { %v483_v16 = vmax.f32 %v405_v15, 0.0  ;;  %v6064_v17 = vpop.f32.mrb[2].mxu1 }
 0x1c8   :  { %v420_v23 = vadd.f32 %v6064_v17, %v7631_v38  ;;  %v414_v24 = vpop.f32.mrb[3].mxu1 }
 0x1c9   :  { %v415_v26 = vadd.f32 %v414_v24, %v7631_v38  ;;  %6091 = vmatprep.mubr.msk.f32.mxu0 %vm523_vm3, %v483_v16 }
 0x1ca   :  { %6092 = vmatmul.mubr.msk.f32.vlgmr.msra.gmra.mrb[16].mxu0 %vm523_vm3, %v484_v22  ;;  %v486_v37 = vmax.f32 %v420_v23, 0.0 }
 0x1cb   :  { %v485_v31 = vmax.f32 %v415_v26, 0.0  ;;  %6790 = vmatpush3.bf16.msra.mxu0 %v6787_v42  ;;  %v6067_v34 = vpop.f32.mrb[4].mxu1 }
 0x1cc   :  { %v430_v39 = vadd.f32 %v6067_v34, %v7631_v38  ;;  %v424_v40 = vpop.f32.mrb[5].mxu1  ;;  %6792 = vmatprep.subr.bf16.mxu0 %v6791_v25 }
 0x1cd   :  { %v425_v46 = vadd.f32 %v424_v40, %v7631_v38  ;;  %6094 = vmatprep.mubr.msk.f32.mxu0 %vm523_vm3, %v485_v31  ;;  %v7808_v31 = vld [vmem:[%s9612_s0] ss:$0 sm:$0xff]  ;;  %s7418_s0 = smov 32  }
 0x1ce   :  { %6095 = vmatmul.mubr.msk.f32.gmra.mrb[18].mxu0 %vm523_vm3, %v486_v37  ;;  %v488_v50 = vmax.f32 %v430_v39, 0.0 }
 0x1cf   :  { %v487_v47 = vmax.f32 %v425_v46, 0.0  ;;  %v6070_v48 = vpop.f32.mrb[6].mxu1  ;;  %6794 = vmatpush3.bf16.msra.mxu0 %v6791_v25 }
 0x1d0   :  { %v440_v42 = vadd.f32 %v6070_v48, %v7631_v38  ;;  %v434_v52 = vpop.f32.mrb[7].mxu1  ;;  %6796 = vmatprep.subr.bf16.mxu0 %v6795_v35 }
 0x1d1   :  { %v435_v54 = vadd.f32 %v434_v52, %v7631_v38  ;;  %6097 = vmatprep.mubr.msk.f32.mxu0 %vm523_vm3, %v487_v47 }
 0x1d2   :  { %6098 = vmatmul.mubr.msk.f32.gmra.mrb[20].mxu0 %vm523_vm3, %v488_v50  ;;  %v490_v59 = vmax.f32 %v440_v42, 0.0 }
 0x1d3   :  { %v489_v56 = vmax.f32 %v435_v54, 0.0  ;;  %v6073_v58 = vpop.f32.mrb[8].mxu1  ;;  %6798 = vmatpush3.bf16.msra.mxu0 %v6795_v35 }
 0x1d4   :  { %v450_v60 = vadd.f32 %v6073_v58, %v7631_v38  ;;  %v444_v62 = vpop.f32.mrb[9].mxu1  ;;  %6800 = vmatprep.subr.bf16.mxu0 %v6799_v53 }
 0x1d5   :  { %v445_v0 = vadd.f32 %v444_v62, %v7631_v38  ;;  %6100 = vmatprep.mubr.msk.f32.mxu0 %vm523_vm3, %v489_v56 }
 0x1d6   :  { %6101 = vmatmul.mubr.msk.f32.gmra.mrb[22].mxu0 %vm523_vm3, %v490_v59  ;;  %v492_v4 = vmax.f32 %v450_v60, 0.0 }
 0x1d7   :  { %v491_v1 = vmax.f32 %v445_v0, 0.0  ;;  %v6076_v2 = vpop.f32.mrb[10].mxu1  ;;  %6802 = vmatpush3.bf16.msra.mxu0 %v6799_v53 }
 0x1d8   :  { %v460_v6 = vadd.f32 %v6076_v2, %v7631_v38  ;;  %v454_v7 = vpop.f32.mrb[11].mxu1 }
 0x1d9   :  { %v455_v8 = vadd.f32 %v454_v7, %v7631_v38  ;;  %6103 = vmatprep.mubr.msk.f32.mxu0 %vm523_vm3, %v491_v1 }
 0x1da   :  { %6104 = vmatmul.mubr.msk.f32.gmra.mrb[24].mxu0 %vm523_vm3, %v492_v4  ;;  %v494_v13 = vmax.f32 %v460_v6, 0.0  ;;  %v3971_v4 = vld [vmem:[#allocation2 + $0x128] sm:$0xff] }
 0x1db   :  { %v493_v10 = vmax.f32 %v455_v8, 0.0  ;;  %v6079_v12 = vpop.f32.mrb[12].mxu1 }
 0x1dc   :  { %v470_v14 = vadd.f32 %v6079_v12, %v7631_v38  ;;  %v464_v15 = vpop.f32.mrb[13].mxu1 }
 0x1dd   :  { %v465_v16 = vadd.f32 %v464_v15, %v7631_v38  ;;  %6106 = vmatprep.mubr.msk.f32.mxu0 %vm523_vm3, %v493_v10 }
 0x1de   :  { %6107 = vmatmul.mubr.msk.f32.gmra.mrb[26].mxu0 %vm523_vm3, %v494_v13  ;;  %v496_v21 = vmax.f32 %v470_v14, 0.0 }
 0x1df   :  { %v495_v17 = vmax.f32 %v465_v16, 0.0  ;;  %v6082_v19 = vpop.f32.mrb[14].mxu1 }
 0x1e0   :  { %v480_v22 = vadd.f32 %v6082_v19, %v7631_v38  ;;  %v474_v23 = vpop.f32.mrb[15].mxu1 }
 0x1e1   :  { %v475_v24 = vadd.f32 %v474_v23, %v7631_v38  ;;  %6109 = vmatprep.mubr.msk.f32.mxu0 %vm523_vm3, %v495_v17 }
 0x1e2   :  { %6110 = vmatmul.mubr.msk.f32.gmra.mrb[28].mxu0 %vm523_vm3, %v496_v21  ;;  %v498_v26 = vmax.f32 %v480_v22, 0.0  ;;  %v3972_v22 = vld [vmem:[#allocation2 + $0x130] sm:$0xff] }
 0x1e3   :  { %v497_v25 = vmax.f32 %v475_v24, 0.0 }
 0x1e5   :  { %6112 = vmatprep.mubr.msk.f32.mxu0 %vm523_vm3, %v497_v25 }
 0x1e6   :  { %6113 = vmatmul.mubr.msk.f32.gmra.mrb[30].mxu0 %vm523_vm3, %v498_v26 }
 0x1e7   :  { %6131 = vmatprep.mubr.msk.f32.mxu0 %vm289_vm2, %v7555_v45 }
 0x1ea   :  { %6132 = vmatmul.mubr.msk.f32.vlgmr.msra.gmra.mrb[16].mxu0 %vm289_vm2, %v7552_v43  ;;  %v7745_v43 = vpop.permute.xlu1 %520 }
 0x1eb   :  { %6134 = vmatprep.mubr.msk.f32.mxu0 %vm289_vm2, %v7563_v51  ;;  %v7752_v51 = vand.u32 127, %v54_v29 }
 0x1ed   :  { %9695 = vst [vmem:[#allocation11_spill] sm:$0xff] %v7752_v51 }
 0x1ee   :  { %6135 = vmatmul.mubr.msk.f32.gmra.mrb[18].mxu0 %vm289_vm2, %v7560_v49  ;;  %v7747_v45 = vpop.permute.xlu1 %959  ;;  %v7749_v49 = vpop.permute.xlu0 %956 }
 0x1ef   :  { %6137 = vmatprep.mubr.msk.f32.mxu0 %vm289_vm2, %v7573_v57  ;;  %9693 = vst [vmem:[#allocation9_spill] sm:$0xff] %v7747_v45  ;;  %9694 = vst [vmem:[#allocation10_spill] sm:$0xff] %v7749_v49  ;;  %vm9631_vm4 = vcmp.eq.s32.totalorder %v7752_v51, %v7747_v45  ;;  %vm9636_vm5 = vcmp.eq.s32.totalorder %v7752_v51, %v7749_v49  ;;  %v9649_v57 = vmov 0.0   ;;  %vm1008_vm13 = vcmp.eq.s32.totalorder %v7747_v45, %v7808_v31 }
 0x1f0   :  { %v5512_v29 = vsel %vm9636_vm5, 1.0, %v9649_v57  ;;  %vm1007_vm14 = vcmp.eq.s32.totalorder %v7749_v49, %v7808_v31  ;;  %v5225_v40 = vsel %vm1008_vm13, 1.0, %v9649_v57 }
 0x1f1   :  { %v5224_v41 = vsel %vm1007_vm14, 1.0, %v9649_v57  ;;  %1057 = vadd.xlane.f32.xlu0 %v5225_v40 }
 0x1f2   :  { %6138 = vmatmul.mubr.msk.f32.gmra.mrb[20].mxu0 %vm289_vm2, %v7570_v55  ;;  %v7758_v55 = vpop.permute.xlu1 %962  ;;  %1055 = vadd.xlane.f32.xlu1 %v5224_v41 }
 0x1f3   :  { %6140 = vmatprep.mubr.msk.f32.mxu0 %vm289_vm2, %v7583_v63  ;;  %9696 = vst [vmem:[#allocation12_spill] sm:$0xff] %v7758_v55  ;;  %vm9619_vm6 = vcmp.eq.s32.totalorder %v7752_v51, %v7758_v55 }
 0x1f6   :  { %6141 = vmatmul.mubr.msk.f32.gmra.mrb[22].mxu0 %vm289_vm2, %v7580_v61  ;;  %v5514_v61 = vsel %vm9631_vm4, 1.0, %v9649_v57  ;;  %v7803_v27 = vpop.permute.xlu1 %968 }
 0x1f7   :  { %6143 = vmatprep.mubr.msk.f32.mxu0 %vm289_vm2, %v7593_v5  ;;  %v4955_v63 = vadd.f32 %v5514_v61, %v5512_v29  ;;  %v7775_v5 = vadd.s32 128, %v7752_v51  ;;  %9699 = vst [vmem:[#allocation15_spill] sm:$0xff] %v7803_v27  ;;  %vm9617_vm12 = vcmp.eq.s32.totalorder %v7752_v51, %v7803_v27 }
 0x1f8   :  { %v5520_v37 = vsel %vm9617_vm12, 1.0, %v9649_v57 }
 0x1f9   :  { %9697 = vst [vmem:[#allocation13_spill] sm:$0xff] %v7775_v5  ;;  %vm9648_vm7 = vcmp.eq.s32.totalorder %v7775_v5, %v7749_v49  ;;  %vm9641_vm8 = vcmp.eq.s32.totalorder %v7775_v5, %v7747_v45  ;;  %vm9626_vm9 = vcmp.eq.s32.totalorder %v7775_v5, %v7758_v55  ;;  %vm9622_vm0 = vcmp.eq.s32.totalorder %v7775_v5, %v7803_v27 }
 0x1fa   :  { %6144 = vmatmul.mubr.msk.f32.gmra.mrb[24].mxu0 %vm289_vm2, %v7590_v3  ;;  %v5516_v3 = vsel %vm9619_vm6, 1.0, %v9649_v57  ;;  %v7842_v50 = vpop.permute.xlu1 %974  ;;  %v5521_v58 = vsel %vm9622_vm0, 1.0, %v9649_v57 }
 0x1fb   :  { %6146 = vmatprep.mubr.msk.f32.mxu0 %vm289_vm2, %v7603_v11  ;;  %v5513_v11 = vsel %vm9648_vm7, 1.0, %v9649_v57  ;;  %9701 = vst [vmem:[#allocation17_spill] sm:$0xff] %v7842_v50  ;;  %vm9620_vm12 = vcmp.eq.s32.totalorder %v7752_v51, %v7842_v50 }
 0x1fc   :  { %v5524_v52 = vsel %vm9620_vm12, 1.0, %v9649_v57 }
 0x1fe   :  { %6147 = vmatmul.mubr.msk.f32.gmra.mrb[26].mxu0 %vm289_vm2, %v7600_v9  ;;  %v4956_v9 = vadd.f32 %v5516_v3, %v4955_v63  ;;  %v7882_v1 = vpop.permute.xlu1 %980 }
 0x1ff   :  { %6149 = vmatprep.mubr.msk.f32.mxu0 %vm289_vm2, %v7613_v20  ;;  %v7789_v20 = vpop.permute.xlu0 %965  ;;  %9703 = vst [vmem:[#allocation19_spill] sm:$0xff] %v7882_v1 }
 0x200   :  { %9698 = vst [vmem:[#allocation14_spill] sm:$0xff] %v7789_v20  ;;  %vm9618_vm10 = vcmp.eq.s32.totalorder %v7752_v51, %v7789_v20  ;;  %vm9625_vm11 = vcmp.eq.s32.totalorder %v7775_v5, %v7789_v20  ;;  %vm1010_vm6 = vcmp.eq.s32.totalorder %v7789_v20, %v7808_v31 }
 0x201   :  { %v5518_v38 = vsel %vm9618_vm10, 1.0, %v9649_v57  ;;  %v5519_v44 = vsel %vm9625_vm11, 1.0, %v9649_v57  ;;  %vm1009_vm10 = vcmp.eq.s32.totalorder %v7758_v55, %v7808_v31  ;;  %v5227_v56 = vsel %vm1010_vm6, 1.0, %v9649_v57 }
 0x202   :  { %6150 = vmatmul.mubr.msk.f32.gmra.mrb[28].mxu0 %vm289_vm2, %v7610_v18  ;;  %v5515_v18 = vsel %vm9641_vm8, 1.0, %v9649_v57  ;;  %v4957_v35 = vadd.f32 %v5518_v38, %v4956_v9  ;;  %v5226_v54 = vsel %vm1009_vm10, 1.0, %v9649_v57  ;;  %1061 = vadd.xlane.f32.xlu1 %v5227_v56  ;;  %vm1011_vm11 = vcmp.eq.s32.totalorder %v7803_v27, %v7808_v31  ;;  %v7932_v17 = vpop.permute.xlu1 %986 }
 0x203   :  { %6152 = vmatprep.mubr.msk.f32.mxu0 %vm289_vm2, %v7623_v32  ;;  %v5517_v32 = vsel %vm9626_vm9, 1.0, %v9649_v57  ;;  %v7822_v39 = vpop.permute.xlu0 %971  ;;  %1059 = vadd.xlane.f32.xlu0 %v5226_v54  ;;  %v5228_v8 = vsel %vm1011_vm11, 1.0, %v9649_v57  ;;  %9707 = vst [vmem:[#allocation21_spill] sm:$0xff] %v7932_v17  ;;  %v3974_v54 = vld [vmem:[#allocation2 + $0x140] sm:$0xff] }
 0x204   :  { %9700 = vst [vmem:[#allocation16_spill] sm:$0xff] %v7822_v39  ;;  %v4958_v46 = vadd.f32 %v5520_v37, %v4957_v35  ;;  %vm9621_vm15 = vcmp.eq.s32.totalorder %v7752_v51, %v7822_v39  ;;  %vm9623_vm1 = vcmp.eq.s32.totalorder %v7775_v5, %v7822_v39  ;;  %vm1012_vm9 = vcmp.eq.s32.totalorder %v7822_v39, %v7808_v31 }
 0x205   :  { %v5522_v48 = vsel %vm9621_vm15, 1.0, %v9649_v57  ;;  %v5523_v60 = vsel %vm9623_vm1, 1.0, %v9649_v57  ;;  %vm9630_vm15 = vcmp.eq.s32.totalorder %v7775_v5, %v7842_v50  ;;  %vm7894_vm1 = vmpackc.low %vm1010_vm6, %vm1009_vm10  ;;  %v5229_v10 = vsel %vm1012_vm9, 1.0, %v9649_v57 }
 0x206   :  { %6153 = vmatmul.mubr.msk.f32.gmra.mrb[30].mxu0 %vm289_vm2, %v7620_v28  ;;  %v4976_v28 = vadd.f32 %v5515_v18, %v5513_v11  ;;  %v4959_v42 = vadd.f32 %v5522_v48, %v4958_v46  ;;  %1065 = vadd.xlane.f32.xlu1 %v5229_v10  ;;  %v5525_v14 = vsel %vm9630_vm15, 1.0, %v9649_v57  ;;  %vm9635_vm10 = vcmp.eq.s32.totalorder %v7775_v5, %v7882_v1  ;;  %v7982_v11 = vpop.permute.xlu1 %992 }
 0x207   :  { %v7858_v53 = vpop.permute.xlu0 %977  ;;  %1063 = vadd.xlane.f32.xlu0 %v5228_v8  ;;  %vm1013_vm15 = vcmp.eq.s32.totalorder %v7842_v50, %v7808_v31  ;;  %v5529_v63 = vsel %vm9635_vm10, 1.0, %v9649_v57  ;;  %9711 = vst [vmem:[#allocation23_spill] sm:$0xff] %v7982_v11  ;;  %vm1015_vm10 = vcmp.eq.s32.totalorder %v7882_v1, %v7808_v31 }
 0x208   :  { %v4977_v34 = vadd.f32 %v5517_v32, %v4976_v28  ;;  %9702 = vst [vmem:[#allocation18_spill] sm:$0xff] %v7858_v53  ;;  %v4960_v59 = vadd.f32 %v5524_v52, %v4959_v42  ;;  %vm9624_vm12 = vcmp.eq.s32.totalorder %v7752_v51, %v7858_v53  ;;  %vm9628_vm0 = vcmp.eq.s32.totalorder %v7775_v5, %v7858_v53  ;;  %v3973_v32 = vld [vmem:[#allocation2 + $0x138] sm:$0xff] }
 0x209   :  { %v5526_v0 = vsel %vm9624_vm12, 1.0, %v9649_v57  ;;  %vm9627_vm12 = vcmp.eq.s32.totalorder %v7752_v51, %v7882_v1  ;;  %v5527_v15 = vsel %vm9628_vm0, 1.0, %v9649_v57  ;;  %vm7944_vm0 = vmpackc.low %vm1012_vm9, %vm1011_vm11  ;;  %vm1014_vm4 = vcmp.eq.s32.totalorder %v7858_v53, %v7808_v31 }
 0x20a   :  { %v4978_v47 = vadd.f32 %v5519_v44, %v4977_v34  ;;  %v4961_v2 = vadd.f32 %v5526_v0, %v4960_v59  ;;  %v5528_v6 = vsel %vm9627_vm12, 1.0, %v9649_v57  ;;  %v5230_v25 = vsel %vm1013_vm15, 1.0, %v9649_v57  ;;  %v8032_v48 = vpop.permute.xlu1 %998 }
 0x20b   :  { %v7908_v7 = vpop.permute.xlu0 %983  ;;  %v5231_v26 = vsel %vm1014_vm4, 1.0, %v9649_v57  ;;  %1067 = vadd.xlane.f32.xlu0 %v5230_v25  ;;  %vm9640_vm11 = vcmp.eq.s32.totalorder %v7775_v5, %v7932_v17  ;;  %v5232_v35 = vsel %vm1015_vm10, 1.0, %v9649_v57  ;;  %9715 = vst [vmem:[#allocation25_spill] sm:$0xff] %v8032_v48 }
 0x20c   :  { %v4979_v62 = vadd.f32 %v5521_v58, %v4978_v47  ;;  %9706 = vst [vmem:[#allocation20_spill] sm:$0xff] %v7908_v7  ;;  %v4962_v13 = vadd.f32 %v5528_v6, %v4961_v2  ;;  %vm9629_vm6 = vcmp.eq.s32.totalorder %v7752_v51, %v7908_v7  ;;  %vm9633_vm12 = vcmp.eq.s32.totalorder %v7775_v5, %v7908_v7 }
 0x20d   :  { %v5530_v16 = vsel %vm9629_vm6, 1.0, %v9649_v57  ;;  %vm9632_vm6 = vcmp.eq.s32.totalorder %v7752_v51, %v7932_v17  ;;  %1069 = vadd.xlane.f32.xlu1 %v5231_v26  ;;  %v5531_v3 = vsel %vm9633_vm12, 1.0, %v9649_v57  ;;  %vm7994_vm12 = vmpackc.low %vm1014_vm4, %vm1013_vm15  ;;  %vm1016_vm5 = vcmp.eq.s32.totalorder %v7908_v7, %v7808_v31 }
 0x20e   :  { %v4980_v12 = vadd.f32 %v5523_v60, %v4979_v62  ;;  %v4963_v21 = vadd.f32 %v5530_v16, %v4962_v13  ;;  %v5532_v23 = vsel %vm9632_vm6, 1.0, %v9649_v57  ;;  %v5233_v37 = vsel %vm1016_vm5, 1.0, %v9649_v57 }
 0x20f   :  { %v7958_v24 = vpop.permute.xlu0 %989  ;;  %1071 = vadd.xlane.f32.xlu0 %v5232_v35  ;;  %v5533_v44 = vsel %vm9640_vm11, 1.0, %v9649_v57  ;;  %vm9645_vm15 = vcmp.eq.s32.totalorder %v7775_v5, %v7982_v11  ;;  %vm1017_vm11 = vcmp.eq.s32.totalorder %v7932_v17, %v7808_v31  ;;  %v9206_v13 = vpack.i.bf16 %v3974_v54, %v3973_v32 }
 0x210   :  { %v4981_v19 = vadd.f32 %v5525_v14, %v4980_v12  ;;  %9710 = vst [vmem:[#allocation22_spill] sm:$0xff] %v7958_v24  ;;  %v4964_v29 = vadd.f32 %v5532_v23, %v4963_v21  ;;  %vm9634_vm9 = vcmp.eq.s32.totalorder %v7752_v51, %v7958_v24  ;;  %vm9638_vm6 = vcmp.eq.s32.totalorder %v7775_v5, %v7958_v24 }
 0x211   :  { %v5534_v9 = vsel %vm9634_vm9, 1.0, %v9649_v57  ;;  %vm9637_vm9 = vcmp.eq.s32.totalorder %v7752_v51, %v7982_v11  ;;  %1073 = vadd.xlane.f32.xlu1 %v5233_v37  ;;  %v5535_v46 = vsel %vm9638_vm6, 1.0, %v9649_v57  ;;  %vm8044_vm6 = vmpackc.low %vm1016_vm5, %vm1015_vm10  ;;  %vm1018_vm8 = vcmp.eq.s32.totalorder %v7958_v24, %v7808_v31 }
 0x212   :  { %v4982_v61 = vadd.f32 %v5527_v15, %v4981_v19  ;;  %v4965_v28 = vadd.f32 %v5534_v9, %v4964_v29  ;;  %v5536_v38 = vsel %vm9637_vm9, 1.0, %v9649_v57  ;;  %v5234_v59 = vsel %vm1017_vm11, 1.0, %v9649_v57 }
 0x213   :  { %v8008_v34 = vpop.permute.xlu0 %995  ;;  %v5235_v60 = vsel %vm1018_vm8, 1.0, %v9649_v57  ;;  %1075 = vadd.xlane.f32.xlu0 %v5234_v59  ;;  %v5537_v2 = vsel %vm9645_vm15, 1.0, %v9649_v57  ;;  %vm9646_vm10 = vcmp.eq.s32.totalorder %v7775_v5, %v8032_v48  ;;  %v9651_v9 = vmov 1.0|1.0  }
 0x214   :  { %v4983_v18 = vadd.f32 %v5529_v63, %v4982_v61  ;;  %9714 = vst [vmem:[#allocation24_spill] sm:$0xff] %v8008_v34  ;;  %v4966_v41 = vadd.f32 %v5536_v38, %v4965_v28  ;;  %vm9639_vm4 = vcmp.eq.s32.totalorder %v7752_v51, %v8008_v34  ;;  %vm9643_vm9 = vcmp.eq.s32.totalorder %v7775_v5, %v8008_v34  ;;  %v9212_v63 = vld [vmem:[#allocation2 + $0x160] sm:$0xff] }
 0x215   :  { %v5538_v47 = vsel %vm9639_vm4, 1.0, %v9649_v57  ;;  %vm9642_vm4 = vcmp.eq.s32.totalorder %v7752_v51, %v8032_v48  ;;  %1077 = vadd.xlane.f32.xlu1 %v5235_v60  ;;  %v5539_v6 = vsel %vm9643_vm9, 1.0, %v9649_v57  ;;  %vm8094_vm9 = vmpackc.low %vm1018_vm8, %vm1017_vm11  ;;  %vm1020_vm15 = vcmp.eq.s32.totalorder %v8008_v34, %v7808_v31 }
 0x216   :  { %v4984_v40 = vadd.f32 %v5531_v3, %v4983_v18  ;;  %v4967_v52 = vadd.f32 %v5538_v47, %v4966_v41  ;;  %v5540_v56 = vsel %vm9642_vm4, 1.0, %v9649_v57  ;;  %v5541_v14 = vsel %vm9646_vm10, 1.0, %v9649_v57  ;;  %vm8118_vm8 = vmpackc.low %vm1008_vm13, %vm1007_vm14 }
 0x217   :  { %v8058_v58 = vpop.permute.xlu0 %1001  ;;  %v5237_v16 = vsel %vm1020_vm15, 1.0, %v9649_v57  ;;  %vm1021_vm10 = vcmp.eq.s32.totalorder %v8032_v48, %v7808_v31  ;;  %6171 = vmatprep.mubr.msk.bf16.mxu1 %vm8118_vm8, %v9651_v9 }
 0x218   :  { %v4985_v42 = vadd.f32 %v5533_v44, %v4984_v40  ;;  %9718 = vst [vmem:[#allocation26_spill] sm:$0xff] %v8058_v58  ;;  %v4968_v0 = vadd.f32 %v5540_v56, %v4967_v52  ;;  %vm9644_vm5 = vcmp.eq.s32.totalorder %v7752_v51, %v8058_v58  ;;  %vm9647_vm4 = vcmp.eq.s32.totalorder %v7775_v5, %v8058_v58 }
 0x219   :  { %v5542_v8 = vsel %vm9644_vm5, 1.0, %v9649_v57  ;;  %vm1019_vm5 = vcmp.eq.s32.totalorder %v7982_v11, %v7808_v31  ;;  %1081 = vadd.xlane.f32.xlu1 %v5237_v16  ;;  %v5543_v21 = vsel %vm9647_vm4, 1.0, %v9649_v57  ;;  %vm1022_vm4 = vcmp.eq.s32.totalorder %v8058_v58, %v7808_v31 }
 0x21a   :  { %v4986_v62 = vadd.f32 %v5535_v46, %v4985_v42  ;;  %v8086_v12 = vadd.f32 %v5542_v8, %v4968_v0  ;;  %v5236_v15 = vsel %vm1019_vm5, 1.0, %v9649_v57  ;;  %vm8122_vm11 = vmpackc.low %vm1020_vm15, %vm1019_vm5  ;;  %v5238_v61 = vsel %vm1021_vm10, 1.0, %v9649_v57 }
 0x21b   :  { %1079 = vadd.xlane.f32.xlu0 %v5236_v15  ;;  %v5239_v29 = vsel %vm1022_vm4, 1.0, %v9649_v57  ;;  %vm8132_vm7 = vmpackc.low %vm1022_vm4, %vm1021_vm10 }
 0x21c   :  { %v4987_v10 = vadd.f32 %v5537_v2, %v4986_v62  ;;  %9719 = vst [vmem:[#allocation27_spill] sm:$0xff] %v8086_v12 }
 0x21d   :  { %1085 = vadd.xlane.f32.xlu1 %v5239_v29 }
 0x21e   :  { %v4988_v19 = vadd.f32 %v5539_v6, %v4987_v10 }
 0x21f   :  { %1083 = vadd.xlane.f32.xlu0 %v5238_v61 }
 0x220   :  { %v4989_v25 = vadd.f32 %v5541_v14, %v4988_v19 }
 0x222   :  { %v8136_v3 = vadd.f32 %v5543_v21, %v4989_v25 }
 0x224   :  { %9728 = vst [vmem:[#allocation28_spill] sm:$0xff] %v8136_v3 }
 0x2bd   :  { %v6133_v18 = vpop.f32.mrb[16].mxu0 }
 0x2be   :  { %v8142_v31 = vadd.f32 %v6133_v18, %v7745_v43  ;;  %v859_v28 = vpop.f32.mrb[17].mxu0 }
 0x2bf   :  { %v8145_v38 = vadd.f32 %v859_v28, %v7745_v43 }
 0x2c1   :  { %v1127_v35 = vpack.c.bf16 %v8142_v31, %v8145_v38  ;;  %v6136_v37 = vpop.f32.mrb[18].mxu0 }
 0x2c2   :  { %v8150_v40 = vadd.f32 %v6136_v37, %v7745_v43  ;;  %v869_v41 = vpop.f32.mrb[19].mxu0 }
 0x2c3   :  { %v8153_v44 = vadd.f32 %v869_v41, %v7745_v43  ;;  %6155 = vmatprep.subr.bf16.mxu1 %v1127_v35 }
 0x2c4   :  { %6156 = vmatpush3.bf16.msra.mxu1 %v1127_v35 }
 0x2c5   :  { %v1128_v46 = vpack.c.bf16 %v8150_v40, %v8153_v44  ;;  %v6139_v47 = vpop.f32.mrb[20].mxu0 }
 0x2c6   :  { %v8158_v42 = vadd.f32 %v6139_v47, %v7745_v43  ;;  %v879_v52 = vpop.f32.mrb[21].mxu0 }
 0x2c7   :  { %v8161_v56 = vadd.f32 %v879_v52, %v7745_v43  ;;  %6157 = vmatprep.subr.bf16.mxu1 %v1128_v46 }
 0x2c8   :  { %6158 = vmatpush3.bf16.msra.mxu1 %v1128_v46 }
 0x2c9   :  { %v1129_v59 = vpack.c.bf16 %v8158_v42, %v8161_v56  ;;  %v6142_v60 = vpop.f32.mrb[22].mxu0 }
 0x2ca   :  { %v8166_v62 = vadd.f32 %v6142_v60, %v7745_v43  ;;  %v889_v0 = vpop.f32.mrb[23].mxu0 }
 0x2cb   :  { %v8169_v2 = vadd.f32 %v889_v0, %v7745_v43  ;;  %6159 = vmatprep.subr.bf16.mxu1 %v1129_v59  ;;  %v8228_v0 = vld [vmem:[#allocation2 + $0x70] sm:$0xff] }
 0x2cc   :  { %6160 = vmatpush3.bf16.msra.mxu1 %v1129_v59 }
 0x2cd   :  { %v1130_v6 = vpack.c.bf16 %v8166_v62, %v8169_v2  ;;  %v6145_v8 = vpop.f32.mrb[24].mxu0 }
 0x2ce   :  { %v8174_v10 = vadd.f32 %v6145_v8, %v7745_v43  ;;  %v899_v14 = vpop.f32.mrb[25].mxu0 }
 0x2cf   :  { %v8177_v15 = vadd.f32 %v899_v14, %v7745_v43  ;;  %6161 = vmatprep.subr.bf16.mxu1 %v1130_v6  ;;  %v8234_v14 = vld [vmem:[#allocation2 + $0x80] sm:$0xff] }
 0x2d0   :  { %6162 = vmatpush3.bf16.msra.mxu1 %v1130_v6  ;;  %v8230_v6 = vld [vmem:[#allocation2 + $0x78] sm:$0xff] }
 0x2d1   :  { %v1131_v16 = vpack.c.bf16 %v8174_v10, %v8177_v15  ;;  %v6148_v19 = vpop.f32.mrb[26].mxu0 }
 0x2d2   :  { %v8182_v21 = vadd.f32 %v6148_v19, %v7745_v43  ;;  %v909_v25 = vpop.f32.mrb[27].mxu0  ;;  %v8238_v19 = vld [vmem:[#allocation2 + $0x88] sm:$0xff] }
 0x2d3   :  { %v8185_v61 = vadd.f32 %v909_v25, %v7745_v43  ;;  %6163 = vmatprep.subr.bf16.mxu1 %v1131_v16  ;;  %v8240_v25 = vld [vmem:[#allocation2 + $0x90] sm:$0xff] }
 0x2d4   :  { %6164 = vmatpush3.bf16.msra.mxu1 %v1131_v16  ;;  %v6807_v16 = vpack.c.bf16 %v8234_v14, %v8230_v6 }
 0x2d5   :  { %v1132_v29 = vpack.c.bf16 %v8182_v21, %v8185_v61  ;;  %v6151_v18 = vpop.f32.mrb[28].mxu0 }
 0x2d6   :  { %v8190_v28 = vadd.f32 %v6151_v18, %v7745_v43  ;;  %v919_v35 = vpop.f32.mrb[29].mxu0  ;;  %v8244_v18 = vld [vmem:[#allocation2 + $0x98] sm:$0xff] }
 0x2d7   :  { %v8193_v37 = vadd.f32 %v919_v35, %v7745_v43  ;;  %6165 = vmatprep.subr.bf16.mxu1 %v1132_v29  ;;  %v8246_v35 = vld [vmem:[#allocation2 + $0xa0] sm:$0xff] }
 0x2d8   :  { %6166 = vmatpush3.bf16.msra.mxu1 %v1132_v29  ;;  %v6811_v29 = vpack.c.bf16 %v8240_v25, %v8238_v19 }
 0x2d9   :  { %v1133_v41 = vpack.c.bf16 %v8190_v28, %v8193_v37  ;;  %v6154_v46 = vpop.f32.mrb[30].mxu0 }
 0x2da   :  { %v8198_v47 = vadd.f32 %v6154_v46, %v7745_v43  ;;  %v929_v52 = vpop.f32.mrb[31].mxu0  ;;  %v1056_v46 = vpop.xlane.xlu1 %1055 }
 0x2db   :  { %v8201_v59 = vadd.f32 %v929_v52, %v7745_v43  ;;  %6167 = vmatprep.subr.bf16.mxu1 %v1133_v41  ;;  %v8226_v43 = vld [vmem:[#allocation2 + $0x68] sm:$0xff]  ;;  %v1058_v52 = vpop.xlane.xlu0 %1057  ;;  %7325 = vrcp.f32 %v1056_v46 }
 0x2dc   :  { %6168 = vmatpush3.bf16.msra.mxu1 %v1133_v41  ;;  %v6803_v8 = vpack.c.bf16 %v8228_v0, %v8226_v43  ;;  %v6815_v41 = vpack.c.bf16 %v8246_v35, %v8244_v18  ;;  %7327 = vrcp.f32 %v1058_v52 }
 0x2dd   :  { %v1134_v60 = vpack.c.bf16 %v8198_v47, %v8201_v59 }
 0x2df   :  { %6169 = vmatprep.subr.bf16.mxu1 %v1134_v60 }
 0x2e0   :  { %6170 = vmatpush3.bf16.msra.mxu1 %v1134_v60  ;;  %v1062_v60 = vpop.xlane.xlu1 %1061 }
 0x2e1   :  { %6804 = vmatprep.subr.bf16.mxu1 %v6803_v8  ;;  %7329 = vrcp.f32 %v1062_v60 }
 0x2e3   :  { %6172 = vmatmul.mubr.msk.bf16.vlgmr.msra.gmra.mrb[16].mxu1 %vm7894_vm1, %v9651_v9 }
 0x2e4   :  { %6175 = vmatprep.mubr.msk.bf16.mxu1 %vm7944_vm0, %v9651_v9  ;;  %6806 = vmatpush3.bf16.msra.mxu1 %v6803_v8  ;;  %v1060_v8 = vpop.xlane.xlu0 %1059  ;;  %v1066_v57 = vpop.xlane.xlu1 %1065 }
 0x2e5   :  { %6808 = vmatprep.subr.bf16.mxu1 %v6807_v16  ;;  %7331 = vrcp.f32 %v1060_v8  ;;  %v8250_v48 = vpop.eup %7325 }
 0x2e6   :  { %7333 = vrcp.f32 %v1066_v57  ;;  %v8253_v11 = vpop.eup %7327 }
 0x2e8   :  { %6810 = vmatpush3.bf16.msra.mxu1 %v6807_v16  ;;  %v1070_v3 = vpop.xlane.xlu1 %1069 }
 0x2e9   :  { %6812 = vmatprep.subr.bf16.mxu1 %v6811_v29 }
 0x2eb   :  { %6176 = vmatmul.mubr.msk.bf16.gmra.mrb[20].mxu1 %vm7994_vm12, %v9651_v9  ;;  %v8257_v52 = vpop.eup %7329 }
 0x2ec   :  { %6179 = vmatprep.mubr.msk.bf16.mxu1 %vm8044_vm6, %v9651_v9  ;;  %6814 = vmatpush3.bf16.msra.mxu1 %v6811_v29  ;;  %v1074_v16 = vpop.xlane.xlu1 %1073 }
 0x2ed   :  { %6816 = vmatprep.subr.bf16.mxu1 %v6815_v41 }
 0x2ef   :  { %v8261_v8 = vpop.eup %7331 }
 0x2f0   :  { %6818 = vmatpush3.bf16.msra.mxu1 %v6815_v41  ;;  %v1078_v57 = vpop.xlane.xlu1 %1077 }
 0x2f3   :  { %6180 = vmatmul.mubr.msk.bf16.gmra.mrb[24].mxu1 %vm8094_vm9, %v9651_v9 }
 0x2f4   :  { %6183 = vmatprep.mubr.msk.bf16.mxu1 %vm8122_vm11, %v9651_v9 }
 0x2fb   :  { %6184 = vmatmul.mubr.msk.bf16.gmra.mrb[28].mxu1 %vm8132_vm7, %v9651_v9  ;;  %v1064_v9 = vpop.xlane.xlu0 %1063 }
 0x2fc   :  { %7335 = vrcp.f32 %v1064_v9 }
 0x2fd   :  { %7337 = vrcp.f32 %v1070_v3 }
 0x2ff   :  { %v1068_v12 = vpop.xlane.xlu0 %1067 }
 0x300   :  { %7339 = vrcp.f32 %v1068_v12 }
 0x301   :  { %7341 = vrcp.f32 %v1074_v16 }
 0x303   :  { %v1072_v30 = vpop.xlane.xlu0 %1071 }
 0x304   :  { %7343 = vrcp.f32 %v1072_v30 }
 0x305   :  { %7345 = vrcp.f32 %v1078_v57 }
 0x307   :  { %v1076_v60 = vpop.xlane.xlu0 %1075 }
 0x308   :  { %7347 = vrcp.f32 %v1076_v60 }
 0x3b6   :  { %v6173_v58 = vpop.f32.mrb[16].mxu1 }
 0x3b7   :  { %v1169_v29 = vpop.f32.mrb[17].mxu1 }
 0x3b8   :  { %v1232_v41 = vmul.f32 %v8250_v48, %v1169_v29  ;;  %v6174_v34 = vpop.f32.mrb[18].mxu1  ;;  %v1234_v29 = vmul.f32 %v8261_v8, %v6173_v58 }
 0x3b9   :  { %v1172_v24 = vpop.f32.mrb[19].mxu1  ;;  %v1235_v9 = vmul.f32 %v8257_v52, %v6174_v34  ;;  %v1082_v34 = vpop.xlane.xlu1 %1081 }
 0x3ba   :  { %v1233_v46 = vmul.f32 %v8253_v11, %v1172_v24  ;;  %1264 = vrot.lane.b32.xlu0 %v1232_v41, %s7418_s0  ;;  %v8265_v41 = vpop.eup %7333  ;;  %7349 = vrcp.f32 %v1082_v34 }
 0x3bb   :  { %v8268_v17 = vpop.eup %7335 }
 0x3bc   :  { %1266 = vrot.lane.b32.xlu1 %v1233_v46, %s7418_s0  ;;  %v1080_v46 = vpop.xlane.xlu0 %1079 }
 0x3bd   :  { %7351 = vrcp.f32 %v1080_v46  ;;  %v1086_v53 = vpop.xlane.xlu1 %1085 }
 0x3be   :  { %1270 = vrot.lane.b32.xlu0 %v1235_v9, %s7418_s0  ;;  %v6177_v24 = vpop.f32.mrb[20].mxu1  ;;  %v8272_v9 = vpop.eup %7337  ;;  %7353 = vrcp.f32 %v1086_v53 }
 0x3bf   :  { %v1185_v3 = vpop.f32.mrb[21].mxu1  ;;  %v8276_v30 = vpop.eup %7339 }
 0x3c0   :  { %1268 = vrot.lane.b32.xlu1 %v1234_v29, %s7418_s0  ;;  %v6178_v12 = vpop.f32.mrb[22].mxu1  ;;  %v1236_v16 = vmul.f32 %v8268_v17, %v1185_v3  ;;  %v1238_v29 = vmul.f32 %v8276_v30, %v6177_v24  ;;  %v8280_v50 = vpop.eup %7341 }
 0x3c1   :  { %v1188_v7 = vpop.f32.mrb[23].mxu1  ;;  %v1239_v1 = vmul.f32 %v8272_v9, %v6178_v12 }
 0x3c2   :  { %v1237_v58 = vmul.f32 %v8265_v41, %v1188_v7  ;;  %v1084_v7 = vpop.xlane.xlu0 %1083 }
 0x3c3   :  { %7355 = vrcp.f32 %v1084_v7 }
 0x3c4   :  { %1272 = vrot.lane.b32.xlu1 %v1236_v16, %s7418_s0  ;;  %1274 = vrot.lane.b32.xlu0 %v1237_v58, %s7418_s0  ;;  %v8284_v16 = vpop.eup %7343 }
 0x3c5   :  { %v8288_v34 = vpop.eup %7345 }
 0x3c6   :  { %v6181_v57 = vpop.f32.mrb[24].mxu1  ;;  %v8292_v46 = vpop.eup %7347 }
 0x3c7   :  { %v1201_v3 = vpop.f32.mrb[25].mxu1  ;;  %v8296_v53 = vpop.eup %7349 }
 0x3c8   :  { %1276 = vrot.lane.b32.xlu1 %v1238_v29, %s7418_s0  ;;  %1278 = vrot.lane.b32.xlu0 %v1239_v1, %s7418_s0  ;;  %v6182_v60 = vpop.f32.mrb[26].mxu1  ;;  %v1240_v24 = vmul.f32 %v8284_v16, %v1201_v3  ;;  %v1242_v1 = vmul.f32 %v8292_v46, %v6181_v57  ;;  %v8300_v7 = vpop.eup %7351 }
 0x3c9   :  { %v1204_v58 = vpop.f32.mrb[27].mxu1  ;;  %v1243_v29 = vmul.f32 %v8288_v34, %v6182_v60  ;;  %v8304_v20 = vpop.eup %7353 }
 0x3ca   :  { %v1241_v12 = vmul.f32 %v8280_v50, %v1204_v58 }
 0x3cc   :  { %1280 = vrot.lane.b32.xlu1 %v1240_v24, %s7418_s0  ;;  %1282 = vrot.lane.b32.xlu0 %v1241_v12, %s7418_s0 }
 0x3cd   :  { %v8308_v57 = vpop.eup %7355 }
 0x3ce   :  { %v6185_v39 = vpop.f32.mrb[28].mxu1 }
 0x3cf   :  { %v1217_v27 = vpop.f32.mrb[29].mxu1  ;;  %v1246_v60 = vmul.f32 %v8308_v57, %v6185_v39 }
 0x3d0   :  { %1284 = vrot.lane.b32.xlu1 %v1242_v1, %s7418_s0  ;;  %1286 = vrot.lane.b32.xlu0 %v1243_v29, %s7418_s0  ;;  %v6186_v3 = vpop.f32.mrb[30].mxu1  ;;  %v1244_v24 = vmul.f32 %v8300_v7, %v1217_v27  ;;  %v7205_v27 = vpack.i.bf16 %v8228_v0, %v8226_v43  ;;  %v7210_v29 = vpack.i.bf16 %v8234_v14, %v8230_v6 }
 0x3d1   :  { %v1220_v58 = vpop.f32.mrb[31].mxu1  ;;  %v1247_v1 = vmul.f32 %v8304_v20, %v6186_v3  ;;  %v7225_v3 = vpack.i.bf16 %v8240_v25, %v8238_v19  ;;  %v7230_v43 = vpack.i.bf16 %v8246_v35, %v8244_v18 }
 0x3d2   :  { %v1245_v12 = vmul.f32 %v8296_v53, %v1220_v58  ;;  %v8318_v58 = vld [vmem:[#allocation2 + $0x88] sm:$0x3] }
 0x3d3   :  { %v1356_v39 = vrot.slane %v8318_v58, %v7532_v33 }
 0x3d4   :  { %1288 = vrot.lane.b32.xlu1 %v1244_v24, %s7418_s0  ;;  %1290 = vrot.lane.b32.xlu0 %v1245_v12, %s7418_s0 }
 0x3d8   :  { %1292 = vrot.lane.b32.xlu1 %v1246_v60, %s7418_s0  ;;  %1294 = vrot.lane.b32.xlu0 %v1247_v1, %s7418_s0 }
 0x3dc   :  { %7206 = vrot.lane.b32.xlu1 %v7205_v27, %s7413_s9  ;;  %7211 = vrot.lane.b32.xlu0 %v7210_v29, %s7413_s9 }
 0x3e0   :  { %1358 = vrot.lane.b32.xlu1 %v1356_v39, %s7413_s9  ;;  %7216 = vrot.lane.b32.xlu0 %v7205_v27, %s7414_s2 }
 0x3e4   :  { %7221 = vrot.lane.b32.xlu1 %v7210_v29, %s7414_s2  ;;  %7226 = vrot.lane.b32.xlu0 %v7225_v3, %s7414_s2 }
 0x3e8   :  { %7231 = vrot.lane.b32.xlu1 %v7230_v43, %s7414_s2 }
 0x42c   :  { %v1265_v0 = vpop.permute.xlu0 %1264 }
 0x42d   :  { %v8335_v6 = vsel %vm523_vm3, %v8145_v38, %v1265_v0 }
 0x42e   :  { %v1337_v14 = vmax.f32 %v8335_v6, 0.0  ;;  %v1267_v24 = vpop.permute.xlu1 %1266 }
 0x42f   :  { %v8340_v19 = vsel %vm523_vm3, %v8142_v31, %v1267_v24 }
 0x430   :  { %v1338_v25 = vmax.f32 %v8340_v19, 0.0  ;;  %6203 = vmatprep.mubr.msk.f32.mxu1 %vm289_vm2, %v1337_v14  ;;  %v1271_v12 = vpop.permute.xlu0 %1270 }
 0x431   :  { %v8346_v18 = vsel %vm523_vm3, %v8150_v40, %v1271_v12 }
 0x432   :  { %6204 = vmatmul.mubr.msk.f32.vlgmr.msra.gmra.mrb[32].mxu1 %vm289_vm2, %v1338_v25  ;;  %v1269_v38 = vpop.permute.xlu1 %1268  ;;  %v1340_v31 = vmax.f32 %v8346_v18, 0.0 }
 0x433   :  { %v8351_v35 = vsel %vm523_vm3, %v8153_v44, %v1269_v38 }
 0x434   :  { %v1339_v60 = vmax.f32 %v8351_v35, 0.0 }
 0x436   :  { %6206 = vmatprep.mubr.msk.f32.mxu1 %vm289_vm2, %v1339_v60  ;;  %v1273_v1 = vpop.permute.xlu1 %1272  ;;  %v1275_v27 = vpop.permute.xlu0 %1274 }
 0x437   :  { %v8358_v29 = vsel %vm523_vm3, %v8161_v56, %v1273_v1  ;;  %v8362_v40 = vsel %vm523_vm3, %v8158_v42, %v1275_v27  ;;  %6207 = vmatmul.mubr.msk.f32.gmra.mrb[34].mxu1 %vm289_vm2, %v1340_v31 }
 0x438   :  { %v1341_v44 = vmax.f32 %v8358_v29, 0.0  ;;  %v1342_v39 = vmax.f32 %v8362_v40, 0.0 }
 0x43a   :  { %6209 = vmatprep.mubr.msk.f32.mxu1 %vm289_vm2, %v1341_v44  ;;  %v1277_v3 = vpop.permute.xlu1 %1276  ;;  %v1279_v43 = vpop.permute.xlu0 %1278 }
 0x43b   :  { %v8370_v0 = vsel %vm523_vm3, %v8169_v2, %v1277_v3  ;;  %v8374_v56 = vsel %vm523_vm3, %v8166_v62, %v1279_v43  ;;  %6210 = vmatmul.mubr.msk.f32.gmra.mrb[36].mxu1 %vm289_vm2, %v1342_v39 }
 0x43c   :  { %v1343_v42 = vmax.f32 %v8370_v0, 0.0  ;;  %v1344_v14 = vmax.f32 %v8374_v56, 0.0 }
 0x43e   :  { %6212 = vmatprep.mubr.msk.f32.mxu1 %vm289_vm2, %v1343_v42  ;;  %v1281_v24 = vpop.permute.xlu1 %1280  ;;  %v1283_v25 = vpop.permute.xlu0 %1282 }
 0x43f   :  { %v8382_v12 = vsel %vm523_vm3, %v8177_v15, %v1281_v24  ;;  %v8386_v2 = vsel %vm523_vm3, %v8174_v10, %v1283_v25  ;;  %6213 = vmatmul.mubr.msk.f32.gmra.mrb[38].mxu1 %vm289_vm2, %v1344_v14 }
 0x440   :  { %v1345_v62 = vmax.f32 %v8382_v12, 0.0  ;;  %v1346_v38 = vmax.f32 %v8386_v2, 0.0 }
 0x442   :  { %6215 = vmatprep.mubr.msk.f32.mxu1 %vm289_vm2, %v1345_v62  ;;  %v1285_v60 = vpop.permute.xlu1 %1284  ;;  %v1287_v31 = vpop.permute.xlu0 %1286 }
 0x443   :  { %v8394_v1 = vsel %vm523_vm3, %v8185_v61, %v1285_v60  ;;  %v8398_v15 = vsel %vm523_vm3, %v8182_v21, %v1287_v31  ;;  %6216 = vmatmul.mubr.msk.f32.gmra.mrb[40].mxu1 %vm289_vm2, %v1346_v38 }
 0x444   :  { %v1347_v10 = vmax.f32 %v8394_v1, 0.0  ;;  %v1348_v27 = vmax.f32 %v8398_v15, 0.0 }
 0x446   :  { %6218 = vmatprep.mubr.msk.f32.mxu1 %vm289_vm2, %v1347_v10  ;;  %v1289_v44 = vpop.permute.xlu1 %1288  ;;  %v1291_v39 = vpop.permute.xlu0 %1290 }
 0x447   :  { %v8406_v3 = vsel %vm523_vm3, %v8193_v37, %v1289_v44  ;;  %v8410_v61 = vsel %vm523_vm3, %v8190_v28, %v1291_v39  ;;  %6219 = vmatmul.mubr.msk.f32.gmra.mrb[42].mxu1 %vm289_vm2, %v1348_v27  ;;  %v9729_v27 = vmov 1.0|1.0  }
 0x448   :  { %v1349_v21 = vmax.f32 %v8406_v3, 0.0  ;;  %v1350_v43 = vmax.f32 %v8410_v61, 0.0 }
 0x44a   :  { %6221 = vmatprep.mubr.msk.f32.mxu1 %vm289_vm2, %v1349_v21  ;;  %v1293_v42 = vpop.permute.xlu1 %1292  ;;  %v1295_v14 = vpop.permute.xlu0 %1294 }
 0x44b   :  { %v8418_v24 = vsel %vm523_vm3, %v8201_v59, %v1293_v42  ;;  %v8422_v37 = vsel %vm523_vm3, %v8198_v47, %v1295_v14  ;;  %6222 = vmatmul.mubr.msk.f32.gmra.mrb[44].mxu1 %vm289_vm2, %v1350_v43  ;;  %v1573_v14 = vrot.slane %v8318_v58, %v7539_v36 }
 0x44c   :  { %v1351_v28 = vmax.f32 %v8418_v24, 0.0  ;;  %v1352_v25 = vmax.f32 %v8422_v37, 0.0 }
 0x44d   :  { %1591 = vrot.lane.b32.xlu0 %v1573_v14, %s7413_s9 }
 0x44e   :  { %6224 = vmatprep.mubr.msk.f32.mxu1 %vm289_vm2, %v1351_v28  ;;  %v7207_v62 = vpop.permute.xlu1 %7206  ;;  %v7212_v38 = vpop.permute.xlu0 %7211 }
 0x44f   :  { %6225 = vmatmul.mubr.msk.f32.gmra.mrb[46].mxu1 %vm289_vm2, %v1352_v25  ;;  %v7209_v60 = vunpack.i.h.bf16 %v7207_v62  ;;  %v7208_v31 = vunpack.i.l.bf16 %v7207_v62  ;;  %v7214_v59 = vunpack.i.h.bf16 %v7212_v38  ;;  %v7213_v10 = vunpack.i.l.bf16 %v7212_v38 }
 0x450   :  { %6315 = vmatprep.mubr.msk.bf16.mxu1 %vm8118_vm8, %v9729_v27 }
 0x451   :  { %v6819_v47 = vpack.c.bf16 %v7209_v60, %v7208_v31  ;;  %v6823_v44 = vpack.c.bf16 %v7214_v59, %v7213_v10 }
 0x452   :  { %v7217_v39 = vpop.permute.xlu0 %7216  ;;  %v8435_v28 = vpop.permute.xlu1 %1358 }
 0x453   :  { %6820 = vmatprep.subr.bf16.mxu0 %v6819_v47  ;;  %v7219_v21 = vunpack.i.h.bf16 %v7217_v39  ;;  %v7218_v43 = vunpack.i.l.bf16 %v7217_v39 }
 0x454   :  { %6822 = vmatpush3.bf16.msra.mxu0 %v6819_v47 }
 0x455   :  { %6824 = vmatprep.subr.bf16.mxu0 %v6823_v44  ;;  %v6827_v42 = vpack.c.bf16 %v7219_v21, %v7218_v43 }
 0x456   :  { %v7222_v25 = vpop.permute.xlu1 %7221  ;;  %v7227_v47 = vpop.permute.xlu0 %7226 }
 0x457   :  { %v7224_v31 = vunpack.i.h.bf16 %v7222_v25  ;;  %v7223_v59 = vunpack.i.l.bf16 %v7222_v25  ;;  %v7229_v55 = vunpack.i.h.bf16 %v7227_v47  ;;  %v7228_v58 = vunpack.i.l.bf16 %v7227_v47 }
 0x458   :  { %6826 = vmatpush3.bf16.msra.mxu0 %v6823_v44 }
 0x459   :  { %6828 = vmatprep.subr.bf16.mxu0 %v6827_v42  ;;  %v6831_v43 = vpack.c.bf16 %v7224_v31, %v7223_v59 }
 0x505   :  { %v6205_v62 = vpop.f32.mrb[32].mxu1 }
 0x506   :  { %v1481_v38 = vadd.f32 %v6205_v62, %v8435_v28  ;;  %v1475_v60 = vpop.f32.mrb[33].mxu1  ;;  %v7232_v62 = vpop.permute.xlu1 %7231 }
 0x507   :  { %v1476_v10 = vadd.f32 %v1475_v60, %v8435_v28  ;;  %v7234_v47 = vunpack.i.h.bf16 %v7232_v62  ;;  %v7233_v49 = vunpack.i.l.bf16 %v7232_v62 }
 0x508   :  { %v1555_v39 = vmax.f32 %v1481_v38, 0.0 }
 0x509   :  { %v1554_v44 = vmax.f32 %v1476_v10, 0.0  ;;  %v6835_v10 = vpack.c.bf16 %v7229_v55, %v7228_v58  ;;  %v6839_v55 = vpack.c.bf16 %v7234_v47, %v7233_v49 }
 0x50a   :  { %v6208_v21 = vpop.f32.mrb[34].mxu1 }
 0x50b   :  { %v1491_v14 = vadd.f32 %v6208_v21, %v8435_v28  ;;  %v1485_v51 = vpop.f32.mrb[35].mxu1  ;;  %6235 = vmatprep.mubr.msk.f32.mxu0 %vm523_vm3, %v1554_v44 }
 0x50c   :  { %v1486_v45 = vadd.f32 %v1485_v51, %v8435_v28  ;;  %6236 = vmatmul.mubr.msk.f32.vlgmr.msra.gmra.mrb[32].mxu0 %vm523_vm3, %v1555_v39 }
 0x50d   :  { %6830 = vmatpush3.bf16.msra.mxu0 %v6827_v42  ;;  %v1557_v38 = vmax.f32 %v1491_v14, 0.0 }
 0x50e   :  { %v1556_v25 = vmax.f32 %v1486_v45, 0.0  ;;  %v6211_v60 = vpop.f32.mrb[36].mxu1  ;;  %6832 = vmatprep.subr.bf16.mxu0 %v6831_v43 }
 0x50f   :  { %v1501_v31 = vadd.f32 %v6211_v60, %v8435_v28  ;;  %v1495_v59 = vpop.f32.mrb[37].mxu1 }
 0x510   :  { %v1496_v21 = vadd.f32 %v1495_v59, %v8435_v28  ;;  %6238 = vmatprep.mubr.msk.f32.mxu0 %vm523_vm3, %v1556_v25 }
 0x511   :  { %6239 = vmatmul.mubr.msk.f32.gmra.mrb[34].mxu0 %vm523_vm3, %v1557_v38  ;;  %v1559_v42 = vmax.f32 %v1501_v31, 0.0 }
 0x512   :  { %v1558_v51 = vmax.f32 %v1496_v21, 0.0  ;;  %v6214_v44 = vpop.f32.mrb[38].mxu1  ;;  %6834 = vmatpush3.bf16.msra.mxu0 %v6831_v43 }
 0x513   :  { %v1511_v45 = vadd.f32 %v6214_v44, %v8435_v28  ;;  %v1505_v39 = vpop.f32.mrb[39].mxu1  ;;  %6836 = vmatprep.subr.bf16.mxu0 %v6835_v10 }
 0x514   :  { %v1506_v58 = vadd.f32 %v1505_v39, %v8435_v28  ;;  %6241 = vmatprep.mubr.msk.f32.mxu0 %vm523_vm3, %v1558_v51 }
 0x515   :  { %6242 = vmatmul.mubr.msk.f32.gmra.mrb[36].mxu0 %vm523_vm3, %v1559_v42  ;;  %v1561_v25 = vmax.f32 %v1511_v45, 0.0 }
 0x516   :  { %v1560_v14 = vmax.f32 %v1506_v58, 0.0  ;;  %v6217_v62 = vpop.f32.mrb[40].mxu1  ;;  %6838 = vmatpush3.bf16.msra.mxu0 %v6835_v10 }
 0x517   :  { %v1521_v60 = vadd.f32 %v6217_v62, %v8435_v28  ;;  %v1515_v38 = vpop.f32.mrb[41].mxu1  ;;  %6840 = vmatprep.subr.bf16.mxu0 %v6839_v55 }
 0x518   :  { %v1516_v43 = vadd.f32 %v1515_v38, %v8435_v28  ;;  %6244 = vmatprep.mubr.msk.f32.mxu0 %vm523_vm3, %v1560_v14 }
 0x519   :  { %6245 = vmatmul.mubr.msk.f32.gmra.mrb[38].mxu0 %vm523_vm3, %v1561_v25  ;;  %v1563_v59 = vmax.f32 %v1521_v60, 0.0 }
 0x51a   :  { %v1562_v49 = vmax.f32 %v1516_v43, 0.0  ;;  %v6220_v31 = vpop.f32.mrb[42].mxu1  ;;  %6842 = vmatpush3.bf16.msra.mxu0 %v6839_v55 }
 0x51b   :  { %v1531_v47 = vadd.f32 %v6220_v31, %v8435_v28  ;;  %v1525_v21 = vpop.f32.mrb[43].mxu1 }
 0x51c   :  { %v1526_v10 = vadd.f32 %v1525_v21, %v8435_v28  ;;  %6247 = vmatprep.mubr.msk.f32.mxu0 %vm523_vm3, %v1562_v49 }
 0x51d   :  { %6248 = vmatmul.mubr.msk.f32.gmra.mrb[40].mxu0 %vm523_vm3, %v1563_v59  ;;  %v1565_v42 = vmax.f32 %v1531_v47, 0.0 }
 0x51e   :  { %v1564_v51 = vmax.f32 %v1526_v10, 0.0  ;;  %v6223_v44 = vpop.f32.mrb[44].mxu1 }
 0x51f   :  { %v1541_v45 = vadd.f32 %v6223_v44, %v8435_v28  ;;  %v1535_v39 = vpop.f32.mrb[45].mxu1 }
 0x520   :  { %v1536_v58 = vadd.f32 %v1535_v39, %v8435_v28  ;;  %6250 = vmatprep.mubr.msk.f32.mxu0 %vm523_vm3, %v1564_v51 }
 0x521   :  { %6251 = vmatmul.mubr.msk.f32.gmra.mrb[42].mxu0 %vm523_vm3, %v1565_v42  ;;  %v1567_v62 = vmax.f32 %v1541_v45, 0.0 }
 0x522   :  { %v1566_v55 = vmax.f32 %v1536_v58, 0.0  ;;  %v6226_v14 = vpop.f32.mrb[46].mxu1 }
 0x523   :  { %v1551_v25 = vadd.f32 %v6226_v14, %v8435_v28  ;;  %v1545_v60 = vpop.f32.mrb[47].mxu1 }
 0x524   :  { %v1546_v38 = vadd.f32 %v1545_v60, %v8435_v28  ;;  %6253 = vmatprep.mubr.msk.f32.mxu0 %vm523_vm3, %v1566_v55 }
 0x525   :  { %6254 = vmatmul.mubr.msk.f32.gmra.mrb[44].mxu0 %vm523_vm3, %v1567_v62  ;;  %v1569_v49 = vmax.f32 %v1551_v25, 0.0 }
 0x526   :  { %v1568_v43 = vmax.f32 %v1546_v38, 0.0 }
 0x528   :  { %6256 = vmatprep.mubr.msk.f32.mxu0 %vm523_vm3, %v1568_v43 }
 0x529   :  { %6257 = vmatmul.mubr.msk.f32.gmra.mrb[46].mxu0 %vm523_vm3, %v1569_v49 }
 0x52a   :  { %6275 = vmatprep.mubr.msk.f32.mxu0 %vm289_vm2, %v8335_v6  ;;  %v1592_v6 = vpop.permute.xlu0 %1591 }
 0x52d   :  { %6276 = vmatmul.mubr.msk.f32.vlgmr.msra.gmra.mrb[32].mxu0 %vm289_vm2, %v8340_v19 }
 0x52e   :  { %6278 = vmatprep.mubr.msk.f32.mxu0 %vm289_vm2, %v8351_v35 }
 0x531   :  { %6279 = vmatmul.mubr.msk.f32.gmra.mrb[34].mxu0 %vm289_vm2, %v8346_v18 }
 0x532   :  { %6281 = vmatprep.mubr.msk.f32.mxu0 %vm289_vm2, %v8358_v29 }
 0x535   :  { %6282 = vmatmul.mubr.msk.f32.gmra.mrb[36].mxu0 %vm289_vm2, %v8362_v40 }
 0x536   :  { %6284 = vmatprep.mubr.msk.f32.mxu0 %vm289_vm2, %v8370_v0 }
 0x539   :  { %6285 = vmatmul.mubr.msk.f32.gmra.mrb[38].mxu0 %vm289_vm2, %v8374_v56 }
 0x53a   :  { %6287 = vmatprep.mubr.msk.f32.mxu0 %vm289_vm2, %v8382_v12 }
 0x53d   :  { %6288 = vmatmul.mubr.msk.f32.gmra.mrb[40].mxu0 %vm289_vm2, %v8386_v2 }
 0x53e   :  { %6290 = vmatprep.mubr.msk.f32.mxu0 %vm289_vm2, %v8394_v1 }
 0x541   :  { %6291 = vmatmul.mubr.msk.f32.gmra.mrb[42].mxu0 %vm289_vm2, %v8398_v15 }
 0x542   :  { %6293 = vmatprep.mubr.msk.f32.mxu0 %vm289_vm2, %v8406_v3 }
 0x545   :  { %6294 = vmatmul.mubr.msk.f32.gmra.mrb[44].mxu0 %vm289_vm2, %v8410_v61 }
 0x546   :  { %6296 = vmatprep.mubr.msk.f32.mxu0 %vm289_vm2, %v8418_v24 }
 0x549   :  { %6297 = vmatmul.mubr.msk.f32.gmra.mrb[46].mxu0 %vm289_vm2, %v8422_v37 }
 0x600   :  { %v6277_v19 = vpop.f32.mrb[32].mxu0 }
 0x601   :  { %v8501_v18 = vadd.f32 %v6277_v19, %v1592_v6  ;;  %v1929_v35 = vpop.f32.mrb[33].mxu0 }
 0x602   :  { %v8503_v29 = vadd.f32 %v1929_v35, %v1592_v6 }
 0x604   :  { %v2008_v40 = vpack.c.bf16 %v8501_v18, %v8503_v29  ;;  %v6280_v0 = vpop.f32.mrb[34].mxu0 }
 0x605   :  { %v8507_v56 = vadd.f32 %v6280_v0, %v1592_v6  ;;  %v1939_v12 = vpop.f32.mrb[35].mxu0 }
 0x606   :  { %v8509_v2 = vadd.f32 %v1939_v12, %v1592_v6  ;;  %6299 = vmatprep.subr.bf16.mxu1 %v2008_v40 }
 0x607   :  { %6300 = vmatpush3.bf16.msra.mxu1 %v2008_v40 }
 0x608   :  { %v2009_v1 = vpack.c.bf16 %v8507_v56, %v8509_v2  ;;  %v6283_v15 = vpop.f32.mrb[36].mxu0 }
 0x609   :  { %v8513_v3 = vadd.f32 %v6283_v15, %v1592_v6  ;;  %v1949_v61 = vpop.f32.mrb[37].mxu0  ;;  %v8574_v15 = vld [vmem:[#allocation2 + $0xb8] sm:$0xff] }
 0x60a   :  { %v8515_v24 = vadd.f32 %v1949_v61, %v1592_v6  ;;  %6301 = vmatprep.subr.bf16.mxu1 %v2009_v1 }
 0x60b   :  { %6302 = vmatpush3.bf16.msra.mxu1 %v2009_v1  ;;  %v8572_v1 = vld [vmem:[#allocation2 + $0xb0] sm:$0xff] }
 0x60c   :  { %v2010_v37 = vpack.c.bf16 %v8513_v3, %v8515_v24  ;;  %v6286_v28 = vpop.f32.mrb[38].mxu0 }
 0x60d   :  { %v8519_v31 = vadd.f32 %v6286_v28, %v1592_v6  ;;  %v1959_v59 = vpop.f32.mrb[39].mxu0 }
 0x60e   :  { %v8521_v47 = vadd.f32 %v1959_v59, %v1592_v6  ;;  %6303 = vmatprep.subr.bf16.mxu1 %v2010_v37  ;;  %v8582_v59 = vld [vmem:[#allocation2 + $0xc8] sm:$0xff] }
 0x60f   :  { %6304 = vmatpush3.bf16.msra.mxu1 %v2010_v37  ;;  %v8578_v37 = vld [vmem:[#allocation2 + $0xc0] sm:$0xff] }
 0x610   :  { %v2011_v21 = vpack.c.bf16 %v8519_v31, %v8521_v47  ;;  %v6289_v10 = vpop.f32.mrb[40].mxu0  ;;  %v6847_v28 = vpack.c.bf16 %v8578_v37, %v8574_v15 }
 0x611   :  { %v8525_v51 = vadd.f32 %v6289_v10, %v1592_v6  ;;  %v1969_v44 = vpop.f32.mrb[41].mxu0 }
 0x612   :  { %v8527_v42 = vadd.f32 %v1969_v44, %v1592_v6  ;;  %6305 = vmatprep.subr.bf16.mxu1 %v2011_v21  ;;  %v8588_v44 = vld [vmem:[#allocation2 + $0xd8] sm:$0xff] }
 0x613   :  { %6306 = vmatpush3.bf16.msra.mxu1 %v2011_v21  ;;  %v8584_v21 = vld [vmem:[#allocation2 + $0xd0] sm:$0xff] }
 0x614   :  { %v2012_v45 = vpack.c.bf16 %v8525_v51, %v8527_v42  ;;  %v6292_v39 = vpop.f32.mrb[42].mxu0  ;;  %v6851_v10 = vpack.c.bf16 %v8584_v21, %v8582_v59 }
 0x615   :  { %v8531_v58 = vadd.f32 %v6292_v39, %v1592_v6  ;;  %v1979_v55 = vpop.f32.mrb[43].mxu0 }
 0x616   :  { %v8533_v14 = vadd.f32 %v1979_v55, %v1592_v6  ;;  %6307 = vmatprep.subr.bf16.mxu1 %v2012_v45 }
 0x617   :  { %6308 = vmatpush3.bf16.msra.mxu1 %v2012_v45  ;;  %v8590_v45 = vld [vmem:[#allocation2 + $0xe0] sm:$0xff] }
 0x618   :  { %v2013_v62 = vpack.c.bf16 %v8531_v58, %v8533_v14  ;;  %v6295_v25 = vpop.f32.mrb[44].mxu0  ;;  %v6855_v39 = vpack.c.bf16 %v8590_v45, %v8588_v44 }
 0x619   :  { %v8537_v60 = vadd.f32 %v6295_v25, %v1592_v6  ;;  %v1989_v38 = vpop.f32.mrb[45].mxu0 }
 0x61a   :  { %v8539_v43 = vadd.f32 %v1989_v38, %v1592_v6  ;;  %6309 = vmatprep.subr.bf16.mxu1 %v2013_v62 }
 0x61b   :  { %6310 = vmatpush3.bf16.msra.mxu1 %v2013_v62 }
 0x61c   :  { %v2014_v49 = vpack.c.bf16 %v8537_v60, %v8539_v43  ;;  %v6298_v19 = vpop.f32.mrb[46].mxu0 }
 0x61d   :  { %v8543_v35 = vadd.f32 %v6298_v19, %v1592_v6  ;;  %v1999_v40 = vpop.f32.mrb[47].mxu0 }
 0x61e   :  { %v8545_v0 = vadd.f32 %v1999_v40, %v1592_v6  ;;  %6311 = vmatprep.subr.bf16.mxu1 %v2014_v49  ;;  %v8570_v6 = vld [vmem:[#allocation2 + $0xa8] sm:$0xff] }
 0x61f   :  { %6312 = vmatpush3.bf16.msra.mxu1 %v2014_v49  ;;  %v6843_v61 = vpack.c.bf16 %v8572_v1, %v8570_v6 }
 0x620   :  { %v2015_v12 = vpack.c.bf16 %v8543_v35, %v8545_v0 }
 0x622   :  { %6313 = vmatprep.subr.bf16.mxu1 %v2015_v12 }
 0x623   :  { %6314 = vmatpush3.bf16.msra.mxu1 %v2015_v12 }
 0x624   :  { %6844 = vmatprep.subr.bf16.mxu1 %v6843_v61 }
 0x626   :  { %6316 = vmatmul.mubr.msk.bf16.vlgmr.msra.gmra.mrb[48].mxu1 %vm7894_vm1, %v9729_v27 }
 0x627   :  { %6319 = vmatprep.mubr.msk.bf16.mxu1 %vm7944_vm0, %v9729_v27  ;;  %6846 = vmatpush3.bf16.msra.mxu1 %v6843_v61 }
 0x628   :  { %6848 = vmatprep.subr.bf16.mxu1 %v6847_v28 }
 0x62b   :  { %6850 = vmatpush3.bf16.msra.mxu1 %v6847_v28 }
 0x62c   :  { %6852 = vmatprep.subr.bf16.mxu1 %v6851_v10 }
 0x62e   :  { %6320 = vmatmul.mubr.msk.bf16.gmra.mrb[52].mxu1 %vm7994_vm12, %v9729_v27 }
 0x62f   :  { %6323 = vmatprep.mubr.msk.bf16.mxu1 %vm8044_vm6, %v9729_v27  ;;  %6854 = vmatpush3.bf16.msra.mxu1 %v6851_v10 }
 0x630   :  { %6856 = vmatprep.subr.bf16.mxu1 %v6855_v39 }
 0x633   :  { %6858 = vmatpush3.bf16.msra.mxu1 %v6855_v39 }
 0x636   :  { %6324 = vmatmul.mubr.msk.bf16.gmra.mrb[56].mxu1 %vm8094_vm9, %v9729_v27 }
 0x637   :  { %6327 = vmatprep.mubr.msk.bf16.mxu1 %vm8122_vm11, %v9729_v27 }
 0x63e   :  { %6328 = vmatmul.mubr.msk.bf16.gmra.mrb[60].mxu1 %vm8132_vm7, %v9729_v27 }
 0x6f9   :  { %v6317_v55 = vpop.f32.mrb[48].mxu1 }
 0x6fa   :  { %v2050_v62 = vpop.f32.mrb[49].mxu1  ;;  %v2115_v40 = vmul.f32 %v8261_v8, %v6317_v55 }
 0x6fb   :  { %v2113_v25 = vmul.f32 %v8250_v48, %v2050_v62  ;;  %v6318_v38 = vpop.f32.mrb[50].mxu1 }
 0x6fc   :  { %v2053_v49 = vpop.f32.mrb[51].mxu1  ;;  %v2116_v12 = vmul.f32 %v8257_v52, %v6318_v38 }
 0x6fd   :  { %v2114_v19 = vmul.f32 %v8253_v11, %v2053_v49  ;;  %2145 = vrot.lane.b32.xlu1 %v2113_v25, %s7418_s0 }
 0x6ff   :  { %2147 = vrot.lane.b32.xlu0 %v2114_v19, %s7418_s0 }
 0x701   :  { %2149 = vrot.lane.b32.xlu1 %v2115_v40, %s7418_s0  ;;  %v6321_v61 = vpop.f32.mrb[52].mxu1 }
 0x702   :  { %v2066_v28 = vpop.f32.mrb[53].mxu1  ;;  %v2119_v55 = vmul.f32 %v8276_v30, %v6321_v61 }
 0x703   :  { %v2117_v10 = vmul.f32 %v8268_v17, %v2066_v28  ;;  %2151 = vrot.lane.b32.xlu0 %v2116_v12, %s7418_s0  ;;  %v6322_v39 = vpop.f32.mrb[54].mxu1 }
 0x704   :  { %v2069_v62 = vpop.f32.mrb[55].mxu1  ;;  %v2120_v25 = vmul.f32 %v8272_v9, %v6322_v39 }
 0x705   :  { %v2118_v49 = vmul.f32 %v8265_v41, %v2069_v62  ;;  %2153 = vrot.lane.b32.xlu1 %v2117_v10, %s7418_s0 }
 0x707   :  { %2155 = vrot.lane.b32.xlu0 %v2118_v49, %s7418_s0 }
 0x709   :  { %2157 = vrot.lane.b32.xlu1 %v2119_v55, %s7418_s0  ;;  %v6325_v38 = vpop.f32.mrb[56].mxu1 }
 0x70a   :  { %v2082_v19 = vpop.f32.mrb[57].mxu1  ;;  %v2123_v61 = vmul.f32 %v8292_v46, %v6325_v38 }
 0x70b   :  { %v2121_v40 = vmul.f32 %v8284_v16, %v2082_v19  ;;  %2159 = vrot.lane.b32.xlu0 %v2120_v25, %s7418_s0  ;;  %v6326_v12 = vpop.f32.mrb[58].mxu1 }
 0x70c   :  { %v2085_v28 = vpop.f32.mrb[59].mxu1  ;;  %v2124_v10 = vmul.f32 %v8288_v34, %v6326_v12  ;;  %v7235_v12 = vpack.i.bf16 %v8572_v1, %v8570_v6  ;;  %v7255_v6 = vpack.i.bf16 %v8584_v21, %v8582_v59  ;;  %v7260_v1 = vpack.i.bf16 %v8590_v45, %v8588_v44 }
 0x70d   :  { %v2122_v62 = vmul.f32 %v8280_v50, %v2085_v28  ;;  %2161 = vrot.lane.b32.xlu1 %v2121_v40, %s7418_s0 }
 0x70f   :  { %2163 = vrot.lane.b32.xlu0 %v2122_v62, %s7418_s0  ;;  %v8627_v62 = vld [vmem:[#allocation2 + $0xc8] sm:$0x3] }
 0x711   :  { %2165 = vrot.lane.b32.xlu1 %v2123_v61, %s7418_s0  ;;  %v6329_v39 = vpop.f32.mrb[60].mxu1  ;;  %v7240_v61 = vpack.i.bf16 %v8578_v37, %v8574_v15 }
 0x712   :  { %v2098_v49 = vpop.f32.mrb[61].mxu1  ;;  %v2127_v38 = vmul.f32 %v8308_v57, %v6329_v39 }
 0x713   :  { %v2125_v55 = vmul.f32 %v8300_v7, %v2098_v49  ;;  %2167 = vrot.lane.b32.xlu0 %v2124_v10, %s7418_s0  ;;  %v6330_v25 = vpop.f32.mrb[62].mxu1  ;;  %v2237_v10 = vrot.slane %v8627_v62, %v7532_v33 }
 0x714   :  { %v2101_v19 = vpop.f32.mrb[63].mxu1  ;;  %v2128_v40 = vmul.f32 %v8304_v20, %v6330_v25 }
 0x715   :  { %v2126_v28 = vmul.f32 %v8296_v53, %v2101_v19  ;;  %2169 = vrot.lane.b32.xlu1 %v2125_v55, %s7418_s0 }
 0x717   :  { %2171 = vrot.lane.b32.xlu0 %v2126_v28, %s7418_s0 }
 0x719   :  { %2173 = vrot.lane.b32.xlu1 %v2127_v38, %s7418_s0 }
 0x71b   :  { %2175 = vrot.lane.b32.xlu0 %v2128_v40, %s7418_s0 }
 0x71d   :  { %7236 = vrot.lane.b32.xlu1 %v7235_v12, %s7413_s9 }
 0x71f   :  { %7241 = vrot.lane.b32.xlu0 %v7240_v61, %s7413_s9 }
 0x721   :  { %2239 = vrot.lane.b32.xlu1 %v2237_v10, %s7413_s9 }
 0x723   :  { %7246 = vrot.lane.b32.xlu0 %v7235_v12, %s7414_s2 }
 0x725   :  { %7251 = vrot.lane.b32.xlu1 %v7240_v61, %s7414_s2 }
 0x727   :  { %7256 = vrot.lane.b32.xlu0 %v7255_v6, %s7414_s2 }
 0x729   :  { %7261 = vrot.lane.b32.xlu1 %v7260_v1, %s7414_s2 }
 0x76f   :  { %v2146_v15 = vpop.permute.xlu1 %2145 }
 0x770   :  { %v8647_v37 = vsel %vm523_vm3, %v8503_v29, %v2146_v15 }
 0x771   :  { %v2218_v39 = vmax.f32 %v8647_v37, 0.0  ;;  %v2148_v49 = vpop.permute.xlu0 %2147 }
 0x772   :  { %v8652_v59 = vsel %vm523_vm3, %v8501_v18, %v2148_v49 }
 0x773   :  { %v2219_v21 = vmax.f32 %v8652_v59, 0.0  ;;  %6347 = vmatprep.mubr.msk.f32.mxu1 %vm289_vm2, %v2218_v39  ;;  %v2150_v44 = vpop.permute.xlu1 %2149 }
 0x774   :  { %v8658_v45 = vsel %vm523_vm3, %v8509_v2, %v2150_v44 }
 0x775   :  { %v2220_v55 = vmax.f32 %v8658_v45, 0.0  ;;  %6348 = vmatmul.mubr.msk.f32.vlgmr.msra.gmra.mrb[64].mxu1 %vm289_vm2, %v2219_v21  ;;  %v2152_v29 = vpop.permute.xlu0 %2151 }
 0x776   :  { %v8664_v25 = vsel %vm523_vm3, %v8507_v56, %v2152_v29 }
 0x777   :  { %v2221_v18 = vmax.f32 %v8664_v25, 0.0  ;;  %6350 = vmatprep.mubr.msk.f32.mxu1 %vm289_vm2, %v2220_v55  ;;  %v2154_v19 = vpop.permute.xlu1 %2153 }
 0x778   :  { %v8670_v28 = vsel %vm523_vm3, %v8515_v24, %v2154_v19 }
 0x779   :  { %v2222_v2 = vmax.f32 %v8670_v28, 0.0  ;;  %6351 = vmatmul.mubr.msk.f32.gmra.mrb[66].mxu1 %vm289_vm2, %v2221_v18  ;;  %v2156_v38 = vpop.permute.xlu0 %2155 }
 0x77a   :  { %v8676_v40 = vsel %vm523_vm3, %v8513_v3, %v2156_v38 }
 0x77b   :  { %v2223_v56 = vmax.f32 %v8676_v40, 0.0  ;;  %6353 = vmatprep.mubr.msk.f32.mxu1 %vm289_vm2, %v2222_v2  ;;  %v2158_v12 = vpop.permute.xlu1 %2157 }
 0x77c   :  { %v8682_v61 = vsel %vm523_vm3, %v8521_v47, %v2158_v12 }
 0x77d   :  { %v2224_v24 = vmax.f32 %v8682_v61, 0.0  ;;  %6354 = vmatmul.mubr.msk.f32.gmra.mrb[68].mxu1 %vm289_vm2, %v2223_v56  ;;  %v2160_v10 = vpop.permute.xlu0 %2159 }
 0x77e   :  { %v8688_v6 = vsel %vm523_vm3, %v8519_v31, %v2160_v10 }
 0x77f   :  { %v2225_v3 = vmax.f32 %v8688_v6, 0.0  ;;  %6356 = vmatprep.mubr.msk.f32.mxu1 %vm289_vm2, %v2224_v24  ;;  %v2162_v1 = vpop.permute.xlu1 %2161 }
 0x780   :  { %v8694_v15 = vsel %vm523_vm3, %v8527_v42, %v2162_v1 }
 0x781   :  { %v2226_v47 = vmax.f32 %v8694_v15, 0.0  ;;  %6357 = vmatmul.mubr.msk.f32.gmra.mrb[70].mxu1 %vm289_vm2, %v2225_v3  ;;  %v2164_v39 = vpop.permute.xlu0 %2163 }
 0x782   :  { %v8700_v49 = vsel %vm523_vm3, %v8525_v51, %v2164_v39 }
 0x783   :  { %v2227_v31 = vmax.f32 %v8700_v49, 0.0  ;;  %6359 = vmatprep.mubr.msk.f32.mxu1 %vm289_vm2, %v2226_v47  ;;  %v2166_v21 = vpop.permute.xlu1 %2165 }
 0x784   :  { %v8706_v44 = vsel %vm523_vm3, %v8533_v14, %v2166_v21 }
 0x785   :  { %v2228_v42 = vmax.f32 %v8706_v44, 0.0  ;;  %6360 = vmatmul.mubr.msk.f32.gmra.mrb[72].mxu1 %vm289_vm2, %v2227_v31  ;;  %v2168_v55 = vpop.permute.xlu0 %2167 }
 0x786   :  { %v8712_v29 = vsel %vm523_vm3, %v8531_v58, %v2168_v55 }
 0x787   :  { %v2229_v51 = vmax.f32 %v8712_v29, 0.0  ;;  %6362 = vmatprep.mubr.msk.f32.mxu1 %vm289_vm2, %v2228_v42  ;;  %v2170_v18 = vpop.permute.xlu1 %2169 }
 0x788   :  { %v8718_v19 = vsel %vm523_vm3, %v8539_v43, %v2170_v18 }
 0x789   :  { %v2230_v14 = vmax.f32 %v8718_v19, 0.0  ;;  %6363 = vmatmul.mubr.msk.f32.gmra.mrb[74].mxu1 %vm289_vm2, %v2229_v51  ;;  %v2172_v2 = vpop.permute.xlu0 %2171 }
 0x78a   :  { %v8724_v38 = vsel %vm523_vm3, %v8537_v60, %v2172_v2 }
 0x78b   :  { %v2231_v58 = vmax.f32 %v8724_v38, 0.0  ;;  %6365 = vmatprep.mubr.msk.f32.mxu1 %vm289_vm2, %v2230_v14  ;;  %v2174_v56 = vpop.permute.xlu1 %2173  ;;  %v2454_v14 = vrot.slane %v8627_v62, %v7539_v36 }
 0x78c   :  { %v8730_v12 = vsel %vm523_vm3, %v8545_v0, %v2174_v56 }
 0x78d   :  { %v2232_v43 = vmax.f32 %v8730_v12, 0.0  ;;  %6366 = vmatmul.mubr.msk.f32.gmra.mrb[76].mxu1 %vm289_vm2, %v2231_v58  ;;  %v2176_v24 = vpop.permute.xlu0 %2175  ;;  %2472 = vrot.lane.b32.xlu0 %v2454_v14, %s7413_s9 }
 0x78e   :  { %v8736_v10 = vsel %vm523_vm3, %v8543_v35, %v2176_v24 }
 0x78f   :  { %v2233_v60 = vmax.f32 %v8736_v10, 0.0  ;;  %6368 = vmatprep.mubr.msk.f32.mxu1 %vm289_vm2, %v2232_v43  ;;  %v7237_v3 = vpop.permute.xlu1 %7236 }
 0x790   :  { %v7239_v1 = vunpack.i.h.bf16 %v7237_v3  ;;  %v7238_v47 = vunpack.i.l.bf16 %v7237_v3 }
 0x791   :  { %6369 = vmatmul.mubr.msk.f32.gmra.mrb[78].mxu1 %vm289_vm2, %v2233_v60  ;;  %v7242_v0 = vpop.permute.xlu0 %7241 }
 0x792   :  { %6459 = vmatprep.mubr.msk.bf16.mxu1 %vm8118_vm8, %v9729_v27  ;;  %v6859_v39 = vpack.c.bf16 %v7239_v1, %v7238_v47  ;;  %v7244_v31 = vunpack.i.h.bf16 %v7242_v0  ;;  %v7243_v21 = vunpack.i.l.bf16 %v7242_v0 }
 0x793   :  { %v8747_v2 = vpop.permute.xlu1 %2239 }
 0x794   :  { %6860 = vmatprep.subr.bf16.mxu0 %v6859_v39  ;;  %v6863_v35 = vpack.c.bf16 %v7244_v31, %v7243_v21 }
 0x795   :  { %6862 = vmatpush3.bf16.msra.mxu0 %v6859_v39  ;;  %v7247_v42 = vpop.permute.xlu0 %7246 }
 0x796   :  { %6864 = vmatprep.subr.bf16.mxu0 %v6863_v35  ;;  %v7249_v55 = vunpack.i.h.bf16 %v7247_v42  ;;  %v7248_v51 = vunpack.i.l.bf16 %v7247_v42 }
 0x797   :  { %v7252_v58 = vpop.permute.xlu1 %7251 }
 0x798   :  { %v6867_v18 = vpack.c.bf16 %v7249_v55, %v7248_v51  ;;  %v7254_v60 = vunpack.i.h.bf16 %v7252_v58  ;;  %v7253_v3 = vunpack.i.l.bf16 %v7252_v58 }
 0x799   :  { %6866 = vmatpush3.bf16.msra.mxu0 %v6863_v35  ;;  %v7257_v1 = vpop.permute.xlu0 %7256 }
 0x79a   :  { %6868 = vmatprep.subr.bf16.mxu0 %v6867_v18  ;;  %v7259_v31 = vunpack.i.h.bf16 %v7257_v1  ;;  %v7258_v21 = vunpack.i.l.bf16 %v7257_v1  ;;  %v6871_v55 = vpack.c.bf16 %v7254_v60, %v7253_v3 }
 0x79b   :  { %v7262_v14 = vpop.permute.xlu1 %7261 }
 0x848   :  { %v6349_v56 = vpop.f32.mrb[64].mxu1 }
 0x849   :  { %v2362_v43 = vadd.f32 %v6349_v56, %v8747_v2  ;;  %v2356_v24 = vpop.f32.mrb[65].mxu1 }
 0x84a   :  { %v2357_v47 = vadd.f32 %v2356_v24, %v8747_v2  ;;  %v6875_v24 = vpack.c.bf16 %v7259_v31, %v7258_v21 }
 0x84b   :  { %v2436_v35 = vmax.f32 %v2362_v43, 0.0  ;;  %v7264_v43 = vunpack.i.h.bf16 %v7262_v14 }
 0x84c   :  { %v2435_v0 = vmax.f32 %v2357_v47, 0.0  ;;  %v6352_v39 = vpop.f32.mrb[66].mxu1 }
 0x84d   :  { %v2372_v62 = vadd.f32 %v6352_v39, %v8747_v2  ;;  %v2366_v42 = vpop.f32.mrb[67].mxu1  ;;  %v7263_v39 = vunpack.i.l.bf16 %v7262_v14 }
 0x84e   :  { %v2367_v51 = vadd.f32 %v2366_v42, %v8747_v2  ;;  %6379 = vmatprep.mubr.msk.f32.mxu0 %vm523_vm3, %v2435_v0 }
 0x84f   :  { %6380 = vmatmul.mubr.msk.f32.vlgmr.msra.gmra.mrb[48].mxu0 %vm523_vm3, %v2436_v35  ;;  %v2438_v47 = vmax.f32 %v2372_v62, 0.0  ;;  %v6879_v21 = vpack.c.bf16 %v7264_v43, %v7263_v39 }
 0x850   :  { %v2437_v58 = vmax.f32 %v2367_v51, 0.0  ;;  %6870 = vmatpush3.bf16.msra.mxu0 %v6867_v18  ;;  %v6355_v56 = vpop.f32.mrb[68].mxu1 }
 0x851   :  { %v2382_v5 = vadd.f32 %v6355_v56, %v8747_v2  ;;  %v2376_v1 = vpop.f32.mrb[69].mxu1  ;;  %6872 = vmatprep.subr.bf16.mxu0 %v6871_v55 }
 0x852   :  { %v2377_v60 = vadd.f32 %v2376_v1, %v8747_v2  ;;  %6382 = vmatprep.mubr.msk.f32.mxu0 %vm523_vm3, %v2437_v58 }
 0x853   :  { %6383 = vmatmul.mubr.msk.f32.gmra.mrb[50].mxu0 %vm523_vm3, %v2438_v47  ;;  %v2440_v35 = vmax.f32 %v2382_v5, 0.0 }
 0x854   :  { %v2439_v3 = vmax.f32 %v2377_v60, 0.0  ;;  %v6358_v0 = vpop.f32.mrb[70].mxu1  ;;  %6874 = vmatpush3.bf16.msra.mxu0 %v6871_v55 }
 0x855   :  { %v2392_v18 = vadd.f32 %v6358_v0, %v8747_v2  ;;  %v2386_v31 = vpop.f32.mrb[71].mxu1  ;;  %6876 = vmatprep.subr.bf16.mxu0 %v6875_v24 }
 0x856   :  { %v2387_v62 = vadd.f32 %v2386_v31, %v8747_v2  ;;  %6385 = vmatprep.mubr.msk.f32.mxu0 %vm523_vm3, %v2439_v3 }
 0x857   :  { %6386 = vmatmul.mubr.msk.f32.gmra.mrb[52].mxu0 %vm523_vm3, %v2440_v35  ;;  %v2442_v14 = vmax.f32 %v2392_v18, 0.0 }
 0x858   :  { %v2441_v42 = vmax.f32 %v2387_v62, 0.0  ;;  %v6361_v51 = vpop.f32.mrb[72].mxu1  ;;  %6878 = vmatpush3.bf16.msra.mxu0 %v6875_v24 }
 0x859   :  { %v2402_v58 = vadd.f32 %v6361_v51, %v8747_v2  ;;  %v2396_v56 = vpop.f32.mrb[73].mxu1  ;;  %6880 = vmatprep.subr.bf16.mxu0 %v6879_v21 }
 0x85a   :  { %v2397_v5 = vadd.f32 %v2396_v56, %v8747_v2  ;;  %6388 = vmatprep.mubr.msk.f32.mxu0 %vm523_vm3, %v2441_v42 }
 0x85b   :  { %6389 = vmatmul.mubr.msk.f32.gmra.mrb[54].mxu0 %vm523_vm3, %v2442_v14  ;;  %v2444_v1 = vmax.f32 %v2402_v58, 0.0 }
 0x85c   :  { %v2443_v55 = vmax.f32 %v2397_v5, 0.0  ;;  %v6364_v47 = vpop.f32.mrb[74].mxu1  ;;  %6882 = vmatpush3.bf16.msra.mxu0 %v6879_v21 }
 0x85d   :  { %v2412_v43 = vadd.f32 %v6364_v47, %v8747_v2  ;;  %v2406_v39 = vpop.f32.mrb[75].mxu1 }
 0x85e   :  { %v2407_v24 = vadd.f32 %v2406_v39, %v8747_v2  ;;  %6391 = vmatprep.mubr.msk.f32.mxu0 %vm523_vm3, %v2443_v55 }
 0x85f   :  { %6392 = vmatmul.mubr.msk.f32.gmra.mrb[56].mxu0 %vm523_vm3, %v2444_v1  ;;  %v2446_v0 = vmax.f32 %v2412_v43, 0.0 }
 0x860   :  { %v2445_v60 = vmax.f32 %v2407_v24, 0.0  ;;  %v6367_v3 = vpop.f32.mrb[76].mxu1 }
 0x861   :  { %v2422_v35 = vadd.f32 %v6367_v3, %v8747_v2  ;;  %v2416_v18 = vpop.f32.mrb[77].mxu1 }
 0x862   :  { %v2417_v31 = vadd.f32 %v2416_v18, %v8747_v2  ;;  %6394 = vmatprep.mubr.msk.f32.mxu0 %vm523_vm3, %v2445_v60 }
 0x863   :  { %6395 = vmatmul.mubr.msk.f32.gmra.mrb[58].mxu0 %vm523_vm3, %v2446_v0  ;;  %v2448_v42 = vmax.f32 %v2422_v35, 0.0 }
 0x864   :  { %v2447_v21 = vmax.f32 %v2417_v31, 0.0  ;;  %v6370_v62 = vpop.f32.mrb[78].mxu1 }
 0x865   :  { %v2432_v51 = vadd.f32 %v6370_v62, %v8747_v2  ;;  %v2426_v14 = vpop.f32.mrb[79].mxu1 }
 0x866   :  { %v2427_v58 = vadd.f32 %v2426_v14, %v8747_v2  ;;  %6397 = vmatprep.mubr.msk.f32.mxu0 %vm523_vm3, %v2447_v21 }
 0x867   :  { %6398 = vmatmul.mubr.msk.f32.gmra.mrb[60].mxu0 %vm523_vm3, %v2448_v42  ;;  %v2450_v5 = vmax.f32 %v2432_v51, 0.0 }
 0x868   :  { %v2449_v56 = vmax.f32 %v2427_v58, 0.0 }
 0x86a   :  { %6400 = vmatprep.mubr.msk.f32.mxu0 %vm523_vm3, %v2449_v56 }
 0x86b   :  { %6401 = vmatmul.mubr.msk.f32.gmra.mrb[62].mxu0 %vm523_vm3, %v2450_v5 }
 0x86c   :  { %6419 = vmatprep.mubr.msk.f32.mxu0 %vm289_vm2, %v8647_v37  ;;  %v2473_v37 = vpop.permute.xlu0 %2472 }
 0x86f   :  { %6420 = vmatmul.mubr.msk.f32.vlgmr.msra.gmra.mrb[48].mxu0 %vm289_vm2, %v8652_v59 }
 0x870   :  { %6422 = vmatprep.mubr.msk.f32.mxu0 %vm289_vm2, %v8658_v45 }
 0x873   :  { %6423 = vmatmul.mubr.msk.f32.gmra.mrb[50].mxu0 %vm289_vm2, %v8664_v25 }
 0x874   :  { %6425 = vmatprep.mubr.msk.f32.mxu0 %vm289_vm2, %v8670_v28 }
 0x877   :  { %6426 = vmatmul.mubr.msk.f32.gmra.mrb[52].mxu0 %vm289_vm2, %v8676_v40 }
 0x878   :  { %6428 = vmatprep.mubr.msk.f32.mxu0 %vm289_vm2, %v8682_v61 }
 0x87b   :  { %6429 = vmatmul.mubr.msk.f32.gmra.mrb[54].mxu0 %vm289_vm2, %v8688_v6 }
 0x87c   :  { %6431 = vmatprep.mubr.msk.f32.mxu0 %vm289_vm2, %v8694_v15 }
 0x87f   :  { %6432 = vmatmul.mubr.msk.f32.gmra.mrb[56].mxu0 %vm289_vm2, %v8700_v49 }
 0x880   :  { %6434 = vmatprep.mubr.msk.f32.mxu0 %vm289_vm2, %v8706_v44 }
 0x883   :  { %6435 = vmatmul.mubr.msk.f32.gmra.mrb[58].mxu0 %vm289_vm2, %v8712_v29 }
 0x884   :  { %6437 = vmatprep.mubr.msk.f32.mxu0 %vm289_vm2, %v8718_v19 }
 0x887   :  { %6438 = vmatmul.mubr.msk.f32.gmra.mrb[60].mxu0 %vm289_vm2, %v8724_v38 }
 0x888   :  { %6440 = vmatprep.mubr.msk.f32.mxu0 %vm289_vm2, %v8730_v12 }
 0x88b   :  { %6441 = vmatmul.mubr.msk.f32.gmra.mrb[62].mxu0 %vm289_vm2, %v8736_v10 }
 0x942   :  { %v6421_v59 = vpop.f32.mrb[48].mxu0 }
 0x943   :  { %v8813_v45 = vadd.f32 %v6421_v59, %v2473_v37  ;;  %v2810_v25 = vpop.f32.mrb[49].mxu0 }
 0x944   :  { %v8815_v28 = vadd.f32 %v2810_v25, %v2473_v37 }
 0x946   :  { %v2889_v40 = vpack.c.bf16 %v8813_v45, %v8815_v28  ;;  %v6424_v61 = vpop.f32.mrb[50].mxu0 }
 0x947   :  { %v8819_v6 = vadd.f32 %v6424_v61, %v2473_v37  ;;  %v2820_v15 = vpop.f32.mrb[51].mxu0 }
 0x948   :  { %v8821_v49 = vadd.f32 %v2820_v15, %v2473_v37  ;;  %6443 = vmatprep.subr.bf16.mxu1 %v2889_v40  ;;  %v8884_v15 = vld [vmem:[#allocation2 + $0xf0] sm:$0xff] }
 0x949   :  { %6444 = vmatpush3.bf16.msra.mxu1 %v2889_v40 }
 0x94a   :  { %v2890_v44 = vpack.c.bf16 %v8819_v6, %v8821_v49  ;;  %v6427_v29 = vpop.f32.mrb[52].mxu0 }
 0x94b   :  { %v8825_v19 = vadd.f32 %v6427_v29, %v2473_v37  ;;  %v2830_v38 = vpop.f32.mrb[53].mxu0 }
 0x94c   :  { %v8827_v12 = vadd.f32 %v2830_v38, %v2473_v37  ;;  %6445 = vmatprep.subr.bf16.mxu1 %v2890_v44  ;;  %v8890_v38 = vld [vmem:[#allocation2 + $0x100] sm:$0xff] }
 0x94d   :  { %6446 = vmatpush3.bf16.msra.mxu1 %v2890_v44  ;;  %v8886_v44 = vld [vmem:[#allocation2 + $0xf8] sm:$0xff] }
 0x94e   :  { %v2891_v10 = vpack.c.bf16 %v8825_v19, %v8827_v12  ;;  %v6430_v2 = vpop.f32.mrb[54].mxu0 }
 0x94f   :  { %v8831_v55 = vadd.f32 %v6430_v2, %v2473_v37  ;;  %v2840_v47 = vpop.f32.mrb[55].mxu0  ;;  %v8894_v2 = vld [vmem:[#allocation2 + $0x110] sm:$0xff] }
 0x950   :  { %v8833_v1 = vadd.f32 %v2840_v47, %v2473_v37  ;;  %6447 = vmatprep.subr.bf16.mxu1 %v2891_v10  ;;  %v6887_v47 = vpack.c.bf16 %v8890_v38, %v8886_v44 }
 0x951   :  { %6448 = vmatpush3.bf16.msra.mxu1 %v2891_v10  ;;  %v8892_v10 = vld [vmem:[#allocation2 + $0x108] sm:$0xff] }
 0x952   :  { %v2892_v43 = vpack.c.bf16 %v8831_v55, %v8833_v1  ;;  %v6433_v39 = vpop.f32.mrb[56].mxu0 }
 0x953   :  { %v8837_v24 = vadd.f32 %v6433_v39, %v2473_v37  ;;  %v2850_v60 = vpop.f32.mrb[57].mxu0  ;;  %v8900_v39 = vld [vmem:[#allocation2 + $0x118] sm:$0xff] }
 0x954   :  { %v8839_v3 = vadd.f32 %v2850_v60, %v2473_v37  ;;  %6449 = vmatprep.subr.bf16.mxu1 %v2892_v43  ;;  %v8902_v60 = vld [vmem:[#allocation2 + $0x120] sm:$0xff] }
 0x955   :  { %6450 = vmatpush3.bf16.msra.mxu1 %v2892_v43  ;;  %v7285_v43 = vpack.i.bf16 %v8894_v2, %v8892_v10 }
 0x956   :  { %v2893_v0 = vpack.c.bf16 %v8837_v24, %v8839_v3  ;;  %v6436_v35 = vpop.f32.mrb[58].mxu0 }
 0x957   :  { %v8843_v18 = vadd.f32 %v6436_v35, %v2473_v37  ;;  %v2860_v31 = vpop.f32.mrb[59].mxu0  ;;  %v6891_v35 = vpack.c.bf16 %v8894_v2, %v8892_v10 }
 0x958   :  { %v8845_v21 = vadd.f32 %v2860_v31, %v2473_v37  ;;  %6451 = vmatprep.subr.bf16.mxu1 %v2893_v0  ;;  %v6895_v31 = vpack.c.bf16 %v8902_v60, %v8900_v39 }
 0x959   :  { %6452 = vmatpush3.bf16.msra.mxu1 %v2893_v0 }
 0x95a   :  { %v2894_v62 = vpack.c.bf16 %v8843_v18, %v8845_v21  ;;  %v6439_v42 = vpop.f32.mrb[60].mxu0 }
 0x95b   :  { %v8849_v51 = vadd.f32 %v6439_v42, %v2473_v37  ;;  %v2870_v14 = vpop.f32.mrb[61].mxu0 }
 0x95c   :  { %v8851_v58 = vadd.f32 %v2870_v14, %v2473_v37  ;;  %6453 = vmatprep.subr.bf16.mxu1 %v2894_v62 }
 0x95d   :  { %6454 = vmatpush3.bf16.msra.mxu1 %v2894_v62 }
 0x95e   :  { %v2895_v56 = vpack.c.bf16 %v8849_v51, %v8851_v58  ;;  %v6442_v5 = vpop.f32.mrb[62].mxu0 }
 0x95f   :  { %v8855_v59 = vadd.f32 %v6442_v5, %v2473_v37  ;;  %v2880_v25 = vpop.f32.mrb[63].mxu0 }
 0x960   :  { %v8857_v40 = vadd.f32 %v2880_v25, %v2473_v37  ;;  %6455 = vmatprep.subr.bf16.mxu1 %v2895_v56  ;;  %v8882_v37 = vld [vmem:[#allocation2 + $0xe8] sm:$0xff] }
 0x961   :  { %6456 = vmatpush3.bf16.msra.mxu1 %v2895_v56  ;;  %v6883_v29 = vpack.c.bf16 %v8884_v15, %v8882_v37 }
 0x962   :  { %v2896_v61 = vpack.c.bf16 %v8855_v59, %v8857_v40 }
 0x964   :  { %6457 = vmatprep.subr.bf16.mxu1 %v2896_v61 }
 0x965   :  { %6458 = vmatpush3.bf16.msra.mxu1 %v2896_v61 }
 0x966   :  { %6884 = vmatprep.subr.bf16.mxu1 %v6883_v29 }
 0x968   :  { %6460 = vmatmul.mubr.msk.bf16.vlgmr.msra.gmra.mrb[80].mxu1 %vm7894_vm1, %v9729_v27 }
 0x969   :  { %6463 = vmatprep.mubr.msk.bf16.mxu1 %vm7944_vm0, %v9729_v27  ;;  %6886 = vmatpush3.bf16.msra.mxu1 %v6883_v29 }
 0x96a   :  { %6888 = vmatprep.subr.bf16.mxu1 %v6887_v47 }
 0x96d   :  { %6890 = vmatpush3.bf16.msra.mxu1 %v6887_v47 }
 0x96e   :  { %6892 = vmatprep.subr.bf16.mxu1 %v6891_v35 }
 0x970   :  { %6464 = vmatmul.mubr.msk.bf16.gmra.mrb[84].mxu1 %vm7994_vm12, %v9729_v27 }
 0x971   :  { %6467 = vmatprep.mubr.msk.bf16.mxu1 %vm8044_vm6, %v9729_v27  ;;  %6894 = vmatpush3.bf16.msra.mxu1 %v6891_v35 }
 0x972   :  { %6896 = vmatprep.subr.bf16.mxu1 %v6895_v31 }
 0x975   :  { %6898 = vmatpush3.bf16.msra.mxu1 %v6895_v31 }
 0x978   :  { %6468 = vmatmul.mubr.msk.bf16.gmra.mrb[88].mxu1 %vm8094_vm9, %v9729_v27 }
 0x979   :  { %6471 = vmatprep.mubr.msk.bf16.mxu1 %vm8122_vm11, %v9729_v27 }
 0x980   :  { %6472 = vmatmul.mubr.msk.bf16.gmra.mrb[92].mxu1 %vm8132_vm7, %v9729_v27 }
 0xa3b   :  { %v6461_v62 = vpop.f32.mrb[80].mxu1 }
 0xa3c   :  { %v2931_v42 = vpop.f32.mrb[81].mxu1  ;;  %v2996_v61 = vmul.f32 %v8261_v8, %v6461_v62 }
 0xa3d   :  { %v2994_v14 = vmul.f32 %v8250_v48, %v2931_v42  ;;  %v6462_v56 = vpop.f32.mrb[82].mxu1 }
 0xa3e   :  { %v2934_v5 = vpop.f32.mrb[83].mxu1  ;;  %v2997_v29 = vmul.f32 %v8257_v52, %v6462_v56 }
 0xa3f   :  { %v2995_v25 = vmul.f32 %v8253_v11, %v2934_v5  ;;  %3026 = vrot.lane.b32.xlu1 %v2994_v14, %s7418_s0 }
 0xa41   :  { %3028 = vrot.lane.b32.xlu0 %v2995_v25, %s7418_s0 }
 0xa43   :  { %3030 = vrot.lane.b32.xlu1 %v2996_v61, %s7418_s0  ;;  %v6465_v47 = vpop.f32.mrb[84].mxu1 }
 0xa44   :  { %v2947_v35 = vpop.f32.mrb[85].mxu1  ;;  %v3000_v62 = vmul.f32 %v8276_v30, %v6465_v47 }
 0xa45   :  { %v2998_v31 = vmul.f32 %v8268_v17, %v2947_v35  ;;  %3032 = vrot.lane.b32.xlu0 %v2997_v29, %s7418_s0  ;;  %v6466_v42 = vpop.f32.mrb[86].mxu1 }
 0xa46   :  { %v2950_v0 = vpop.f32.mrb[87].mxu1  ;;  %v3001_v14 = vmul.f32 %v8272_v9, %v6466_v42 }
 0xa47   :  { %v2999_v5 = vmul.f32 %v8265_v41, %v2950_v0  ;;  %3034 = vrot.lane.b32.xlu1 %v2998_v31, %s7418_s0 }
 0xa49   :  { %3036 = vrot.lane.b32.xlu0 %v2999_v5, %s7418_s0 }
 0xa4b   :  { %3038 = vrot.lane.b32.xlu1 %v3000_v62, %s7418_s0  ;;  %v6469_v56 = vpop.f32.mrb[88].mxu1 }
 0xa4c   :  { %v2963_v25 = vpop.f32.mrb[89].mxu1  ;;  %v3004_v47 = vmul.f32 %v8292_v46, %v6469_v56 }
 0xa4d   :  { %v3002_v61 = vmul.f32 %v8284_v16, %v2963_v25  ;;  %3040 = vrot.lane.b32.xlu0 %v3001_v14, %s7418_s0  ;;  %v6470_v29 = vpop.f32.mrb[90].mxu1 }
 0xa4e   :  { %v2966_v35 = vpop.f32.mrb[91].mxu1  ;;  %v3005_v31 = vmul.f32 %v8288_v34, %v6470_v29  ;;  %v7265_v29 = vpack.i.bf16 %v8884_v15, %v8882_v37  ;;  %v9730_v37 = vpack.i.bf16 %v8902_v60, %v8900_v39 }
 0xa4f   :  { %v3003_v0 = vmul.f32 %v8280_v50, %v2966_v35  ;;  %3042 = vrot.lane.b32.xlu1 %v3002_v61, %s7418_s0 }
 0xa51   :  { %3044 = vrot.lane.b32.xlu0 %v3003_v0, %s7418_s0  ;;  %v8943_v0 = vld [vmem:[#allocation2 + $0x108] sm:$0x3] }
 0xa53   :  { %3046 = vrot.lane.b32.xlu1 %v3004_v47, %s7418_s0  ;;  %v6473_v42 = vpop.f32.mrb[92].mxu1  ;;  %v7270_v47 = vpack.i.bf16 %v8890_v38, %v8886_v44 }
 0xa54   :  { %v2979_v5 = vpop.f32.mrb[93].mxu1  ;;  %v3008_v56 = vmul.f32 %v8308_v57, %v6473_v42 }
 0xa55   :  { %v3006_v62 = vmul.f32 %v8300_v7, %v2979_v5  ;;  %3048 = vrot.lane.b32.xlu0 %v3005_v31, %s7418_s0  ;;  %v6474_v14 = vpop.f32.mrb[94].mxu1  ;;  %v3118_v31 = vrot.slane %v8943_v0, %v7532_v33 }
 0xa56   :  { %v2982_v25 = vpop.f32.mrb[95].mxu1  ;;  %v3009_v61 = vmul.f32 %v8304_v20, %v6474_v14 }
 0xa57   :  { %v3007_v35 = vmul.f32 %v8296_v53, %v2982_v25  ;;  %3050 = vrot.lane.b32.xlu1 %v3006_v62, %s7418_s0 }
 0xa59   :  { %3052 = vrot.lane.b32.xlu0 %v3007_v35, %s7418_s0 }
 0xa5b   :  { %3054 = vrot.lane.b32.xlu1 %v3008_v56, %s7418_s0 }
 0xa5d   :  { %3056 = vrot.lane.b32.xlu0 %v3009_v61, %s7418_s0 }
 0xa5f   :  { %7266 = vrot.lane.b32.xlu1 %v7265_v29, %s7413_s9 }
 0xa61   :  { %7271 = vrot.lane.b32.xlu0 %v7270_v47, %s7413_s9 }
 0xa63   :  { %3120 = vrot.lane.b32.xlu1 %v3118_v31, %s7413_s9 }
 0xa65   :  { %7276 = vrot.lane.b32.xlu0 %v7265_v29, %s7414_s2 }
 0xa67   :  { %7281 = vrot.lane.b32.xlu1 %v7270_v47, %s7414_s2 }
 0xa69   :  { %7286 = vrot.lane.b32.xlu0 %v7285_v43, %s7414_s2 }
 0xa6b   :  { %7291 = vrot.lane.b32.xlu1 %v9730_v37, %s7414_s2 }
 0xab1   :  { %v3027_v15 = vpop.permute.xlu1 %3026 }
 0xab2   :  { %v8965_v44 = vsel %vm523_vm3, %v8815_v28, %v3027_v15 }
 0xab3   :  { %v3099_v38 = vmax.f32 %v8965_v44, 0.0  ;;  %v3029_v42 = vpop.permute.xlu0 %3028 }
 0xab4   :  { %v8970_v5 = vsel %vm523_vm3, %v8813_v45, %v3029_v42 }
 0xab5   :  { %v3100_v10 = vmax.f32 %v8970_v5, 0.0  ;;  %6491 = vmatprep.mubr.msk.f32.mxu1 %vm289_vm2, %v3099_v38  ;;  %v3031_v2 = vpop.permute.xlu1 %3030 }
 0xab6   :  { %v8976_v43 = vsel %vm523_vm3, %v8821_v49, %v3031_v2 }
 0xab7   :  { %v3101_v39 = vmax.f32 %v8976_v43, 0.0  ;;  %6492 = vmatmul.mubr.msk.f32.vlgmr.msra.gmra.mrb[96].mxu1 %vm289_vm2, %v3100_v10  ;;  %v3033_v28 = vpop.permute.xlu0 %3032 }
 0xab8   :  { %v8982_v60 = vsel %vm523_vm3, %v8819_v6, %v3033_v28 }
 0xab9   :  { %v3102_v45 = vmax.f32 %v8982_v60, 0.0  ;;  %6494 = vmatprep.mubr.msk.f32.mxu1 %vm289_vm2, %v3101_v39  ;;  %v3035_v62 = vpop.permute.xlu1 %3034 }
 0xaba   :  { %v8988_v14 = vsel %vm523_vm3, %v8827_v12, %v3035_v62 }
 0xabb   :  { %v3103_v49 = vmax.f32 %v8988_v14, 0.0  ;;  %6495 = vmatmul.mubr.msk.f32.gmra.mrb[98].mxu1 %vm289_vm2, %v3102_v45  ;;  %v3037_v25 = vpop.permute.xlu0 %3036 }
 0xabc   :  { %v8994_v35 = vsel %vm523_vm3, %v8825_v19, %v3037_v25 }
 0xabd   :  { %v3104_v6 = vmax.f32 %v8994_v35, 0.0  ;;  %6497 = vmatprep.mubr.msk.f32.mxu1 %vm289_vm2, %v3103_v49  ;;  %v3039_v56 = vpop.permute.xlu1 %3038 }
 0xabe   :  { %v9000_v61 = vsel %vm523_vm3, %v8833_v1, %v3039_v56 }
 0xabf   :  { %v3105_v12 = vmax.f32 %v9000_v61, 0.0  ;;  %6498 = vmatmul.mubr.msk.f32.gmra.mrb[100].mxu1 %vm289_vm2, %v3104_v6  ;;  %v3041_v29 = vpop.permute.xlu0 %3040 }
 0xac0   :  { %v9006_v47 = vsel %vm523_vm3, %v8831_v55, %v3041_v29 }
 0xac1   :  { %v3106_v19 = vmax.f32 %v9006_v47, 0.0  ;;  %6500 = vmatprep.mubr.msk.f32.mxu1 %vm289_vm2, %v3105_v12  ;;  %v3043_v31 = vpop.permute.xlu1 %3042 }
 0xac2   :  { %v9012_v37 = vsel %vm523_vm3, %v8839_v3, %v3043_v31 }
 0xac3   :  { %v3107_v1 = vmax.f32 %v9012_v37, 0.0  ;;  %6501 = vmatmul.mubr.msk.f32.gmra.mrb[102].mxu1 %vm289_vm2, %v3106_v19  ;;  %v3045_v15 = vpop.permute.xlu0 %3044 }
 0xac4   :  { %v9018_v38 = vsel %vm523_vm3, %v8837_v24, %v3045_v15 }
 0xac5   :  { %v3108_v55 = vmax.f32 %v9018_v38, 0.0  ;;  %6503 = vmatprep.mubr.msk.f32.mxu1 %vm289_vm2, %v3107_v1  ;;  %v3047_v42 = vpop.permute.xlu1 %3046 }
 0xac6   :  { %v9024_v10 = vsel %vm523_vm3, %v8845_v21, %v3047_v42 }
 0xac7   :  { %v3109_v3 = vmax.f32 %v9024_v10, 0.0  ;;  %6504 = vmatmul.mubr.msk.f32.gmra.mrb[104].mxu1 %vm289_vm2, %v3108_v55  ;;  %v3049_v2 = vpop.permute.xlu0 %3048 }
 0xac8   :  { %v9030_v39 = vsel %vm523_vm3, %v8843_v18, %v3049_v2 }
 0xac9   :  { %v3110_v24 = vmax.f32 %v9030_v39, 0.0  ;;  %6506 = vmatprep.mubr.msk.f32.mxu1 %vm289_vm2, %v3109_v3  ;;  %v3051_v28 = vpop.permute.xlu1 %3050 }
 0xaca   :  { %v9036_v45 = vsel %vm523_vm3, %v8851_v58, %v3051_v28  ;;  %v3335_v28 = vrot.slane %v8943_v0, %v7539_v36 }
 0xacb   :  { %v3111_v21 = vmax.f32 %v9036_v45, 0.0  ;;  %6507 = vmatmul.mubr.msk.f32.gmra.mrb[106].mxu1 %vm289_vm2, %v3110_v24  ;;  %v3053_v62 = vpop.permute.xlu0 %3052 }
 0xacc   :  { %v9042_v49 = vsel %vm523_vm3, %v8849_v51, %v3053_v62  ;;  %3353 = vrot.lane.b32.xlu0 %v3335_v28, %s7413_s9 }
 0xacd   :  { %v3112_v18 = vmax.f32 %v9042_v49, 0.0  ;;  %6509 = vmatprep.mubr.msk.f32.mxu1 %vm289_vm2, %v3111_v21  ;;  %v3055_v25 = vpop.permute.xlu1 %3054 }
 0xace   :  { %v9048_v6 = vsel %vm523_vm3, %v8857_v40, %v3055_v25 }
 0xacf   :  { %v3113_v58 = vmax.f32 %v9048_v6, 0.0  ;;  %6510 = vmatmul.mubr.msk.f32.gmra.mrb[108].mxu1 %vm289_vm2, %v3112_v18  ;;  %v3057_v56 = vpop.permute.xlu0 %3056 }
 0xad0   :  { %v9054_v12 = vsel %vm523_vm3, %v8855_v59, %v3057_v56 }
 0xad1   :  { %v3114_v51 = vmax.f32 %v9054_v12, 0.0  ;;  %6512 = vmatprep.mubr.msk.f32.mxu1 %vm289_vm2, %v3113_v58  ;;  %v7267_v29 = vpop.permute.xlu1 %7266 }
 0xad2   :  { %v7269_v19 = vunpack.i.h.bf16 %v7267_v29  ;;  %v7268_v31 = vunpack.i.l.bf16 %v7267_v29 }
 0xad3   :  { %6513 = vmatmul.mubr.msk.f32.gmra.mrb[110].mxu1 %vm289_vm2, %v3114_v51  ;;  %v7272_v40 = vpop.permute.xlu0 %7271 }
 0xad4   :  { %6603 = vmatprep.mubr.msk.bf16.mxu1 %vm8118_vm8, %v9729_v27  ;;  %v6899_v1 = vpack.c.bf16 %v7269_v19, %v7268_v31  ;;  %v7274_v15 = vunpack.i.h.bf16 %v7272_v40  ;;  %v7273_v55 = vunpack.i.l.bf16 %v7272_v40 }
 0xad5   :  { %v9065_v23 = vpop.permute.xlu1 %3120 }
 0xad6   :  { %6900 = vmatprep.subr.bf16.mxu0 %v6899_v1  ;;  %v6903_v59 = vpack.c.bf16 %v7274_v15, %v7273_v55 }
 0xad7   :  { %6902 = vmatpush3.bf16.msra.mxu0 %v6899_v1  ;;  %v7277_v42 = vpop.permute.xlu0 %7276 }
 0xad8   :  { %6904 = vmatprep.subr.bf16.mxu0 %v6903_v59  ;;  %v7279_v3 = vunpack.i.h.bf16 %v7277_v42  ;;  %v7278_v2 = vunpack.i.l.bf16 %v7277_v42 }
 0xad9   :  { %v7282_v21 = vpop.permute.xlu1 %7281 }
 0xada   :  { %v6907_v24 = vpack.c.bf16 %v7279_v3, %v7278_v2  ;;  %v7284_v58 = vunpack.i.h.bf16 %v7282_v21  ;;  %v7283_v56 = vunpack.i.l.bf16 %v7282_v21 }
 0xadb   :  { %6906 = vmatpush3.bf16.msra.mxu0 %v6903_v59  ;;  %v7287_v51 = vpop.permute.xlu0 %7286 }
 0xadc   :  { %6908 = vmatprep.subr.bf16.mxu0 %v6907_v24  ;;  %v7289_v40 = vunpack.i.h.bf16 %v7287_v51  ;;  %v7288_v1 = vunpack.i.l.bf16 %v7287_v51  ;;  %v6911_v59 = vpack.c.bf16 %v7284_v58, %v7283_v56 }
 0xadd   :  { %v7292_v3 = vpop.permute.xlu1 %7291 }
 0xade   :  { %v6915_v21 = vpack.c.bf16 %v7289_v40, %v7288_v1 }
 0xb8a   :  { %v6493_v62 = vpop.f32.mrb[96].mxu1 }
 0xb8b   :  { %v3243_v18 = vadd.f32 %v6493_v62, %v9065_v23  ;;  %v3237_v25 = vpop.f32.mrb[97].mxu1 }
 0xb8c   :  { %v3238_v29 = vadd.f32 %v3237_v25, %v9065_v23 }
 0xb8d   :  { %v3317_v15 = vmax.f32 %v3243_v18, 0.0  ;;  %v7294_v18 = vunpack.i.h.bf16 %v7292_v3 }
 0xb8e   :  { %v3316_v19 = vmax.f32 %v3238_v29, 0.0  ;;  %v6496_v31 = vpop.f32.mrb[98].mxu1  ;;  %v7293_v29 = vunpack.i.l.bf16 %v7292_v3 }
 0xb8f   :  { %v3253_v0 = vadd.f32 %v6496_v31, %v9065_v23  ;;  %v3247_v55 = vpop.f32.mrb[99].mxu1 }
 0xb90   :  { %v3248_v42 = vadd.f32 %v3247_v55, %v9065_v23  ;;  %6523 = vmatprep.mubr.msk.f32.mxu0 %vm523_vm3, %v3316_v19  ;;  %v6919_v1 = vpack.c.bf16 %v7294_v18, %v7293_v29 }
 0xb91   :  { %6524 = vmatmul.mubr.msk.f32.vlgmr.msra.gmra.mrb[64].mxu0 %vm523_vm3, %v3317_v15  ;;  %v3319_v62 = vmax.f32 %v3253_v0, 0.0 }
 0xb92   :  { %v3318_v2 = vmax.f32 %v3248_v42, 0.0  ;;  %6910 = vmatpush3.bf16.msra.mxu0 %v6907_v24  ;;  %v6499_v28 = vpop.f32.mrb[100].mxu1 }
 0xb93   :  { %v3263_v25 = vadd.f32 %v6499_v28, %v9065_v23  ;;  %v3257_v51 = vpop.f32.mrb[101].mxu1  ;;  %6912 = vmatprep.subr.bf16.mxu0 %v6911_v59 }
 0xb94   :  { %v3258_v58 = vadd.f32 %v3257_v51, %v9065_v23  ;;  %6526 = vmatprep.mubr.msk.f32.mxu0 %vm523_vm3, %v3318_v2 }
 0xb95   :  { %6527 = vmatmul.mubr.msk.f32.gmra.mrb[66].mxu0 %vm523_vm3, %v3319_v62  ;;  %v3321_v31 = vmax.f32 %v3263_v25, 0.0 }
 0xb96   :  { %v3320_v56 = vmax.f32 %v3258_v58, 0.0  ;;  %v6502_v19 = vpop.f32.mrb[102].mxu1  ;;  %6914 = vmatpush3.bf16.msra.mxu0 %v6911_v59 }
 0xb97   :  { %v3273_v24 = vadd.f32 %v6502_v19, %v9065_v23  ;;  %v3267_v40 = vpop.f32.mrb[103].mxu1  ;;  %6916 = vmatprep.subr.bf16.mxu0 %v6915_v21 }
 0xb98   :  { %v3268_v15 = vadd.f32 %v3267_v40, %v9065_v23  ;;  %6529 = vmatprep.mubr.msk.f32.mxu0 %vm523_vm3, %v3320_v56 }
 0xb99   :  { %6530 = vmatmul.mubr.msk.f32.gmra.mrb[68].mxu0 %vm523_vm3, %v3321_v31  ;;  %v3323_v42 = vmax.f32 %v3273_v24, 0.0 }
 0xb9a   :  { %v3322_v0 = vmax.f32 %v3268_v15, 0.0  ;;  %v6505_v55 = vpop.f32.mrb[104].mxu1  ;;  %6918 = vmatpush3.bf16.msra.mxu0 %v6915_v21 }
 0xb9b   :  { %v3283_v3 = vadd.f32 %v6505_v55, %v9065_v23  ;;  %v3277_v2 = vpop.f32.mrb[105].mxu1  ;;  %6920 = vmatprep.subr.bf16.mxu0 %v6919_v1 }
 0xb9c   :  { %v3278_v59 = vadd.f32 %v3277_v2, %v9065_v23  ;;  %6532 = vmatprep.mubr.msk.f32.mxu0 %vm523_vm3, %v3322_v0 }
 0xb9d   :  { %6533 = vmatmul.mubr.msk.f32.gmra.mrb[70].mxu0 %vm523_vm3, %v3323_v42  ;;  %v3325_v25 = vmax.f32 %v3283_v3, 0.0 }
 0xb9e   :  { %v3324_v28 = vmax.f32 %v3278_v59, 0.0  ;;  %v6508_v62 = vpop.f32.mrb[106].mxu1  ;;  %6922 = vmatpush3.bf16.msra.mxu0 %v6919_v1 }
 0xb9f   :  { %v3293_v51 = vadd.f32 %v6508_v62, %v9065_v23  ;;  %v3287_v18 = vpop.f32.mrb[107].mxu1 }
 0xba0   :  { %v3288_v21 = vadd.f32 %v3287_v18, %v9065_v23  ;;  %6535 = vmatprep.mubr.msk.f32.mxu0 %vm523_vm3, %v3324_v28 }
 0xba1   :  { %6536 = vmatmul.mubr.msk.f32.gmra.mrb[72].mxu0 %vm523_vm3, %v3325_v25  ;;  %v3327_v56 = vmax.f32 %v3293_v51, 0.0 }
 0xba2   :  { %v3326_v29 = vmax.f32 %v3288_v21, 0.0  ;;  %v6511_v58 = vpop.f32.mrb[108].mxu1 }
 0xba3   :  { %v3303_v19 = vadd.f32 %v6511_v58, %v9065_v23  ;;  %v3297_v31 = vpop.f32.mrb[109].mxu1 }
 0xba4   :  { %v3298_v24 = vadd.f32 %v3297_v31, %v9065_v23  ;;  %6538 = vmatprep.mubr.msk.f32.mxu0 %vm523_vm3, %v3326_v29 }
 0xba5   :  { %6539 = vmatmul.mubr.msk.f32.gmra.mrb[74].mxu0 %vm523_vm3, %v3327_v56  ;;  %v3329_v15 = vmax.f32 %v3303_v19, 0.0 }
 0xba6   :  { %v3328_v40 = vmax.f32 %v3298_v24, 0.0  ;;  %v6514_v1 = vpop.f32.mrb[110].mxu1 }
 0xba7   :  { %v3313_v0 = vadd.f32 %v6514_v1, %v9065_v23  ;;  %v3307_v55 = vpop.f32.mrb[111].mxu1 }
 0xba8   :  { %v3308_v42 = vadd.f32 %v3307_v55, %v9065_v23  ;;  %6541 = vmatprep.mubr.msk.f32.mxu0 %vm523_vm3, %v3328_v40 }
 0xba9   :  { %6542 = vmatmul.mubr.msk.f32.gmra.mrb[76].mxu0 %vm523_vm3, %v3329_v15  ;;  %v3331_v2 = vmax.f32 %v3313_v0, 0.0 }
 0xbaa   :  { %v3330_v3 = vmax.f32 %v3308_v42, 0.0 }
 0xbac   :  { %6544 = vmatprep.mubr.msk.f32.mxu0 %vm523_vm3, %v3330_v3 }
 0xbad   :  { %6545 = vmatmul.mubr.msk.f32.gmra.mrb[78].mxu0 %vm523_vm3, %v3331_v2 }
 0xbae   :  { %6563 = vmatprep.mubr.msk.f32.mxu0 %vm289_vm2, %v8965_v44  ;;  %v3354_v44 = vpop.permute.xlu0 %3353 }
 0xbb1   :  { %6564 = vmatmul.mubr.msk.f32.vlgmr.msra.gmra.mrb[64].mxu0 %vm289_vm2, %v8970_v5 }
 0xbb2   :  { %6566 = vmatprep.mubr.msk.f32.mxu0 %vm289_vm2, %v8976_v43 }
 0xbb5   :  { %6567 = vmatmul.mubr.msk.f32.gmra.mrb[66].mxu0 %vm289_vm2, %v8982_v60 }
 0xbb6   :  { %6569 = vmatprep.mubr.msk.f32.mxu0 %vm289_vm2, %v8988_v14 }
 0xbb9   :  { %6570 = vmatmul.mubr.msk.f32.gmra.mrb[68].mxu0 %vm289_vm2, %v8994_v35 }
 0xbba   :  { %6572 = vmatprep.mubr.msk.f32.mxu0 %vm289_vm2, %v9000_v61 }
 0xbbd   :  { %6573 = vmatmul.mubr.msk.f32.gmra.mrb[70].mxu0 %vm289_vm2, %v9006_v47 }
 0xbbe   :  { %6575 = vmatprep.mubr.msk.f32.mxu0 %vm289_vm2, %v9012_v37 }
 0xbc1   :  { %6576 = vmatmul.mubr.msk.f32.gmra.mrb[72].mxu0 %vm289_vm2, %v9018_v38 }
 0xbc2   :  { %6578 = vmatprep.mubr.msk.f32.mxu0 %vm289_vm2, %v9024_v10 }
 0xbc5   :  { %6579 = vmatmul.mubr.msk.f32.gmra.mrb[74].mxu0 %vm289_vm2, %v9030_v39 }
 0xbc6   :  { %6581 = vmatprep.mubr.msk.f32.mxu0 %vm289_vm2, %v9036_v45 }
 0xbc9   :  { %6582 = vmatmul.mubr.msk.f32.gmra.mrb[76].mxu0 %vm289_vm2, %v9042_v49 }
 0xbca   :  { %6584 = vmatprep.mubr.msk.f32.mxu0 %vm289_vm2, %v9048_v6 }
 0xbcd   :  { %6585 = vmatmul.mubr.msk.f32.gmra.mrb[78].mxu0 %vm289_vm2, %v9054_v12 }
 0xc84   :  { %v6565_v5 = vpop.f32.mrb[64].mxu0 }
 0xc85   :  { %v9131_v43 = vadd.f32 %v6565_v5, %v3354_v44  ;;  %v3691_v60 = vpop.f32.mrb[65].mxu0 }
 0xc86   :  { %v9133_v14 = vadd.f32 %v3691_v60, %v3354_v44 }
 0xc88   :  { %v3770_v35 = vpack.c.bf16 %v9131_v43, %v9133_v14  ;;  %v6568_v61 = vpop.f32.mrb[66].mxu0 }
 0xc89   :  { %v9137_v47 = vadd.f32 %v6568_v61, %v3354_v44  ;;  %v3701_v37 = vpop.f32.mrb[67].mxu0  ;;  %v6923_v61 = vpack.c.bf16 %v3972_v22, %v3971_v4 }
 0xc8a   :  { %v9139_v38 = vadd.f32 %v3701_v37, %v3354_v44  ;;  %6587 = vmatprep.subr.bf16.mxu1 %v3770_v35  ;;  %v9202_v37 = vld [vmem:[#allocation2 + $0x148] sm:$0xff] }
 0xc8b   :  { %6588 = vmatpush3.bf16.msra.mxu1 %v3770_v35 }
 0xc8c   :  { %v3771_v10 = vpack.c.bf16 %v9137_v47, %v9139_v38  ;;  %v6571_v39 = vpop.f32.mrb[68].mxu0 }
 0xc8d   :  { %v9143_v45 = vadd.f32 %v6571_v39, %v3354_v44  ;;  %v3711_v49 = vpop.f32.mrb[69].mxu0  ;;  %v6927_v39 = vpack.c.bf16 %v3974_v54, %v3973_v32 }
 0xc8e   :  { %v9145_v6 = vadd.f32 %v3711_v49, %v3354_v44  ;;  %6589 = vmatprep.subr.bf16.mxu1 %v3771_v10  ;;  %v9210_v49 = vld [vmem:[#allocation2 + $0x158] sm:$0xff] }
 0xc8f   :  { %6590 = vmatpush3.bf16.msra.mxu1 %v3771_v10  ;;  %v9204_v10 = vld [vmem:[#allocation2 + $0x150] sm:$0xff] }
 0xc90   :  { %v3772_v12 = vpack.c.bf16 %v9143_v45, %v9145_v6  ;;  %v6574_v23 = vpop.f32.mrb[70].mxu0  ;;  %v7315_v26 = vpack.i.bf16 %v9204_v10, %v9202_v37 }
 0xc91   :  { %v9149_v59 = vadd.f32 %v6574_v23, %v3354_v44  ;;  %v3721_v28 = vpop.f32.mrb[71].mxu0  ;;  %v6931_v23 = vpack.c.bf16 %v9204_v10, %v9202_v37 }
 0xc92   :  { %v9151_v62 = vadd.f32 %v3721_v28, %v3354_v44  ;;  %6591 = vmatprep.subr.bf16.mxu1 %v3772_v12  ;;  %v6935_v28 = vpack.c.bf16 %v9212_v63, %v9210_v49 }
 0xc93   :  { %6592 = vmatpush3.bf16.msra.mxu1 %v3772_v12  ;;  %v7320_v12 = vpack.i.bf16 %v9212_v63, %v9210_v49 }
 0xc94   :  { %v3773_v25 = vpack.c.bf16 %v9149_v59, %v9151_v62  ;;  %v6577_v51 = vpop.f32.mrb[72].mxu0 }
 0xc95   :  { %v9155_v18 = vadd.f32 %v6577_v51, %v3354_v44  ;;  %v3731_v21 = vpop.f32.mrb[73].mxu0  ;;  %v35_v51 = vld [vmem:[#allocation2 + $0x10] sm:$0xff] }
 0xc96   :  { %v9157_v29 = vadd.f32 %v3731_v21, %v3354_v44  ;;  %6593 = vmatprep.subr.bf16.mxu1 %v3773_v25 }
 0xc97   :  { %6594 = vmatpush3.bf16.msra.mxu1 %v3773_v25  ;;  %v34_v25 = vld [vmem:[#allocation2 + $0x8] sm:$0xff] }
 0xc98   :  { %v3774_v58 = vpack.c.bf16 %v9155_v18, %v9157_v29  ;;  %v6580_v56 = vpop.f32.mrb[74].mxu0  ;;  %v9220_v21 = vpack.c.bf16 %v35_v51, %v34_v25 }
 0xc99   :  { %v9161_v19 = vadd.f32 %v6580_v56, %v3354_v44  ;;  %v3741_v31 = vpop.f32.mrb[75].mxu0 }
 0xc9a   :  { %v9163_v24 = vadd.f32 %v3741_v31, %v3354_v44  ;;  %6595 = vmatprep.subr.bf16.mxu1 %v3774_v58 }
 0xc9b   :  { %6596 = vmatpush3.bf16.msra.mxu1 %v3774_v58 }
 0xc9c   :  { %v3775_v40 = vpack.c.bf16 %v9161_v19, %v9163_v24  ;;  %v6583_v1 = vpop.f32.mrb[76].mxu0 }
 0xc9d   :  { %v9167_v15 = vadd.f32 %v6583_v1, %v3354_v44  ;;  %v3751_v0 = vpop.f32.mrb[77].mxu0 }
 0xc9e   :  { %v9169_v55 = vadd.f32 %v3751_v0, %v3354_v44  ;;  %6597 = vmatprep.subr.bf16.mxu1 %v3775_v40 }
 0xc9f   :  { %6598 = vmatpush3.bf16.msra.mxu1 %v3775_v40 }
 0xca0   :  { %v3776_v42 = vpack.c.bf16 %v9167_v15, %v9169_v55  ;;  %v6586_v3 = vpop.f32.mrb[78].mxu0 }
 0xca1   :  { %v9173_v2 = vadd.f32 %v6586_v3, %v3354_v44  ;;  %v3761_v5 = vpop.f32.mrb[79].mxu0 }
 0xca2   :  { %v9175_v60 = vadd.f32 %v3761_v5, %v3354_v44  ;;  %6599 = vmatprep.subr.bf16.mxu1 %v3776_v42  ;;  %v9200_v44 = vpack.i.bf16 %v3972_v22, %v3971_v4 }
 0xca3   :  { %6600 = vmatpush3.bf16.msra.mxu1 %v3776_v42 }
 0xca4   :  { %v3777_v35 = vpack.c.bf16 %v9173_v2, %v9175_v60 }
 0xca6   :  { %6601 = vmatprep.subr.bf16.mxu1 %v3777_v35 }
 0xca7   :  { %6602 = vmatpush3.bf16.msra.mxu1 %v3777_v35 }
 0xca8   :  { %6924 = vmatprep.subr.bf16.mxu1 %v6923_v61 }
 0xcaa   :  { %6604 = vmatmul.mubr.msk.bf16.vlgmr.msra.gmra.mrb[112].mxu1 %vm7894_vm1, %v9729_v27 }
 0xcab   :  { %6607 = vmatprep.mubr.msk.bf16.mxu1 %vm7944_vm0, %v9729_v27  ;;  %6926 = vmatpush3.bf16.msra.mxu1 %v6923_v61 }
 0xcac   :  { %6928 = vmatprep.subr.bf16.mxu1 %v6927_v39 }
 0xcaf   :  { %6930 = vmatpush3.bf16.msra.mxu1 %v6927_v39 }
 0xcb0   :  { %6932 = vmatprep.subr.bf16.mxu1 %v6931_v23 }
 0xcb2   :  { %6608 = vmatmul.mubr.msk.bf16.gmra.mrb[116].mxu1 %vm7994_vm12, %v9729_v27 }
 0xcb3   :  { %6611 = vmatprep.mubr.msk.bf16.mxu1 %vm8044_vm6, %v9729_v27  ;;  %6934 = vmatpush3.bf16.msra.mxu1 %v6931_v23 }
 0xcb4   :  { %6936 = vmatprep.subr.bf16.mxu1 %v6935_v28 }
 0xcb7   :  { %6938 = vmatpush3.bf16.msra.mxu1 %v6935_v28 }
 0xcb8   :  { %6964 = vmatprep.subr.bf16.mxu1 %v9220_v21 }
 0xcba   :  { %6612 = vmatmul.mubr.msk.bf16.gmra.mrb[120].mxu1 %vm8094_vm9, %v9729_v27 }
 0xcbb   :  { %6615 = vmatprep.mubr.msk.bf16.mxu1 %vm8122_vm11, %v9729_v27 }
 0xcc2   :  { %6616 = vmatmul.mubr.msk.bf16.gmra.mrb[124].mxu1 %vm8132_vm7, %v9729_v27 }
 0xd7d   :  { %v6605_v58 = vpop.f32.mrb[112].mxu1 }
 0xd7e   :  { %v3812_v56 = vpop.f32.mrb[113].mxu1  ;;  %v3877_v42 = vmul.f32 %v8261_v8, %v6605_v58  ;;  %v9254_v58 = vld [vmem:[#allocation2 + $0x148] sm:$0x3] }
 0xd7f   :  { %v3875_v31 = vmul.f32 %v8250_v48, %v3812_v56  ;;  %v6606_v40 = vpop.f32.mrb[114].mxu1 }
 0xd80   :  { %v3815_v1 = vpop.f32.mrb[115].mxu1  ;;  %v3878_v3 = vmul.f32 %v8257_v52, %v6606_v40 }
 0xd81   :  { %v3876_v0 = vmul.f32 %v8253_v11, %v3815_v1  ;;  %3907 = vrot.lane.b32.xlu1 %v3875_v31, %s7418_s0 }
 0xd83   :  { %3909 = vrot.lane.b32.xlu0 %v3876_v0, %s7418_s0  ;;  %v9732_v0 = vld [vmem:[#allocation10_spill] sm:$0xff] }
 0xd85   :  { %3911 = vrot.lane.b32.xlu1 %v3877_v42, %s7418_s0  ;;  %v6609_v5 = vpop.f32.mrb[116].mxu1  ;;  %v9734_v42 = vld [vmem:[#allocation9_spill] sm:$0xff] }
 0xd86   :  { %v3828_v35 = vpop.f32.mrb[117].mxu1  ;;  %v3881_v8 = vmul.f32 %v8276_v30, %v6609_v5 }
 0xd87   :  { %v3879_v4 = vmul.f32 %v8268_v17, %v3828_v35  ;;  %3913 = vrot.lane.b32.xlu0 %v3878_v3, %s7418_s0  ;;  %v6610_v48 = vpop.f32.mrb[118].mxu1 }
 0xd88   :  { %v3831_v22 = vpop.f32.mrb[119].mxu1  ;;  %v3882_v52 = vmul.f32 %v8272_v9, %v6610_v48 }
 0xd89   :  { %v3880_v11 = vmul.f32 %v8265_v41, %v3831_v22  ;;  %3915 = vrot.lane.b32.xlu1 %v3879_v4, %s7418_s0 }
 0xd8b   :  { %3917 = vrot.lane.b32.xlu0 %v3880_v11, %s7418_s0 }
 0xd8d   :  { %3919 = vrot.lane.b32.xlu1 %v3881_v8, %s7418_s0  ;;  %v6613_v32 = vpop.f32.mrb[120].mxu1 }
 0xd8e   :  { %v3844_v61 = vpop.f32.mrb[121].mxu1  ;;  %v3885_v30 = vmul.f32 %v8292_v46, %v6613_v32 }
 0xd8f   :  { %v3883_v17 = vmul.f32 %v8284_v16, %v3844_v61  ;;  %3921 = vrot.lane.b32.xlu0 %v3882_v52, %s7418_s0  ;;  %v6614_v54 = vpop.f32.mrb[122].mxu1 }
 0xd90   :  { %v3847_v39 = vpop.f32.mrb[123].mxu1  ;;  %v3886_v9 = vmul.f32 %v8288_v34, %v6614_v54 }
 0xd91   :  { %v3884_v41 = vmul.f32 %v8280_v50, %v3847_v39  ;;  %3923 = vrot.lane.b32.xlu1 %v3883_v17, %s7418_s0 }
 0xd93   :  { %3925 = vrot.lane.b32.xlu0 %v3884_v41, %s7418_s0 }
 0xd95   :  { %3927 = vrot.lane.b32.xlu1 %v3885_v30, %s7418_s0  ;;  %v6617_v23 = vpop.f32.mrb[124].mxu1 }
 0xd96   :  { %v3860_v28 = vpop.f32.mrb[125].mxu1  ;;  %v3889_v46 = vmul.f32 %v8308_v57, %v6617_v23  ;;  %v37_v57 = vld [vmem:[#allocation2 + $0x20] sm:$0xff] }
 0xd97   :  { %v3887_v16 = vmul.f32 %v8300_v7, %v3860_v28  ;;  %3929 = vrot.lane.b32.xlu0 %v3886_v9, %s7418_s0  ;;  %v6618_v25 = vpop.f32.mrb[126].mxu1  ;;  %v36_v7 = vld [vmem:[#allocation2 + $0x18] sm:$0xff] }
 0xd98   :  { %v3863_v51 = vpop.f32.mrb[127].mxu1  ;;  %v3890_v34 = vmul.f32 %v8304_v20, %v6618_v25 }
 0xd99   :  { %v3888_v50 = vmul.f32 %v8296_v53, %v3863_v51  ;;  %3931 = vrot.lane.b32.xlu1 %v3887_v16, %s7418_s0  ;;  %v4003_v53 = vrot.slane %v9254_v58, %v7532_v33 }
 0xd9b   :  { %3933 = vrot.lane.b32.xlu0 %v3888_v50, %s7418_s0 }
 0xd9d   :  { %3935 = vrot.lane.b32.xlu1 %v3889_v46, %s7418_s0 }
 0xd9f   :  { %3937 = vrot.lane.b32.xlu0 %v3890_v34, %s7418_s0 }
 0xda1   :  { %7296 = vrot.lane.b32.xlu1 %v9200_v44, %s7413_s9 }
 0xda3   :  { %7301 = vrot.lane.b32.xlu0 %v9206_v13, %s7413_s9 }
 0xda5   :  { %4005 = vrot.lane.b32.xlu1 %v4003_v53, %s7413_s9 }
 0xda7   :  { %7306 = vrot.lane.b32.xlu0 %v9200_v44, %s7414_s2 }
 0xda9   :  { %7311 = vrot.lane.b32.xlu1 %v9206_v13, %s7414_s2 }
 0xdab   :  { %7316 = vrot.lane.b32.xlu0 %v7315_v26, %s7414_s2  ;;  %v6967_v26 = vpack.c.bf16 %v37_v57, %v36_v7 }
 0xdad   :  { %7321 = vrot.lane.b32.xlu1 %v7320_v12, %s7414_s2 }
 0xdf3   :  { %v3908_v33 = vpop.permute.xlu1 %3907 }
 0xdf4   :  { %v9278_v20 = vsel %vm523_vm3, %v9133_v14, %v3908_v33 }
 0xdf5   :  { %v3984_v44 = vmax.f32 %v9278_v20, 0.0  ;;  %v3910_v13 = vpop.permute.xlu0 %3909 }
 0xdf6   :  { %v9283_v56 = vsel %vm523_vm3, %v9131_v43, %v3910_v13 }
 0xdf7   :  { %v3985_v37 = vmax.f32 %v9283_v56, 0.0  ;;  %6635 = vmatprep.mubr.msk.f32.mxu1 %vm289_vm2, %v3984_v44  ;;  %v3912_v10 = vpop.permute.xlu1 %3911 }
 0xdf8   :  { %v9289_v49 = vsel %vm523_vm3, %v9139_v38, %v3912_v10 }
 0xdf9   :  { %v3986_v14 = vmax.f32 %v9289_v49, 0.0  ;;  %6636 = vmatmul.mubr.msk.f32.vlgmr.msra.gmra.mrb[128].mxu1 %vm289_vm2, %v3985_v37  ;;  %v3914_v63 = vpop.permute.xlu0 %3913  ;;  %v4220_v37 = vrot.slane %v9254_v58, %v7539_v36 }
 0xdfa   :  { %6966 = vmatpush3.bf16.msra.mxu1 %v9220_v21  ;;  %v9296_v43 = vsel %vm523_vm3, %v9137_v47, %v3914_v63  ;;  %v9731_v21 = vld [vmem:[#allocation13_spill] sm:$0xff] }
 0xdfb   :  { %v3987_v12 = vmax.f32 %v9296_v43, 0.0  ;;  %6638 = vmatprep.mubr.msk.f32.mxu1 %vm289_vm2, %v3986_v14  ;;  %v3916_v31 = vpop.permute.xlu1 %3915  ;;  %6968 = vmatprep.subr.bf16.mxu1 %v6967_v26  ;;  %vm9733_vm7 = vcmp.eq.s32.totalorder %v9731_v21, %v9732_v0  ;;  %vm9735_vm12 = vcmp.eq.s32.totalorder %v9731_v21, %v9734_v42 }
 0xdfc   :  { %v9302_v38 = vsel %vm523_vm3, %v9145_v6, %v3916_v31  ;;  %vm6971_vm13 = vmpackc.low %vm9735_vm12, %vm9733_vm7  ;;  %4238 = vrot.lane.b32.xlu0 %v4220_v37, %s7413_s9  ;;  %s7419_s9 = smov [#allocation5]  }
 0xdfd   :  { %v3988_v40 = vmax.f32 %v9302_v38, 0.0  ;;  %6639 = vmatmul.mubr.msk.f32.gmra.mrb[130].mxu1 %vm289_vm2, %v3987_v12  ;;  %v3918_v1 = vpop.permute.xlu0 %3917  ;;  %s5146_s2 = sshll.u32 %s7419_s9, 4  ;;  %s5147_s2 = int_to_ptr.vmem [resolvable:$true] %s5146_s2 }
 0xdfe   :  { %6970 = vmatpush3.bf16.msra.mxu1 %v6967_v26  ;;  %v9308_v47 = vsel %vm523_vm3, %v9143_v45, %v3918_v1  ;;  %s7384_s19 = scalar_lea.vmem %s5147_s2, 1024  ;;  %p7389_p9 = scmp.lt.s32.totalorder %s5147_s2, %s5147_s2 }
 0xdff   :  { %v3989_v6 = vmax.f32 %v9308_v47, 0.0  ;;  %6972 = vmatprep.subr.msk.bf16.mxu1 %vm6971_vm13, %v9729_v27  ;;  %6641 = vmatprep.mubr.msk.f32.mxu1 %vm289_vm2, %v3988_v40  ;;  %v3920_v3 = vpop.permute.xlu1 %3919  ;;  %p7385_p8 = scmp.ne.s32.totalorder %s5147_s2, %s7384_s19  ;;  %p7390_p10 = scmp.lt.s32.totalorder %s7384_s19, %s7384_s19 }
 0xe00   :  { %v9321_v5 = vsel %vm523_vm3, %v9151_v62, %v3920_v3 }
 0xe01   :  { %v3990_v45 = vmax.f32 %v9321_v5, 0.0  ;;  %6642 = vmatmul.mubr.msk.f32.gmra.mrb[132].mxu1 %vm289_vm2, %v3989_v6  ;;  %v3922_v35 = vpop.permute.xlu0 %3921  ;;  %p7391_p11 = por %p7390_p10, %p7389_p9 }
 0xe02   :  { %v9327_v4 = vsel %vm523_vm3, %v9149_v59, %v3922_v35 }
 0xe03   :  { %v3991_v48 = vmax.f32 %v9327_v4, 0.0  ;;  %6644 = vmatprep.mubr.msk.f32.mxu1 %vm289_vm2, %v3990_v45  ;;  %v3924_v22 = vpop.permute.xlu1 %3923  ;;  %p7392_p12 = pnand %p7391_p11, %p7385_p8 }
 0xe04   :  { %v9333_v11 = vsel %vm523_vm3, %v9157_v29, %v3924_v22 }
 0xe05   :  { %v3992_v62 = vmax.f32 %v9333_v11, 0.0  ;;  %6645 = vmatmul.mubr.msk.f32.gmra.mrb[134].mxu1 %vm289_vm2, %v3991_v48  ;;  %v3926_v8 = vpop.permute.xlu0 %3925 }
 0xe06   :  { %v9339_v52 = vsel %vm523_vm3, %v9155_v18, %v3926_v8 }
 0xe07   :  { %v3993_v59 = vmax.f32 %v9339_v52, 0.0  ;;  %6647 = vmatprep.mubr.msk.f32.mxu1 %vm289_vm2, %v3992_v62  ;;  %v3928_v32 = vpop.permute.xlu1 %3927 }
 0xe08   :  { %v9345_v61 = vsel %vm523_vm3, %v9163_v24, %v3928_v32 }
 0xe09   :  { %v3994_v29 = vmax.f32 %v9345_v61, 0.0  ;;  %6648 = vmatmul.mubr.msk.f32.gmra.mrb[136].mxu1 %vm289_vm2, %v3993_v59  ;;  %v3930_v17 = vpop.permute.xlu0 %3929 }
 0xe0a   :  { %v9351_v54 = vsel %vm523_vm3, %v9161_v19, %v3930_v17 }
 0xe0b   :  { %v3995_v18 = vmax.f32 %v9351_v54, 0.0  ;;  %6650 = vmatprep.mubr.msk.f32.mxu1 %vm289_vm2, %v3994_v29  ;;  %v3932_v39 = vpop.permute.xlu1 %3931 }
 0xe0c   :  { %v9357_v41 = vsel %vm523_vm3, %v9169_v55, %v3932_v39 }
 0xe0d   :  { %v3996_v24 = vmax.f32 %v9357_v41, 0.0  ;;  %6651 = vmatmul.mubr.msk.f32.gmra.mrb[138].mxu1 %vm289_vm2, %v3995_v18  ;;  %v3934_v30 = vpop.permute.xlu0 %3933 }
 0xe0e   :  { %v9363_v9 = vsel %vm523_vm3, %v9167_v15, %v3934_v30 }
 0xe0f   :  { %v3997_v19 = vmax.f32 %v9363_v9, 0.0  ;;  %6653 = vmatprep.mubr.msk.f32.mxu1 %vm289_vm2, %v3996_v24  ;;  %v3936_v23 = vpop.permute.xlu1 %3935 }
 0xe10   :  { %v9369_v28 = vsel %vm523_vm3, %v9175_v60, %v3936_v23 }
 0xe11   :  { %v3998_v55 = vmax.f32 %v9369_v28, 0.0  ;;  %6654 = vmatmul.mubr.msk.f32.gmra.mrb[140].mxu1 %vm289_vm2, %v3997_v19  ;;  %v3938_v16 = vpop.permute.xlu0 %3937 }
 0xe12   :  { %v9375_v25 = vsel %vm523_vm3, %v9173_v2, %v3938_v16 }
 0xe13   :  { %v3999_v15 = vmax.f32 %v9375_v25, 0.0  ;;  %6656 = vmatprep.mubr.msk.f32.mxu1 %vm289_vm2, %v3998_v55  ;;  %v7297_v51 = vpop.permute.xlu1 %7296 }
 0xe14   :  { %v7299_v50 = vunpack.i.h.bf16 %v7297_v51  ;;  %v7298_v46 = vunpack.i.l.bf16 %v7297_v51 }
 0xe15   :  { %6657 = vmatmul.mubr.msk.f32.gmra.mrb[142].mxu1 %vm289_vm2, %v3999_v15  ;;  %v7302_v60 = vpop.permute.xlu0 %7301 }
 0xe16   :  { %v6939_v34 = vpack.c.bf16 %v7299_v50, %v7298_v46  ;;  %v7304_v53 = vunpack.i.h.bf16 %v7302_v60  ;;  %v7303_v33 = vunpack.i.l.bf16 %v7302_v60 }
 0xe17   :  { %v9383_v10 = vpop.permute.xlu1 %4005 }
 0xe18   :  { %6940 = vmatprep.subr.bf16.mxu0 %v6939_v34  ;;  %v6943_v7 = vpack.c.bf16 %v7304_v53, %v7303_v33 }
 0xe19   :  { %6942 = vmatpush3.bf16.msra.mxu0 %v6939_v34  ;;  %v7307_v2 = vpop.permute.xlu0 %7306 }
 0xe1a   :  { %6944 = vmatprep.subr.bf16.mxu0 %v6943_v7  ;;  %v7309_v57 = vunpack.i.h.bf16 %v7307_v2  ;;  %v7308_v44 = vunpack.i.l.bf16 %v7307_v2 }
 0xe1b   :  { %v7312_v26 = vpop.permute.xlu1 %7311 }
 0xe1c   :  { %v6947_v13 = vpack.c.bf16 %v7309_v57, %v7308_v44  ;;  %v7314_v31 = vunpack.i.h.bf16 %v7312_v26  ;;  %v7313_v40 = vunpack.i.l.bf16 %v7312_v26 }
 0xe1d   :  { %6946 = vmatpush3.bf16.msra.mxu0 %v6943_v7  ;;  %v7317_v1 = vpop.permute.xlu0 %7316 }
 0xe1e   :  { %6948 = vmatprep.subr.bf16.mxu0 %v6947_v13  ;;  %v7319_v35 = vunpack.i.h.bf16 %v7317_v1  ;;  %v7318_v48 = vunpack.i.l.bf16 %v7317_v1  ;;  %v6951_v62 = vpack.c.bf16 %v7314_v31, %v7313_v40 }
 0xe1f   :  { %v7322_v59 = vpop.permute.xlu1 %7321 }
 0xe20   :  { %v6955_v17 = vpack.c.bf16 %v7319_v35, %v7318_v48  ;;  %v7324_v30 = vunpack.i.h.bf16 %v7322_v59  ;;  %v7323_v19 = vunpack.i.l.bf16 %v7322_v59 }
 0xe22   :  { %v6959_v46 = vpack.c.bf16 %v7324_v30, %v7323_v19  ;;  %v9757_v19 = vld [vmem:[#allocation19_spill] sm:$0xff] }
 0xecc   :  { %v6637_v14 = vpop.f32.mrb[128].mxu1 }
 0xecd   :  { %v4128_v63 = vadd.f32 %v6637_v14, %v9383_v10  ;;  %v4122_v12 = vpop.f32.mrb[129].mxu1 }
 0xece   :  { %v4123_v6 = vadd.f32 %v4122_v12, %v9383_v10 }
 0xecf   :  { %v4202_v22 = vmax.f32 %v4128_v63, 0.0 }
 0xed0   :  { %v4201_v3 = vmax.f32 %v4123_v6, 0.0  ;;  %v6640_v45 = vpop.f32.mrb[130].mxu1 }
 0xed1   :  { %v4138_v36 = vadd.f32 %v6640_v45, %v9383_v10  ;;  %v4132_v58 = vpop.f32.mrb[131].mxu1 }
 0xed2   :  { %v4133_v8 = vadd.f32 %v4132_v58, %v9383_v10  ;;  %6667 = vmatprep.mubr.msk.f32.mxu0 %vm523_vm3, %v4201_v3 }
 0xed3   :  { %6668 = vmatmul.mubr.msk.f32.vlgmr.msra.gmra.mrb[80].mxu0 %vm523_vm3, %v4202_v22  ;;  %v4204_v18 = vmax.f32 %v4138_v36, 0.0 }
 0xed4   :  { %v4203_v32 = vmax.f32 %v4133_v8, 0.0  ;;  %6950 = vmatpush3.bf16.msra.mxu0 %v6947_v13  ;;  %v6643_v29 = vpop.f32.mrb[132].mxu1 }
 0xed5   :  { %v4148_v39 = vadd.f32 %v6643_v29, %v9383_v10  ;;  %v4142_v24 = vpop.f32.mrb[133].mxu1  ;;  %6952 = vmatprep.subr.bf16.mxu0 %v6951_v62  ;;  %v9751_v29 = vld [vmem:[#allocation17_spill] sm:$0xff] }
 0xed6   :  { %v4143_v23 = vadd.f32 %v4142_v24, %v9383_v10  ;;  %6670 = vmatprep.mubr.msk.f32.mxu0 %vm523_vm3, %v4203_v32 }
 0xed7   :  { %6671 = vmatmul.mubr.msk.f32.gmra.mrb[82].mxu0 %vm523_vm3, %v4204_v18  ;;  %v4206_v15 = vmax.f32 %v4148_v39, 0.0 }
 0xed8   :  { %v4205_v55 = vmax.f32 %v4143_v23, 0.0  ;;  %v6646_v16 = vpop.f32.mrb[134].mxu1  ;;  %6954 = vmatpush3.bf16.msra.mxu0 %v6951_v62  ;;  %v9759_v23 = vld [vmem:[#allocation20_spill] sm:$0xff] }
 0xed9   :  { %v4158_v51 = vadd.f32 %v6646_v16, %v9383_v10  ;;  %v4152_v50 = vpop.f32.mrb[135].mxu1  ;;  %6956 = vmatprep.subr.bf16.mxu0 %v6955_v17 }
 0xeda   :  { %v4153_v60 = vadd.f32 %v4152_v50, %v9383_v10  ;;  %6673 = vmatprep.mubr.msk.f32.mxu0 %vm523_vm3, %v4205_v55  ;;  %v9763_v50 = vld [vmem:[#allocation21_spill] sm:$0xff] }
 0xedb   :  { %6674 = vmatmul.mubr.msk.f32.gmra.mrb[84].mxu0 %vm523_vm3, %v4206_v15  ;;  %v4208_v33 = vmax.f32 %v4158_v51, 0.0 }
 0xedc   :  { %v4207_v34 = vmax.f32 %v4153_v60, 0.0  ;;  %v6649_v53 = vpop.f32.mrb[136].mxu1  ;;  %6958 = vmatpush3.bf16.msra.mxu0 %v6955_v17  ;;  %v9753_v17 = vld [vmem:[#allocation18_spill] sm:$0xff] }
 0xedd   :  { %v4168_v7 = vadd.f32 %v6649_v53, %v9383_v10  ;;  %v4162_v2 = vpop.f32.mrb[137].mxu1  ;;  %6960 = vmatprep.subr.bf16.mxu0 %v6959_v46 }
 0xede   :  { %v4163_v57 = vadd.f32 %v4162_v2, %v9383_v10  ;;  %6676 = vmatprep.mubr.msk.f32.mxu0 %vm523_vm3, %v4207_v34  ;;  %v9771_v2 = vld [vmem:[#allocation24_spill] sm:$0xff] }
 0xedf   :  { %6677 = vmatmul.mubr.msk.f32.gmra.mrb[86].mxu0 %vm523_vm3, %v4208_v33  ;;  %v4210_v37 = vmax.f32 %v4168_v7, 0.0  ;;  %v9769_v7 = vld [vmem:[#allocation23_spill] sm:$0xff] }
 0xee0   :  { %v4209_v44 = vmax.f32 %v4163_v57, 0.0  ;;  %v6652_v13 = vpop.f32.mrb[138].mxu1  ;;  %6962 = vmatpush3.bf16.msra.mxu0 %v6959_v46  ;;  %v9765_v46 = vld [vmem:[#allocation22_spill] sm:$0xff] }
 0xee1   :  { %v4178_v26 = vadd.f32 %v6652_v13, %v9383_v10  ;;  %v4172_v14 = vpop.f32.mrb[139].mxu1 }
 0xee2   :  { %v4173_v63 = vadd.f32 %v4172_v14, %v9383_v10  ;;  %6679 = vmatprep.mubr.msk.f32.mxu0 %vm523_vm3, %v4209_v44  ;;  %v9777_v14 = vld [vmem:[#allocation26_spill] sm:$0xff] }
 0xee3   :  { %6680 = vmatmul.mubr.msk.f32.gmra.mrb[88].mxu0 %vm523_vm3, %v4210_v37  ;;  %v4212_v40 = vmax.f32 %v4178_v26, 0.0  ;;  %v9775_v26 = vld [vmem:[#allocation25_spill] sm:$0xff] }
 0xee4   :  { %v4211_v12 = vmax.f32 %v4173_v63, 0.0  ;;  %v6655_v31 = vpop.f32.mrb[140].mxu1 }
 0xee5   :  { %v4188_v1 = vadd.f32 %v6655_v31, %v9383_v10  ;;  %v4182_v6 = vpop.f32.mrb[141].mxu1 }
 0xee6   :  { %v4183_v3 = vadd.f32 %v4182_v6, %v9383_v10  ;;  %6682 = vmatprep.mubr.msk.f32.mxu0 %vm523_vm3, %v4211_v12  ;;  %v9781_v12 = vmov 0.0  }
 0xee7   :  { %6683 = vmatmul.mubr.msk.f32.gmra.mrb[90].mxu0 %vm523_vm3, %v4212_v40  ;;  %v4214_v48 = vmax.f32 %v4188_v1, 0.0  ;;  %v7361_v40 = vld [vmem:[#allocation2] sm:$0xff] }
 0xee8   :  { %v4213_v45 = vmax.f32 %v4183_v3, 0.0  ;;  %v6658_v35 = vpop.f32.mrb[142].mxu1 }
 0xee9   :  { %v4198_v22 = vadd.f32 %v6658_v35, %v9383_v10  ;;  %v4192_v36 = vpop.f32.mrb[143].mxu1 }
 0xeea   :  { %v4193_v58 = vadd.f32 %v4192_v36, %v9383_v10  ;;  %6685 = vmatprep.mubr.msk.f32.mxu0 %vm523_vm3, %v4213_v45 }
 0xeeb   :  { %6686 = vmatmul.mubr.msk.f32.gmra.mrb[92].mxu0 %vm523_vm3, %v4214_v48  ;;  %v4216_v8 = vmax.f32 %v4198_v22, 0.0 }
 0xeec   :  { %v4215_v62 = vmax.f32 %v4193_v58, 0.0 }
 0xeee   :  { %6688 = vmatprep.mubr.msk.f32.mxu0 %vm523_vm3, %v4215_v62 }
 0xeef   :  { %6689 = vmatmul.mubr.msk.f32.gmra.mrb[94].mxu0 %vm523_vm3, %v4216_v8 }
 0xef0   :  { %6707 = vmatprep.mubr.msk.f32.mxu0 %vm289_vm2, %v9278_v20  ;;  %v9449_v20 = vpop.permute.xlu0 %4238 }
 0xef3   :  { %6708 = vmatmul.mubr.msk.f32.vlgmr.msra.gmra.mrb[80].mxu0 %vm289_vm2, %v9283_v56 }
 0xef4   :  { %6710 = vmatprep.mubr.msk.f32.mxu0 %vm289_vm2, %v9289_v49 }
 0xef7   :  { %6711 = vmatmul.mubr.msk.f32.gmra.mrb[82].mxu0 %vm289_vm2, %v9296_v43 }
 0xef8   :  { %6713 = vmatprep.mubr.msk.f32.mxu0 %vm289_vm2, %v9302_v38 }
 0xefb   :  { %6714 = vmatmul.mubr.msk.f32.gmra.mrb[84].mxu0 %vm289_vm2, %v9308_v47 }
 0xefc   :  { %6716 = vmatprep.mubr.msk.f32.mxu0 %vm289_vm2, %v9321_v5 }
 0xeff   :  { %6717 = vmatmul.mubr.msk.f32.gmra.mrb[86].mxu0 %vm289_vm2, %v9327_v4  ;;  %v9736_v4 = vld [vmem:[#allocation11_spill] sm:$0xff] }
 0xf00   :  { %6719 = vmatprep.mubr.msk.f32.mxu0 %vm289_vm2, %v9333_v11  ;;  %vm9737_vm14 = vcmp.eq.s32.totalorder %v9736_v4, %v9732_v0 }
 0xf03   :  { %6720 = vmatmul.mubr.msk.f32.gmra.mrb[88].mxu0 %vm289_vm2, %v9339_v52  ;;  %v9739_v52 = vld [vmem:[#allocation12_spill] sm:$0xff] }
 0xf04   :  { %6722 = vmatprep.mubr.msk.f32.mxu0 %vm289_vm2, %v9345_v61  ;;  %vm9740_vm1 = vcmp.eq.s32.totalorder %v9731_v21, %v9739_v52  ;;  %v9741_v61 = vld [vmem:[#allocation14_spill] sm:$0xff]  ;;  %vm9743_vm4 = vcmp.eq.s32.totalorder %v9736_v4, %v9739_v52 }
 0xf05   :  { %vm9742_vm6 = vcmp.eq.s32.totalorder %v9731_v21, %v9741_v61  ;;  %vm9744_vm15 = vcmp.eq.s32.totalorder %v9736_v4, %v9741_v61 }
 0xf06   :  { %vm6975_vm9 = vmpackc.low %vm9742_vm6, %vm9740_vm1  ;;  %vm9755_vm1 = vcmp.eq.s32.totalorder %v9736_v4, %v9751_v29  ;;  %vm9756_vm6 = vcmp.eq.s32.totalorder %v9736_v4, %v9753_v17 }
 0xf07   :  { %6723 = vmatmul.mubr.msk.f32.gmra.mrb[90].mxu0 %vm289_vm2, %v9351_v54  ;;  %vm6977_vm5 = vmpackc.low %vm9744_vm15, %vm9743_vm4  ;;  %vm9758_vm4 = vcmp.eq.s32.totalorder %v9731_v21, %v9757_v19  ;;  %vm9760_vm15 = vcmp.eq.s32.totalorder %v9731_v21, %v9759_v23 }
 0xf08   :  { %6725 = vmatprep.mubr.msk.f32.mxu0 %vm289_vm2, %v9357_v41 }
 0xf0b   :  { %6726 = vmatmul.mubr.msk.f32.gmra.mrb[92].mxu0 %vm289_vm2, %v9363_v9  ;;  %v9745_v9 = vld [vmem:[#allocation15_spill] sm:$0xff] }
 0xf0c   :  { %6728 = vmatprep.mubr.msk.f32.mxu0 %vm289_vm2, %v9369_v28  ;;  %vm9746_vm10 = vcmp.eq.s32.totalorder %v9731_v21, %v9745_v9  ;;  %v9747_v28 = vld [vmem:[#allocation16_spill] sm:$0xff]  ;;  %vm9749_vm7 = vcmp.eq.s32.totalorder %v9736_v4, %v9745_v9 }
 0xf0d   :  { %vm9748_vm8 = vcmp.eq.s32.totalorder %v9731_v21, %v9747_v28  ;;  %vm9750_vm12 = vcmp.eq.s32.totalorder %v9736_v4, %v9747_v28 }
 0xf0e   :  { %vm6979_vm11 = vmpackc.low %vm9748_vm8, %vm9746_vm10  ;;  %vm9761_vm10 = vcmp.eq.s32.totalorder %v9736_v4, %v9757_v19  ;;  %vm9762_vm8 = vcmp.eq.s32.totalorder %v9736_v4, %v9759_v23  ;;  %v9784_v19 = vld [vmem:[#allocation28_spill] sm:$0xff] }
 0xf0f   :  { %6729 = vmatmul.mubr.msk.f32.gmra.mrb[94].mxu0 %vm289_vm2, %v9375_v25  ;;  %vm9738_vm2 = vcmp.eq.s32.totalorder %v9736_v4, %v9734_v42  ;;  %vm6981_vm13 = vmpackc.low %vm9750_vm12, %vm9749_vm7  ;;  %vm9764_vm7 = vcmp.eq.s32.totalorder %v9731_v21, %v9763_v50  ;;  %vm9766_vm12 = vcmp.eq.s32.totalorder %v9731_v21, %v9765_v46  ;;  %v4991_v23 = vrot.slane %v9784_v19, 4 }
 0xf10   :  { %vm6973_vm0 = vmpackc.low %vm9738_vm2, %vm9737_vm14  ;;  %vm9752_vm14 = vcmp.eq.s32.totalorder %v9731_v21, %v9751_v29  ;;  %vm9754_vm2 = vcmp.eq.s32.totalorder %v9731_v21, %v9753_v17 }
 0xfc6   :  { %v6709_v56 = vpop.f32.mrb[80].mxu0 }
 0xfc7   :  { %v4580_v49 = vpop.f32.mrb[81].mxu0  ;;  %v7067_v38 = vadd.f32 %v6709_v56, %v9449_v20 }
 0xfc8   :  { %v7068_v43 = vadd.f32 %v4580_v49, %v9449_v20 }
 0xfca   :  { %v6712_v47 = vpop.f32.mrb[82].mxu0  ;;  %6739 = vmatprep.mubr.msk.f32.mxu1 %vm523_vm3, %v7068_v43 }
 0xfcb   :  { %v4590_v5 = vpop.f32.mrb[83].mxu0  ;;  %6740 = vmatmul.mubr.msk.f32.vlgmr.msra.gmra.mrb[144].mxu1 %vm523_vm3, %v7067_v38  ;;  %v7069_v54 = vadd.f32 %v6712_v47, %v9449_v20 }
 0xfcc   :  { %v7070_v11 = vadd.f32 %v4590_v5, %v9449_v20  ;;  %6974 = vmatpush1.bf16.msk.msra.mxu1 %vm6973_vm0, %v9729_v27  ;;  %vm6983_vm0 = vmpackc.low %vm9754_vm2, %vm9752_vm14  ;;  %vm9767_vm14 = vcmp.eq.s32.totalorder %v9736_v4, %v9763_v50  ;;  %vm9768_vm2 = vcmp.eq.s32.totalorder %v9736_v4, %v9765_v46 }
 0xfcd   :  { %6976 = vmatprep.subr.msk.bf16.mxu1 %vm6975_vm9, %v9729_v27  ;;  %vm6985_vm9 = vmpackc.low %vm9756_vm6, %vm9755_vm1  ;;  %vm9770_vm1 = vcmp.eq.s32.totalorder %v9731_v21, %v9769_v7  ;;  %vm9772_vm6 = vcmp.eq.s32.totalorder %v9731_v21, %v9771_v2 }
 0xfce   :  { %v6715_v0 = vpop.f32.mrb[84].mxu0  ;;  %6742 = vmatprep.mubr.msk.f32.mxu1 %vm523_vm3, %v7070_v11 }
 0xfcf   :  { %v4600_v42 = vpop.f32.mrb[85].mxu0  ;;  %6743 = vmatmul.mubr.msk.f32.gmra.mrb[146].mxu1 %vm523_vm3, %v7069_v54  ;;  %v7071_v25 = vadd.f32 %v6715_v0, %v9449_v20 }
 0xfd0   :  { %v7072_v41 = vadd.f32 %v4600_v42, %v9449_v20  ;;  %6978 = vmatpush1.bf16.msk.msra.mxu1 %vm6977_vm5, %v9729_v27  ;;  %vm6987_vm5 = vmpackc.low %vm9760_vm15, %vm9758_vm4  ;;  %vm9773_vm4 = vcmp.eq.s32.totalorder %v9736_v4, %v9769_v7  ;;  %vm9774_vm15 = vcmp.eq.s32.totalorder %v9736_v4, %v9771_v2 }
 0xfd1   :  { %6980 = vmatprep.subr.msk.bf16.mxu1 %vm6979_vm11, %v9729_v27  ;;  %vm6989_vm11 = vmpackc.low %vm9762_vm8, %vm9761_vm10  ;;  %vm9776_vm10 = vcmp.eq.s32.totalorder %v9731_v21, %v9775_v26  ;;  %vm9778_vm8 = vcmp.eq.s32.totalorder %v9731_v21, %v9777_v14  ;;  %v9782_v21 = vld [vmem:[#allocation8_spill] sm:$0xff] }
 0xfd2   :  { %v6718_v10 = vpop.f32.mrb[86].mxu0  ;;  %6745 = vmatprep.mubr.msk.f32.mxu1 %vm523_vm3, %v7072_v41  ;;  %v4661_v31 = vsub.s32 4, %v9782_v21 }
 0xfd3   :  { %v4610_v59 = vpop.f32.mrb[87].mxu0  ;;  %6746 = vmatmul.mubr.msk.f32.gmra.mrb[148].mxu1 %vm523_vm3, %v7071_v25  ;;  %v7073_v18 = vadd.f32 %v6718_v10, %v9449_v20 }
 0xfd4   :  { %v7074_v32 = vadd.f32 %v4610_v59, %v9449_v20  ;;  %6982 = vmatpush1.bf16.msk.msra.mxu1 %vm6981_vm13, %v9729_v27  ;;  %vm6991_vm13 = vmpackc.low %vm9766_vm12, %vm9764_vm7  ;;  %vm9779_vm7 = vcmp.eq.s32.totalorder %v9736_v4, %v9775_v26  ;;  %vm9780_vm12 = vcmp.eq.s32.totalorder %v9736_v4, %v9777_v14  ;;  %v4662_v1 = vrot.slane %v7361_v40, %v4661_v31 }
 0xfd5   :  { %6984 = vmatprep.subr.msk.bf16.mxu1 %vm6983_vm0, %v9729_v27  ;;  %vm6993_vm0 = vmpackc.low %vm9768_vm2, %vm9767_vm14 }
 0xfd6   :  { %v6721_v39 = vpop.f32.mrb[88].mxu0  ;;  %6748 = vmatprep.mubr.msk.f32.mxu1 %vm523_vm3, %v7074_v32 }
 0xfd7   :  { %v4620_v24 = vpop.f32.mrb[89].mxu0  ;;  %6749 = vmatmul.mubr.msk.f32.gmra.mrb[150].mxu1 %vm523_vm3, %v7073_v18  ;;  %v7075_v55 = vadd.f32 %v6721_v39, %v9449_v20 }
 0xfd8   :  { %v7076_v30 = vadd.f32 %v4620_v24, %v9449_v20  ;;  %6986 = vmatpush1.bf16.msk.msra.mxu1 %vm6985_vm9, %v9729_v27  ;;  %vm6995_vm9 = vmpackc.low %vm9772_vm6, %vm9770_vm1  ;;  %v9783_v24 = vld [vmem:[#allocation27_spill] sm:$0xff] }
 0xfd9   :  { %6988 = vmatprep.subr.msk.bf16.mxu1 %vm6987_vm5, %v9729_v27  ;;  %vm6997_vm5 = vmpackc.low %vm9774_vm15, %vm9773_vm4 }
 0xfda   :  { %v6724_v16 = vpop.f32.mrb[90].mxu0  ;;  %6751 = vmatprep.mubr.msk.f32.mxu1 %vm523_vm3, %v7076_v30  ;;  %v4970_v30 = vrot.slane %v9783_v24, 4 }
 0xfdb   :  { %v4630_v15 = vpop.f32.mrb[91].mxu0  ;;  %6752 = vmatmul.mubr.msk.f32.gmra.mrb[152].mxu1 %vm523_vm3, %v7075_v55  ;;  %v7077_v60 = vadd.f32 %v6724_v16, %v9449_v20  ;;  %v4992_v16 = vadd.f32 %v4991_v23, %v9784_v19 }
 0xfdc   :  { %v7078_v51 = vadd.f32 %v4630_v15, %v9449_v20  ;;  %6990 = vmatpush1.bf16.msk.msra.mxu1 %vm6989_vm11, %v9729_v27  ;;  %vm6999_vm11 = vmpackc.low %vm9778_vm8, %vm9776_vm10  ;;  %v4971_v55 = vadd.f32 %v4970_v30, %v9783_v24 }
 0xfdd   :  { %6992 = vmatprep.subr.msk.bf16.mxu1 %vm6991_vm13, %v9729_v27  ;;  %vm7001_vm13 = vmpackc.low %vm9780_vm12, %vm9779_vm7 }
 0xfde   :  { %v6727_v34 = vpop.f32.mrb[92].mxu0  ;;  %6754 = vmatprep.mubr.msk.f32.mxu1 %vm523_vm3, %v7078_v51  ;;  %v4972_v15 = vrot.slane %v4971_v55, 2  ;;  %v4993_v51 = vrot.slane %v4992_v16, 2 }
 0xfdf   :  { %v4640_v53 = vpop.f32.mrb[93].mxu0  ;;  %6755 = vmatmul.mubr.msk.f32.gmra.mrb[154].mxu1 %vm523_vm3, %v7077_v60  ;;  %v7079_v57 = vadd.f32 %v6727_v34, %v9449_v20 }
 0xfe0   :  { %v7080_v33 = vadd.f32 %v4640_v53, %v9449_v20  ;;  %6994 = vmatpush1.bf16.msk.msra.mxu1 %vm6993_vm0, %v9729_v27  ;;  %v4973_v50 = vadd.f32 %v4972_v15, %v4971_v55  ;;  %v4994_v46 = vadd.f32 %v4993_v51, %v4992_v16 }
 0xfe1   :  { %6996 = vmatprep.subr.msk.bf16.mxu1 %vm6995_vm9, %v9729_v27 }
 0xfe2   :  { %v6730_v44 = vpop.f32.mrb[94].mxu0  ;;  %6757 = vmatprep.mubr.msk.f32.mxu1 %vm523_vm3, %v7080_v33  ;;  %v4974_v60 = vrot.slane %v4973_v50, 1  ;;  %v4995_v34 = vrot.slane %v4994_v46, 1 }
 0xfe3   :  { %v4650_v13 = vpop.f32.mrb[95].mxu0  ;;  %6758 = vmatmul.mubr.msk.f32.gmra.mrb[156].mxu1 %vm523_vm3, %v7079_v57  ;;  %v7081_v63 = vadd.f32 %v6730_v44, %v9449_v20 }
 0xfe4   :  { %v7082_v37 = vadd.f32 %v4650_v13, %v9449_v20  ;;  %6998 = vmatpush1.bf16.msk.msra.mxu1 %vm6997_vm5, %v9729_v27  ;;  %v4975_v53 = vadd.f32 %v4974_v60, %v4973_v50  ;;  %v4996_v33 = vadd.f32 %v4995_v34, %v4994_v46 }
 0xfe5   :  { %7000 = vmatprep.subr.msk.bf16.mxu1 %vm6999_vm11, %v9729_v27 }
 0xfe6   :  { %6760 = vmatprep.mubr.msk.f32.mxu1 %vm523_vm3, %v7082_v37  ;;  %v5118_v7 = vmax.f32 %v4975_v53, 1.0  ;;  %v5119_v2 = vmax.f32 %v4996_v33, 1.0 }
 0xfe7   :  { %6761 = vmatmul.mubr.msk.f32.gmra.mrb[158].mxu1 %vm523_vm3, %v7081_v63 }
 0xfe8   :  { %7002 = vmatpush1.bf16.msk.msra.mxu1 %vm7001_vm13, %v9729_v27  ;;  %5093 = vmatprep.mubr.f32.mxu1 %v9781_v12  ;;  %7357 = vrcp.f32 %v5118_v7 }
 0xfe9   :  { %7359 = vrcp.f32 %v5119_v2 }
 0xff2   :  { %v7358_v57 = vpop.eup %7357 }
 0xff3   :  { %v7360_v13 = vpop.eup %7359 }
0x109e   :  { %v6741_v6 = vpop.f32.mrb[144].mxu1 }
0x109f   :  { %v4783_v3 = vadd.f32 %v6741_v6, %v4662_v1  ;;  %v4777_v45 = vpop.f32.mrb[145].mxu1 }
0x10a0   :  { %v4778_v35 = vadd.f32 %v4777_v45, %v4662_v1 }
0x10a2   :  { %v6744_v48 = vpop.f32.mrb[146].mxu1  ;;  %4997 = vxpose.xlu1.b32.start [1/16] (narrow) %v4778_v35, 32 }
0x10a3   :  { %v4793_v22 = vadd.f32 %v6744_v48, %v4662_v1  ;;  %v4787_v36 = vpop.f32.mrb[147].mxu1 }
0x10a4   :  { %v4788_v58 = vadd.f32 %v4787_v36, %v4662_v1 }
0x10a6   :  { %v6747_v62 = vpop.f32.mrb[148].mxu1  ;;  %4998 = vxpose.xlu1.b32.cont [2/16] (narrow) %v4783_v3, 32 }
0x10a7   :  { %v4803_v8 = vadd.f32 %v6747_v62, %v4662_v1  ;;  %v4797_v20 = vpop.f32.mrb[149].mxu1 }
0x10a8   :  { %v4798_v27 = vadd.f32 %v4797_v20, %v4662_v1 }
0x10aa   :  { %v6750_v56 = vpop.f32.mrb[150].mxu1  ;;  %4999 = vxpose.xlu1.b32.cont [3/16] (narrow) %v4788_v58, 32 }
0x10ab   :  { %v4813_v49 = vadd.f32 %v6750_v56, %v4662_v1  ;;  %v4807_v43 = vpop.f32.mrb[151].mxu1 }
0x10ac   :  { %v4808_v38 = vadd.f32 %v4807_v43, %v4662_v1 }
0x10ae   :  { %v6753_v47 = vpop.f32.mrb[152].mxu1  ;;  %5000 = vxpose.xlu1.b32.cont [4/16] (narrow) %v4793_v22, 32 }
0x10af   :  { %v4823_v5 = vadd.f32 %v6753_v47, %v4662_v1  ;;  %v4817_v4 = vpop.f32.mrb[153].mxu1 }
0x10b0   :  { %v4818_v11 = vadd.f32 %v4817_v4, %v4662_v1 }
0x10b2   :  { %v6756_v52 = vpop.f32.mrb[154].mxu1  ;;  %5001 = vxpose.xlu1.b32.cont [5/16] (narrow) %v4798_v27, 32 }
0x10b3   :  { %v4833_v61 = vadd.f32 %v6756_v52, %v4662_v1  ;;  %v4827_v54 = vpop.f32.mrb[155].mxu1 }
0x10b4   :  { %v4828_v0 = vadd.f32 %v4827_v54, %v4662_v1 }
0x10b6   :  { %v6759_v42 = vpop.f32.mrb[156].mxu1  ;;  %5002 = vxpose.xlu1.b32.cont [6/16] (narrow) %v4803_v8, 32 }
0x10b7   :  { %v4843_v41 = vadd.f32 %v6759_v42, %v4662_v1  ;;  %v4837_v9 = vpop.f32.mrb[157].mxu1 }
0x10b8   :  { %v4838_v28 = vadd.f32 %v4837_v9, %v4662_v1 }
0x10ba   :  { %v6762_v25 = vpop.f32.mrb[158].mxu1  ;;  %5003 = vxpose.xlu1.b32.cont [7/16] (narrow) %v4808_v38, 32 }
0x10bb   :  { %v4853_v10 = vadd.f32 %v6762_v25, %v4662_v1  ;;  %v4847_v59 = vpop.f32.mrb[159].mxu1 }
0x10bc   :  { %v4848_v32 = vadd.f32 %v4847_v59, %v4662_v1 }
0x10be   :  { %5004 = vxpose.xlu1.b32.cont [8/16] (narrow) %v4813_v49, 32 }
0x10c2   :  { %5005 = vxpose.xlu1.b32.cont [9/16] (narrow) %v4818_v11, 32 }
0x10c6   :  { %5006 = vxpose.xlu1.b32.cont [10/16] (narrow) %v4823_v5, 32 }
0x10ca   :  { %5007 = vxpose.xlu1.b32.cont [11/16] (narrow) %v4828_v0, 32 }
0x10ce   :  { %5008 = vxpose.xlu1.b32.cont [12/16] (narrow) %v4833_v61, 32 }
0x10d2   :  { %5009 = vxpose.xlu1.b32.cont [13/16] (narrow) %v4838_v28, 32 }
0x10d6   :  { %5010 = vxpose.xlu1.b32.cont [14/16] (narrow) %v4843_v41, 32 }
0x10da   :  { %5011 = vxpose.xlu1.b32.cont [15/16] (narrow) %v4848_v32, 32 }
0x10de   :  { %5012 = vxpose.xlu1.b32.end [16/16] (narrow) %v4853_v10, 32 }
0x1122   :  { %v5013_v29 = vpop.trf.xlu1 }
0x1123   :  { %5094 = vmatmul.mubr.f32.vlgmr.msra.gmra.mrb[160].mxu1 %v5013_v29 }
0x1124   :  { %5099 = vmatprep.mubr.f32.mxu1 %v9781_v12 }
0x1126   :  { %v5014_v17 = vpop.trf.xlu1 }
0x1127   :  { %5100 = vmatmul.mubr.f32.gmra.mrb[162].mxu1 %v5014_v17 }
0x1128   :  { %5105 = vmatprep.mubr.f32.mxu1 %v9781_v12 }
0x112a   :  { %v5015_v18 = vpop.trf.xlu1 }
0x112b   :  { %5106 = vmatmul.mubr.f32.gmra.mrb[164].mxu1 %v5015_v18 }
0x112c   :  { %5111 = vmatprep.mubr.f32.mxu1 %v9781_v12 }
0x112e   :  { %v5016_v39 = vpop.trf.xlu1 }
0x112f   :  { %5112 = vmatmul.mubr.f32.gmra.mrb[166].mxu1 %v5016_v39 }
0x11f6   :  { %v5095_v44 = vpop.f32.mrb[160].mxu1 }
0x11f7   :  { %v5124_v37 = vmul.f32 %v7358_v57, %v5095_v44  ;;  %v5097_v26 = vpop.f32.mrb[161].mxu1 }
0x11f8   :  { %v5125_v14 = vmul.f32 %v7360_v13, %v5097_v26 }
0x11f9   :  { %5132 = vst [vmem:[#allocation5] sm:$0xff] %v5124_v37 }
0x11fa   :  { %5137 = vst [vmem:[#allocation5 + $0x20] sm:$0xff] %v5125_v14  ;;  %v5101_v63 = vpop.f32.mrb[162].mxu1 }
0x11fb   :  { %v5126_v12 = vmul.f32 %v7358_v57, %v5101_v63  ;;  %v5103_v21 = vpop.f32.mrb[163].mxu1 }
0x11fc   :  { %v5127_v31 = vmul.f32 %v7360_v13, %v5103_v21 }
0x11fd   :  { %5133 = vst [vmem:[#allocation5 + $0x8] sm:$0xff] %v5126_v12 }
0x11fe   :  { %5138 = vst [vmem:[#allocation5 + $0x28] sm:$0xff] %v5127_v31  ;;  %v5107_v40 = vpop.f32.mrb[164].mxu1 }
0x11ff   :  { %v5128_v1 = vmul.f32 %v7358_v57, %v5107_v40  ;;  %v5109_v6 = vpop.f32.mrb[165].mxu1 }
0x1200   :  { %v5129_v3 = vmul.f32 %v7360_v13, %v5109_v6 }
0x1201   :  { %5134 = vst [vmem:[#allocation5 + $0x10] sm:$0xff] %v5128_v1 }
0x1202   :  { %5139 = vst [vmem:[#allocation5 + $0x30] sm:$0xff] %v5129_v3  ;;  %v5113_v45 = vpop.f32.mrb[166].mxu1 }
0x1203   :  { %v5130_v35 = vmul.f32 %v7358_v57, %v5113_v45  ;;  %v5115_v48 = vpop.f32.mrb[167].mxu1 }
0x1204   :  { %v5131_v22 = vmul.f32 %v7360_v13, %v5115_v48 }
0x1205   :  { %5135 = vst [vmem:[#allocation5 + $0x18] sm:$0xff] %v5130_v35 }
0x1206   :  { %5140 = vst [vmem:[#allocation5 + $0x38] sm:$0xff] %v5131_v22 }
0x1207   :  { %7395 = shalt.err (!%p7392_p12)
}
0x1208   :  { %s7396_s22 = scalar_lea.hbm %s9616_s4, 1024 }
0x1209   :  { %p7397_p13 = scmp.ne.s32.totalorder %s9616_s4, %s7396_s22  ;;  %p7400_p0 = scmp.lt.u32.totalorder %s7396_s22, %s9616_s4 }
0x120b   :  { %p7402_p1 = pnand %p7400_p0, %p7397_p13 }
0x120d   :  { %7405 = shalt.err (!%p7402_p1)
}
0x120e   :  { %5152 = dma.vmem_to_hbm [thread:$0]  %s5147_s2, 1024, %s9616_s4, [#allocation4], %s7411_s25, %s7411_s25, %s7412_s26  }
0x120f   :  { %7408 = dma.done.wait [#allocation4], 1024  }
0x1210   :  { %7409 = vsyncadd [#allocation4], 4294966272 }
0x1211   :  { %5156 = vsyncpa [#allocation3], 1 }
0x1212   :  { %5157 = vsyncpa [#allocation4], 1 }

</bundles_post_ra>
